<compile_context>
chip_gen: v6e
topology: v6e:2x2x1
jax: 0.10.0
libtpu: 0.0.40
codegen_flags: <defaults>
</compile_context>

<pallas_src>
import functools

import jax
import jax.numpy as jnp
from jax.experimental import pallas as pl
from jax.experimental.pallas import tpu as pltpu

EPS = 1e-5  # nn.BatchNorm2d default eps


def _round_up(x, m):
    return ((x + m - 1) // m) * m


def _pick_tm(M, tm_max):
    """Pick an M-tile that divides M exactly when possible (no pad, no slice)."""
    hi = min(tm_max, M)
    hi -= hi % 16                      # bf16 sublane packing -> multiples of 16
    lo = max(16, (tm_max // 4) - (tm_max // 4) % 16)
    for cand in range(hi, lo - 1, -16):
        if M % cand == 0:
            return cand, M
    tm_eff = max(16, min(tm_max, _round_up(M, 16)))
    return tm_eff, _round_up(M, tm_eff)


def _compiler_params(semantics, tile_bytes):
    # Double-buffered per-step tiles + slack; no artificial 32 MiB floor that
    # could hide a mis-sized tile, capped at 48 MiB (headroom under v7x's
    # 64 MiB physical / v5e+v6e 128 MiB VMEM).
    est = 2 * int(tile_bytes) + (4 << 20)
    limit = int(min(max(est, 16 << 20), 48 << 20))
    return pltpu.CompilerParams(dimension_semantics=semantics,
                                vmem_limit_bytes=limit)


# ----------------------------------------------------------------------------
# Pass 1a: tiled matmul (bf16 y out) + per-tile partial channel stats
# ----------------------------------------------------------------------------
def _mm_stats_kernel(p_ref, w_ref, o_ref, sum_ref, sq_ref):
    acc = jnp.dot(p_ref[...], w_ref[...], preferred_element_type=jnp.float32)
    # Stats from the f32 accumulator BEFORE the bf16 cast of y.
    sum_ref[...] = jnp.sum(acc, axis=0, keepdims=True)[None]
    sq_ref[...] = jnp.sum(acc * acc, axis=0, keepdims=True)[None]
    o_ref[...] = acc.astype(o_ref.dtype)


def matmul_with_stats(patches, w_mat, *, tm):
    Mp, Kp = patches.shape
    _, Cp = w_mat.shape
    n_tiles = Mp // tm
    tile_bytes = tm * Kp * 2 + Kp * Cp * 2 + tm * Cp * 2 + 2 * Cp * 4
    return pl.pallas_call(
        _mm_stats_kernel,
        out_shape=(jax.ShapeDtypeStruct((Mp, Cp), jnp.bfloat16),
                   jax.ShapeDtypeStruct((n_tiles, 1, Cp), jnp.float32),
                   jax.ShapeDtypeStruct((n_tiles, 1, Cp), jnp.float32)),
        grid=(n_tiles,),
        in_specs=[pl.BlockSpec((tm, Kp), lambda i: (i, 0)),
                  pl.BlockSpec((Kp, Cp), lambda i: (0, 0))],
        out_specs=(pl.BlockSpec((tm, Cp), lambda i: (i, 0)),
                   pl.BlockSpec((1, 1, Cp), lambda i: (i, 0, 0)),
                   pl.BlockSpec((1, 1, Cp), lambda i: (i, 0, 0))),
        # Partial-sum outputs -> no cross-iteration accumulator -> "parallel"
        # lets v7x split the axis across its two TensorCores.
        compiler_params=_compiler_params(("parallel",), tile_bytes),
    )(patches, w_mat)


# ----------------------------------------------------------------------------
# Pass 1b: tiled matmul with fused epilogue (no-BN path: last block's 2nd conv
#          -> +skip -> tanh)
# ----------------------------------------------------------------------------
def _make_mm_fused_kernel(do_relu, do_add, do_tanh):
    def kernel(*refs):
        it = iter(refs)
        p_ref = next(it)
        w_ref = next(it)
        s_ref = next(it) if do_add else None
        o_ref = next(it)
        acc = jnp.dot(p_ref[...], w_ref[...], preferred_element_type=jnp.float32)
        if do_relu:
            acc = jnp.maximum(acc, 0.0)
        if do_add:
            acc = acc + s_ref[...].astype(jnp.float32)
        if do_tanh:
            acc = jnp.tanh(acc)
        o_ref[...] = acc.astype(o_ref.dtype)
    return kernel


def matmul_fused(patches, w_mat, skip=None, *, do_relu=False, do_tanh=False,
                 out_dtype=jnp.bfloat16, tm):
    Mp, Kp = patches.shape
    _, Cp = w_mat.shape
    do_add = skip is not None
    args = [patches, w_mat]
    in_specs = [pl.BlockSpec((tm, Kp), lambda i: (i, 0)),
                pl.BlockSpec((Kp, Cp), lambda i: (0, 0))]
    tile_bytes = tm * Kp * 2 + Kp * Cp * 2 + tm * Cp * jnp.dtype(out_dtype).itemsize
    if do_add:
        args.append(skip)
        in_specs.append(pl.BlockSpec((tm, Cp), lambda i: (i, 0)))
        tile_bytes += tm * Cp * 2
    return pl.pallas_call(
        _make_mm_fused_kernel(do_relu, do_add, do_tanh),
        out_shape=jax.ShapeDtypeStruct((Mp, Cp), out_dtype),
        grid=(Mp // tm,),
        in_specs=in_specs,
        out_specs=pl.BlockSpec((tm, Cp), lambda i: (i, 0)),
        compiler_params=_compiler_params(("parallel",), tile_bytes),
    )(*args)


# ----------------------------------------------------------------------------
# Pass 2: streaming BN epilogue (folded scale/shift FMA) + ReLU / +skip / tanh
#         Reads bf16 y / bf16 skip, upcasts in register, writes bf16 (or f32).
# ----------------------------------------------------------------------------
def _make_epilogue_kernel(do_relu, do_add, do_tanh):
    def kernel(*refs):
        it = iter(refs)
        y_ref = next(it)
        a_ref = next(it)                      # [1, Cp] folded scale (f32)
        b_ref = next(it)                      # [1, Cp] folded shift (f32)
        s_ref = next(it) if do_add else None  # [TM, Cp] residual (bf16)
        o_ref = next(it)
        y = y_ref[...].astype(jnp.float32) * a_ref[...] + b_ref[...]
        if do_relu:
            y = jnp.maximum(y, 0.0)
        if do_add:
            y = y + s_ref[...].astype(jnp.float32)
        if do_tanh:
            y = jnp.tanh(y)
        o_ref[...] = y.astype(o_ref.dtype)
    return kernel


def bn_epilogue(y, scale, shift, skip=None, *, do_relu, do_tanh,
                out_dtype=jnp.bfloat16, tm):
    Mp, Cp = y.shape
    do_add = skip is not None
    args = [y, scale, shift]
    in_specs = [pl.BlockSpec((tm, Cp), lambda i: (i, 0)),
                pl.BlockSpec((1, Cp), lambda i: (0, 0)),
                pl.BlockSpec((1, Cp), lambda i: (0, 0))]
    tile_bytes = tm * Cp * 2 + 2 * Cp * 4 + tm * Cp * jnp.dtype(out_dtype).itemsize
    if do_add:
        args.append(skip)
        in_specs.append(pl.BlockSpec((tm, Cp), lambda i: (i, 0)))
        tile_bytes += tm * Cp * 2
    return pl.pallas_call(
        _make_epilogue_kernel(do_relu, do_add, do_tanh),
        out_shape=jax.ShapeDtypeStruct((Mp, Cp), out_dtype),
        grid=(Mp // tm,),
        in_specs=in_specs,
        out_specs=pl.BlockSpec((tm, Cp), lambda i: (i, 0)),
        compiler_params=_compiler_params(("parallel",), tile_bytes),
    )(*args)


# ----------------------------------------------------------------------------
# One-time parameter preprocessing (hoisted out of the forward path).
# Weights are laid out for CHANNEL-PADDED inputs so the 3x3 convs need no
# runtime K-padding of the im2col patches.
# ----------------------------------------------------------------------------
def preprocess_params(params, n_blocks):
    def prep_w(w, cin_pad):
        cout, cin, kh, kw = w.shape
        cp = _round_up(cout, 128)
        wf = jnp.asarray(w, jnp.float32)
        if cin_pad > cin:
            wf = jnp.pad(wf, ((0, 0), (0, cin_pad - cin), (0, 0), (0, 0)))
        k = kh * kw * cin_pad
        kp = _round_up(k, 128)
        wm = jnp.transpose(wf, (2, 3, 1, 0)).reshape(k, cout)   # (kh,kw,cin,cout)->(K,cout)
        wm = jnp.pad(wm, ((0, kp - k), (0, cp - cout)))
        return wm.astype(jnp.bfloat16), cp

    def prep_gb(g, b, cp):
        c = g.shape[0]
        gp = jnp.pad(jnp.asarray(g, jnp.float32), (0, cp - c),
                     constant_values=1.0).reshape(1, cp)
        bp = jnp.pad(jnp.asarray(b, jnp.float32), (0, cp - c)).reshape(1, cp)
        return gp, bp

    pp = {}
    cin_pad = params["stem_w"].shape[1]                   # raw input channels (3)
    pp["stem_w"], cp = prep_w(params["stem_w"], cin_pad)
    pp["stem_g"], pp["stem_b"] = prep_gb(params["stem_g"], params["stem_b"], cp)
    cin_pad = cp
    for i in range(2):
        pp[f"down{i}_w"], cp = prep_w(params[f"down{i}_w"], cin_pad)
        pp[f"down{i}_g"], pp[f"down{i}_b"] = prep_gb(params[f"down{i}_g"],
                                                     params[f"down{i}_b"], cp)
        cin_pad = cp
    for b in range(n_blocks):
        pp[f"blk{b}_w1"], cp1 = prep_w(params[f"blk{b}_w1"], cin_pad)
        pp[f"blk{b}_g1"], pp[f"blk{b}_b1"] = prep_gb(params[f"blk{b}_g1"],
                                                     params[f"blk{b}_b1"], cp1)
        pp[f"blk{b}_w2"], cp2 = prep_w(params[f"blk{b}_w2"], cp1)
        if b != n_blocks - 1:
            pp[f"blk{b}_g2"], pp[f"blk{b}_b2"] = prep_gb(params[f"blk{b}_g2"],
                                                         params[f"blk{b}_b2"], cp2)
        cin_pad = cp2
    return pp


# ----------------------------------------------------------------------------
# Conv layer glue: spatial padding + im2col (XLA glue, bf16), matmul / BN /
# epilogue in Pallas.  Inputs and outputs keep the padded channel count Cp;
# padded channels are exact zeros throughout, so BN stats (divided by the true
# M) and the residual path are unaffected.
# ----------------------------------------------------------------------------
def conv_layer(x_nhwc, w_pad, *, kh, kw, stride=1, pad=0, pad_mode="zero",
               gamma=None, beta=None, skip_nhwc=None,
               do_bn=False, do_relu=False, do_tanh=False,
               out_dtype=jnp.bfloat16, tm=256):
    N, H, W, cin_p = x_nhwc.shape
    Kp, Cp = w_pad.shape

    xb = x_nhwc.astype(jnp.bfloat16)                       # no-op for bf16 activations
    if pad > 0:
        mode = "reflect" if pad_mode == "reflect" else "constant"
        xb = jnp.pad(xb, ((0, 0), (pad, pad), (pad, pad), (0, 0)), mode=mode)
    Hp, Wp = xb.shape[1], xb.shape[2]
    Ho = (Hp - kh) // stride + 1
    Wo = (Wp - kw) // stride + 1
    M = N * Ho * Wo
    K = kh * kw * cin_p

    # im2col in bf16 (tap-major, channel-minor ordering; matches prep_w).
    cols = []
    for i in range(kh):
        for j in range(kw):
            cols.append(xb[:, i:i + stride * Ho:stride, j:j + stride * Wo:stride, :])
    patches = jnp.stack(cols, axis=3).reshape(M, K)

    tm_eff, Mp = _pick_tm(M, tm)
    if Mp > M or Kp > K:
        # Only the 7x7 stem (K=49*cin not on 128) or an awkward M hits this.
        patches = jnp.pad(patches, ((0, Mp - M), (0, Kp - K)))

    skip = None
    if skip_nhwc is not None:
        skip = skip_nhwc.astype(jnp.bfloat16).reshape(M, Cp)
        if Mp > M:
            skip = jnp.pad(skip, ((0, Mp - M), (0, 0)))

    if do_bn:
        y, s, s2 = matmul_with_stats(patches, w_pad, tm=tm_eff)
        # Training-mode BatchNorm: biased stats over the true M = N*Ho*Wo rows
        # (padded rows are exact zeros and do not perturb the partial sums).
        total = jnp.sum(s, axis=(0, 1))
        total2 = jnp.sum(s2, axis=(0, 1))
        mean = total / float(M)
        var = jnp.maximum(total2 / float(M) - mean * mean, 0.0)
        scale = gamma * jax.lax.rsqrt(var + EPS)            # [1, Cp]
        shift = beta - mean * scale                         # [1, Cp]
        out = bn_epilogue(y, scale, shift, skip, do_relu=do_relu,
                          do_tanh=do_tanh, out_dtype=out_dtype, tm=tm_eff)
    else:
        out = matmul_fused(patches, w_pad, skip, do_relu=do_relu,
                           do_tanh=do_tanh, out_dtype=out_dtype, tm=tm_eff)

    if Mp > M:
        out = out[:M]
    # Keep the padded channel count Cp between layers; slice once at the end.
    return out.reshape(N, Ho, Wo, Cp)


# ----------------------------------------------------------------------------
# ResnetFilter forward (stem + 2 downsamples + n_blocks ResnetBlocks + tanh)
# ----------------------------------------------------------------------------
def resnet_filter_forward(x_nchw, pp, *, ngf, n_blocks, use_tanh, tm=256):
    # Per-generation M-tile: v6e 512-1024, v5e/v7x 256-512 (default suits the
    # tiny test shapes; all tiles fit comfortably in VMEM).
    x = jnp.transpose(x_nchw, (0, 2, 3, 1))  # NCHW -> NHWC

    # stem: ReflectionPad2d(3) + Conv(k=7) + BN + ReLU
    x = conv_layer(x, pp["stem_w"], kh=7, kw=7, stride=1, pad=3,
                   pad_mode="reflect", gamma=pp["stem_g"], beta=pp["stem_b"],
                   do_bn=True, do_relu=True, tm=tm)
    # 2x downsampling: Conv(k=3, s=2, zero pad=1) + BN + ReLU
    for i in range(2):
        x = conv_layer(x, pp[f"down{i}_w"], kh=3, kw=3, stride=2, pad=1,
                       pad_mode="zero", gamma=pp[f"down{i}_g"],
                       beta=pp[f"down{i}_b"], do_bn=True, do_relu=True, tm=tm)
    # Resnet blocks (reflect padding, no dropout, no bias)
    dim = ngf * 4
    for b in range(n_blocks):
        last = (b == n_blocks - 1)
        h = conv_layer(x, pp[f"blk{b}_w1"], kh=3, kw=3, stride=1, pad=1,
                       pad_mode="reflect", gamma=pp[f"blk{b}_g1"],
                       beta=pp[f"blk{b}_b1"], do_bn=True, do_relu=True, tm=tm)
        if last:
            x = conv_layer(h, pp[f"blk{b}_w2"], kh=3, kw=3, stride=1, pad=1,
                           pad_mode="reflect", skip_nhwc=x, do_bn=False,
                           do_relu=False, do_tanh=use_tanh,
                           out_dtype=jnp.float32, tm=tm)
        else:
            x = conv_layer(h, pp[f"blk{b}_w2"], kh=3, kw=3, stride=1, pad=1,
                           pad_mode="reflect", skip_nhwc=x,
                           gamma=pp[f"blk{b}_g2"], beta=pp[f"blk{b}_b2"],
                           do_bn=True, do_relu=False, tm=tm)
    if n_blocks == 0:
        x = x.astype(jnp.float32)
        if use_tanh:
            x = jnp.tanh(x)
    # Single slice of the padded channels + layout transpose at the very end.
    x = x[..., :dim].astype(jnp.float32)
    return jnp.transpose(x, (0, 3, 1, 2))  # NHWC -> NCHW


# ----------------------------------------------------------------------------
# Pure-JAX reference (lax.conv, f32) for a correctness check
# ----------------------------------------------------------------------------
def ref_forward(x_nchw, params, *, n_blocks, use_tanh):
    def conv(x, w, stride, pad, mode):
        if pad:
            m = "reflect" if mode == "reflect" else "constant"
            x = jnp.pad(x, ((0, 0), (0, 0), (pad, pad), (pad, pad)), mode=m)
        return jax.lax.conv_general_dilated(x, w, (stride, stride), "VALID")

    def bn(x, g, b):
        m = x.mean(axis=(0, 2, 3), keepdims=True)
        v = jnp.square(x - m).mean(axis=(0, 2, 3), keepdims=True)
        return (x - m) * jax.lax.rsqrt(v + EPS) * g[None, :, None, None] + b[None, :, None, None]

    x = jax.nn.relu(bn(conv(x_nchw, params["stem_w"], 1, 3, "reflect"),
                       params["stem_g"], params["stem_b"]))
    for i in range(2):
        x = jax.nn.relu(bn(conv(x, params[f"down{i}_w"], 2, 1, "zero"),
                           params[f"down{i}_g"], params[f"down{i}_b"]))
    for b in range(n_blocks):
        last = (b == n_blocks - 1)
        h = jax.nn.relu(bn(conv(x, params[f"blk{b}_w1"], 1, 1, "reflect"),
                           params[f"blk{b}_g1"], params[f"blk{b}_b1"]))
        h = conv(h, params[f"blk{b}_w2"], 1, 1, "reflect")
        if not last:
            h = bn(h, params[f"blk{b}_g2"], params[f"blk{b}_b2"])
        x = x + h
    if use_tanh:
        x = jnp.tanh(x)
    return x


if __name__ == "__main__":
    # Small shapes consistent with the module: batch=2, input_nc=3, 16x16,
    # ngf=16 (scaled down from 64), n_blocks=2, opt.use_tanh=True.
    N, Cin, H, W = 2, 3, 16, 16
    ngf, n_blocks, use_tanh = 16, 2, True
    dim = ngf * 4  # channels inside the resnet blocks

    keys = iter(jax.random.split(jax.random.PRNGKey(0), 64))

    def wsample(shape, scale=0.05):
        return scale * jax.random.normal(next(keys), shape, dtype=jnp.float32)

    params = {}
    params["stem_w"] = wsample((ngf, Cin, 7, 7))
    params["stem_g"] = 1.0 + wsample((ngf,), 0.1)
    params["stem_b"] = wsample((ngf,), 0.1)
    for i in range(2):
        cin_, cout_ = ngf * (2 ** i), ngf * (2 ** (i + 1))
        params[f"down{i}_w"] = wsample((cout_, cin_, 3, 3))
        params[f"down{i}_g"] = 1.0 + wsample((cout_,), 0.1)
        params[f"down{i}_b"] = wsample((cout_,), 0.1)
    for b in range(n_blocks):
        params[f"blk{b}_w1"] = wsample((dim, dim, 3, 3))
        params[f"blk{b}_g1"] = 1.0 + wsample((dim,), 0.1)
        params[f"blk{b}_b1"] = wsample((dim,), 0.1)
        params[f"blk{b}_w2"] = wsample((dim, dim, 3, 3))
        if b != n_blocks - 1:  # last block's second conv has no norm layer
            params[f"blk{b}_g2"] = 1.0 + wsample((dim,), 0.1)
            params[f"blk{b}_b2"] = wsample((dim,), 0.1)

    x = jax.random.normal(next(keys), (N, Cin, H, W), dtype=jnp.float32)

    # One-time weight relayout / channel padding / bf16 cast (hoisted).
    pp = preprocess_params(params, n_blocks)

    fwd = jax.jit(functools.partial(resnet_filter_forward,
                                    ngf=ngf, n_blocks=n_blocks,
                                    use_tanh=use_tanh, tm=256))
    out = jax.block_until_ready(fwd(x, pp))

    assert out.shape == (N, dim, H // 4, W // 4), out.shape

    ref = ref_forward(x, params, n_blocks=n_blocks, use_tanh=use_tanh)
    err = float(jnp.max(jnp.abs(out - ref)))
    # bf16 MXU inputs + bf16 y / activation / skip intermediates across 7
    # stacked BN'd convs -> tolerance relaxed vs a pure-f32 pipeline.
    assert jnp.allclose(out, ref, atol=8e-2, rtol=8e-2), err

    print("KERNEL_OK")
</pallas_src>

<mosaic_0001>
module attributes {stable_mosaic.version = 11 : i64} {
  func.func @_mm_stats_kernel(%arg0: i32, %arg1: memref<256x256xbf16, #tpu.memory_space<vmem>>, %arg2: memref<256x128xbf16, #tpu.memory_space<vmem>>, %arg3: memref<256x128xbf16, #tpu.memory_space<vmem>>, %arg4: memref<1x1x128xf32, #tpu.memory_space<vmem>>, %arg5: memref<1x1x128xf32, #tpu.memory_space<vmem>>) attributes {dimension_semantics = [#tpu.dimension_semantics<parallel>], iteration_bounds = array<i64: 2>, scalar_prefetch = 0 : i64, scratch_operands = 0 : i64, tpu.core_type = #tpu.core_type<tc>, window_params = [{transform_indices = @transform_0, window_bounds = array<i64: 256, 256>}, {pipeline_mode = #tpu.pipeline_mode<synchronous>, transform_indices = @transform_1, window_bounds = array<i64: 256, 128>}, {transform_indices = @transform_2, window_bounds = array<i64: 256, 128>}, {transform_indices = @transform_3, window_bounds = array<i64: 1, 1, 128>}, {transform_indices = @transform_4, window_bounds = array<i64: 1, 1, 128>}]} {
    %c0 = arith.constant 0 : index
    %c0_0 = arith.constant 0 : index
    %0 = vector.load %arg1[%c0, %c0_0] : memref<256x256xbf16, #tpu.memory_space<vmem>>, vector<256x256xbf16>
    %c0_1 = arith.constant 0 : index
    %c0_2 = arith.constant 0 : index
    %1 = vector.load %arg2[%c0_1, %c0_2] : memref<256x128xbf16, #tpu.memory_space<vmem>>, vector<256x128xbf16>
    %cst = arith.constant dense<0.000000e+00> : vector<256x128xf32>
    %2 = tpu.matmul %0, %1, %cst {dimension_numbers = #tpu.dot_dimension_numbers<[1], [0], [0], [1], [0, 0, 1, 1], [], []>} : vector<256x256xbf16>, vector<256x128xbf16>, vector<256x128xf32> -> vector<256x128xf32>
    %cst_3 = arith.constant dense<0.000000e+00> : vector<128xf32>
    %3 = vector.multi_reduction <add>, %2, %cst_3 [0] : vector<256x128xf32> to vector<128xf32>
    %4 = vector.shape_cast %3 : vector<128xf32> to vector<1x128xf32>
    %5 = vector.shape_cast %4 : vector<1x128xf32> to vector<1x1x128xf32>
    %c0_4 = arith.constant 0 : index
    %c0_5 = arith.constant 0 : index
    %c0_6 = arith.constant 0 : index
    %6 = vector.load %arg4[%c0_4, %c0_5, %c0_6] : memref<1x1x128xf32, #tpu.memory_space<vmem>>, vector<1x1x128xf32>
    tpu.vector_store %arg4[%c0_4, %c0_5, %c0_6], %5 {strides = array<i32>} : memref<1x1x128xf32, #tpu.memory_space<vmem>>, vector<1x1x128xf32>,
    %7 = arith.mulf %2, %2 : vector<256x128xf32>
    %cst_7 = arith.constant dense<0.000000e+00> : vector<128xf32>
    %8 = vector.multi_reduction <add>, %7, %cst_7 [0] : vector<256x128xf32> to vector<128xf32>
    %9 = vector.shape_cast %8 : vector<128xf32> to vector<1x128xf32>
    %10 = vector.shape_cast %9 : vector<1x128xf32> to vector<1x1x128xf32>
    %c0_8 = arith.constant 0 : index
    %c0_9 = arith.constant 0 : index
    %c0_10 = arith.constant 0 : index
    %11 = vector.load %arg5[%c0_8, %c0_9, %c0_10] : memref<1x1x128xf32, #tpu.memory_space<vmem>>, vector<1x1x128xf32>
    tpu.vector_store %arg5[%c0_8, %c0_9, %c0_10], %10 {strides = array<i32>} : memref<1x1x128xf32, #tpu.memory_space<vmem>>, vector<1x1x128xf32>,
    %12 = arith.truncf %2 : vector<256x128xf32> to vector<256x128xbf16>
    %c0_11 = arith.constant 0 : index
    %c0_12 = arith.constant 0 : index
    %13 = vector.load %arg3[%c0_11, %c0_12] : memref<256x128xbf16, #tpu.memory_space<vmem>>, vector<256x128xbf16>
    tpu.vector_store %arg3[%c0_11, %c0_12], %12 {strides = array<i32>} : memref<256x128xbf16, #tpu.memory_space<vmem>>, vector<256x128xbf16>,
    return
  }
  func.func @transform_0(%arg0: i32) -> (i32, i32) {
    %c0_i32 = arith.constant 0 : i32
    %c0_i32_0 = arith.constant 0 : i32
    return %arg0, %c0_i32 : i32, i32
  }
  func.func @transform_1(%arg0: i32) -> (i32, i32) {
    %c0_i32 = arith.constant 0 : i32
    %c0_i32_0 = arith.constant 0 : i32
    %c0_i32_1 = arith.constant 0 : i32
    return %c0_i32, %c0_i32_0 : i32, i32
  }
  func.func @transform_2(%arg0: i32) -> (i32, i32) {
    %c0_i32 = arith.constant 0 : i32
    %c0_i32_0 = arith.constant 0 : i32
    return %arg0, %c0_i32 : i32, i32
  }
  func.func @transform_3(%arg0: i32) -> (i32, i32, i32) {
    %c0_i32 = arith.constant 0 : i32
    %c0_i32_0 = arith.constant 0 : i32
    %c0_i32_1 = arith.constant 0 : i32
    return %arg0, %c0_i32, %c0_i32_0 : i32, i32, i32
  }
  func.func @transform_4(%arg0: i32) -> (i32, i32, i32) {
    %c0_i32 = arith.constant 0 : i32
    %c0_i32_0 = arith.constant 0 : i32
    %c0_i32_1 = arith.constant 0 : i32
    return %arg0, %c0_i32, %c0_i32_0 : i32, i32, i32
  }
}

module attributes {stable_mosaic.version = 11 : i64} {
  func.func @kernel(%arg0: i32, %arg1: memref<256x128xbf16, #tpu.memory_space<vmem>>, %arg2: memref<1x128xf32, #tpu.memory_space<vmem>>, %arg3: memref<1x128xf32, #tpu.memory_space<vmem>>, %arg4: memref<256x128xbf16, #tpu.memory_space<vmem>>) attributes {dimension_semantics = [#tpu.dimension_semantics<parallel>], iteration_bounds = array<i64: 2>, scalar_prefetch = 0 : i64, scratch_operands = 0 : i64, tpu.core_type = #tpu.core_type<tc>, window_params = [{transform_indices = @transform_0, window_bounds = array<i64: 256, 128>}, {pipeline_mode = #tpu.pipeline_mode<synchronous>, transform_indices = @transform_1, window_bounds = array<i64: 1, 128>}, {pipeline_mode = #tpu.pipeline_mode<synchronous>, transform_indices = @transform_2, window_bounds = array<i64: 1, 128>}, {transform_indices = @transform_3, window_bounds = array<i64: 256, 128>}]} {
    %c0 = arith.constant 0 : index
    %c0_0 = arith.constant 0 : index
    %0 = vector.load %arg1[%c0, %c0_0] : memref<256x128xbf16, #tpu.memory_space<vmem>>, vector<256x128xbf16>
    %1 = arith.extf %0 : vector<256x128xbf16> to vector<256x128xf32>
    %c0_1 = arith.constant 0 : index
    %c0_2 = arith.constant 0 : index
    %2 = vector.load %arg2[%c0_1, %c0_2] : memref<1x128xf32, #tpu.memory_space<vmem>>, vector<1x128xf32>
    %3 = vector.broadcast %2 : vector<1x128xf32> to vector<256x128xf32>
    %4 = arith.mulf %1, %3 : vector<256x128xf32>
    %c0_3 = arith.constant 0 : index
    %c0_4 = arith.constant 0 : index
    %5 = vector.load %arg3[%c0_3, %c0_4] : memref<1x128xf32, #tpu.memory_space<vmem>>, vector<1x128xf32>
    %6 = vector.broadcast %5 : vector<1x128xf32> to vector<256x128xf32>
    %7 = arith.addf %4, %6 : vector<256x128xf32>
    %cst = arith.constant 0.000000e+00 : f32
    %8 = vector.broadcast %cst : f32 to vector<256x128xf32>
    %9 = arith.maximumf %7, %8 : vector<256x128xf32>
    %10 = arith.truncf %9 : vector<256x128xf32> to vector<256x128xbf16>
    %c0_5 = arith.constant 0 : index
    %c0_6 = arith.constant 0 : index
    %11 = vector.load %arg4[%c0_5, %c0_6] : memref<256x128xbf16, #tpu.memory_space<vmem>>, vector<256x128xbf16>
    tpu.vector_store %arg4[%c0_5, %c0_6], %10 {strides = array<i32>} : memref<256x128xbf16, #tpu.memory_space<vmem>>, vector<256x128xbf16>,
    return
  }
  func.func @transform_0(%arg0: i32) -> (i32, i32) {
    %c0_i32 = arith.constant 0 : i32
    %c0_i32_0 = arith.constant 0 : i32
    return %arg0, %c0_i32 : i32, i32
  }
  func.func @transform_1(%arg0: i32) -> (i32, i32) {
    %c0_i32 = arith.constant 0 : i32
    %c0_i32_0 = arith.constant 0 : i32
    %c0_i32_1 = arith.constant 0 : i32
    return %c0_i32, %c0_i32_0 : i32, i32
  }
  func.func @transform_2(%arg0: i32) -> (i32, i32) {
    %c0_i32 = arith.constant 0 : i32
    %c0_i32_0 = arith.constant 0 : i32
    %c0_i32_1 = arith.constant 0 : i32
    return %c0_i32, %c0_i32_0 : i32, i32
  }
  func.func @transform_3(%arg0: i32) -> (i32, i32) {
    %c0_i32 = arith.constant 0 : i32
    %c0_i32_0 = arith.constant 0 : i32
    return %arg0, %c0_i32 : i32, i32
  }
}

module attributes {stable_mosaic.version = 11 : i64} {
  func.func @_mm_stats_kernel(%arg0: i32, %arg1: memref<128x1152xbf16, #tpu.memory_space<vmem>>, %arg2: memref<1152x128xbf16, #tpu.memory_space<vmem>>, %arg3: memref<128x128xbf16, #tpu.memory_space<vmem>>, %arg4: memref<1x1x128xf32, #tpu.memory_space<vmem>>, %arg5: memref<1x1x128xf32, #tpu.memory_space<vmem>>) attributes {dimension_semantics = [#tpu.dimension_semantics<parallel>], iteration_bounds = array<i64: 1>, scalar_prefetch = 0 : i64, scratch_operands = 0 : i64, tpu.core_type = #tpu.core_type<tc>, window_params = [{transform_indices = @transform_0, window_bounds = array<i64: 128, 1152>}, {pipeline_mode = #tpu.pipeline_mode<synchronous>, transform_indices = @transform_1, window_bounds = array<i64: 1152, 128>}, {transform_indices = @transform_2, window_bounds = array<i64: 128, 128>}, {transform_indices = @transform_3, window_bounds = array<i64: 1, 1, 128>}, {transform_indices = @transform_4, window_bounds = array<i64: 1, 1, 128>}]} {
    %c0 = arith.constant 0 : index
    %c0_0 = arith.constant 0 : index
    %0 = vector.load %arg1[%c0, %c0_0] : memref<128x1152xbf16, #tpu.memory_space<vmem>>, vector<128x1152xbf16>
    %c0_1 = arith.constant 0 : index
    %c0_2 = arith.constant 0 : index
    %1 = vector.load %arg2[%c0_1, %c0_2] : memref<1152x128xbf16, #tpu.memory_space<vmem>>, vector<1152x128xbf16>
    %cst = arith.constant dense<0.000000e+00> : vector<128x128xf32>
    %2 = tpu.matmul %0, %1, %cst {dimension_numbers = #tpu.dot_dimension_numbers<[1], [0], [0], [1], [0, 0, 1, 1], [], []>} : vector<128x1152xbf16>, vector<1152x128xbf16>, vector<128x128xf32> -> vector<128x128xf32>
    %cst_3 = arith.constant dense<0.000000e+00> : vector<128xf32>
    %3 = vector.multi_reduction <add>, %2, %cst_3 [0] : vector<128x128xf32> to vector<128xf32>
    %4 = vector.shape_cast %3 : vector<128xf32> to vector<1x128xf32>
    %5 = vector.shape_cast %4 : vector<1x128xf32> to vector<1x1x128xf32>
    %c0_4 = arith.constant 0 : index
    %c0_5 = arith.constant 0 : index
    %c0_6 = arith.constant 0 : index
    %6 = vector.load %arg4[%c0_4, %c0_5, %c0_6] : memref<1x1x128xf32, #tpu.memory_space<vmem>>, vector<1x1x128xf32>
    tpu.vector_store %arg4[%c0_4, %c0_5, %c0_6], %5 {strides = array<i32>} : memref<1x1x128xf32, #tpu.memory_space<vmem>>, vector<1x1x128xf32>,
    %7 = arith.mulf %2, %2 : vector<128x128xf32>
    %cst_7 = arith.constant dense<0.000000e+00> : vector<128xf32>
    %8 = vector.multi_reduction <add>, %7, %cst_7 [0] : vector<128x128xf32> to vector<128xf32>
    %9 = vector.shape_cast %8 : vector<128xf32> to vector<1x128xf32>
    %10 = vector.shape_cast %9 : vector<1x128xf32> to vector<1x1x128xf32>
    %c0_8 = arith.constant 0 : index
    %c0_9 = arith.constant 0 : index
    %c0_10 = arith.constant 0 : index
    %11 = vector.load %arg5[%c0_8, %c0_9, %c0_10] : memref<1x1x128xf32, #tpu.memory_space<vmem>>, vector<1x1x128xf32>
    tpu.vector_store %arg5[%c0_8, %c0_9, %c0_10], %10 {strides = array<i32>} : memref<1x1x128xf32, #tpu.memory_space<vmem>>, vector<1x1x128xf32>,
    %12 = arith.truncf %2 : vector<128x128xf32> to vector<128x128xbf16>
    %c0_11 = arith.constant 0 : index
    %c0_12 = arith.constant 0 : index
    %13 = vector.load %arg3[%c0_11, %c0_12] : memref<128x128xbf16, #tpu.memory_space<vmem>>, vector<128x128xbf16>
    tpu.vector_store %arg3[%c0_11, %c0_12], %12 {strides = array<i32>} : memref<128x128xbf16, #tpu.memory_space<vmem>>, vector<128x128xbf16>,
    return
  }
  func.func @transform_0(%arg0: i32) -> (i32, i32) {
    %c0_i32 = arith.constant 0 : i32
    %c0_i32_0 = arith.constant 0 : i32
    return %arg0, %c0_i32 : i32, i32
  }
  func.func @transform_1(%arg0: i32) -> (i32, i32) {
    %c0_i32 = arith.constant 0 : i32
    %c0_i32_0 = arith.constant 0 : i32
    %c0_i32_1 = arith.constant 0 : i32
    return %c0_i32, %c0_i32_0 : i32, i32
  }
  func.func @transform_2(%arg0: i32) -> (i32, i32) {
    %c0_i32 = arith.constant 0 : i32
    %c0_i32_0 = arith.constant 0 : i32
    return %arg0, %c0_i32 : i32, i32
  }
  func.func @transform_3(%arg0: i32) -> (i32, i32, i32) {
    %c0_i32 = arith.constant 0 : i32
    %c0_i32_0 = arith.constant 0 : i32
    %c0_i32_1 = arith.constant 0 : i32
    return %arg0, %c0_i32, %c0_i32_0 : i32, i32, i32
  }
  func.func @transform_4(%arg0: i32) -> (i32, i32, i32) {
    %c0_i32 = arith.constant 0 : i32
    %c0_i32_0 = arith.constant 0 : i32
    %c0_i32_1 = arith.constant 0 : i32
    return %arg0, %c0_i32, %c0_i32_0 : i32, i32, i32
  }
}

module attributes {stable_mosaic.version = 11 : i64} {
  func.func @kernel(%arg0: i32, %arg1: memref<128x128xbf16, #tpu.memory_space<vmem>>, %arg2: memref<1x128xf32, #tpu.memory_space<vmem>>, %arg3: memref<1x128xf32, #tpu.memory_space<vmem>>, %arg4: memref<128x128xbf16, #tpu.memory_space<vmem>>) attributes {dimension_semantics = [#tpu.dimension_semantics<parallel>], iteration_bounds = array<i64: 1>, scalar_prefetch = 0 : i64, scratch_operands = 0 : i64, tpu.core_type = #tpu.core_type<tc>, window_params = [{transform_indices = @transform_0, window_bounds = array<i64: 128, 128>}, {pipeline_mode = #tpu.pipeline_mode<synchronous>, transform_indices = @transform_1, window_bounds = array<i64: 1, 128>}, {pipeline_mode = #tpu.pipeline_mode<synchronous>, transform_indices = @transform_2, window_bounds = array<i64: 1, 128>}, {transform_indices = @transform_3, window_bounds = array<i64: 128, 128>}]} {
    %c0 = arith.constant 0 : index
    %c0_0 = arith.constant 0 : index
    %0 = vector.load %arg1[%c0, %c0_0] : memref<128x128xbf16, #tpu.memory_space<vmem>>, vector<128x128xbf16>
    %1 = arith.extf %0 : vector<128x128xbf16> to vector<128x128xf32>
    %c0_1 = arith.constant 0 : index
    %c0_2 = arith.constant 0 : index
    %2 = vector.load %arg2[%c0_1, %c0_2] : memref<1x128xf32, #tpu.memory_space<vmem>>, vector<1x128xf32>
    %3 = vector.broadcast %2 : vector<1x128xf32> to vector<128x128xf32>
    %4 = arith.mulf %1, %3 : vector<128x128xf32>
    %c0_3 = arith.constant 0 : index
    %c0_4 = arith.constant 0 : index
    %5 = vector.load %arg3[%c0_3, %c0_4] : memref<1x128xf32, #tpu.memory_space<vmem>>, vector<1x128xf32>
    %6 = vector.broadcast %5 : vector<1x128xf32> to vector<128x128xf32>
    %7 = arith.addf %4, %6 : vector<128x128xf32>
    %cst = arith.constant 0.000000e+00 : f32
    %8 = vector.broadcast %cst : f32 to vector<128x128xf32>
    %9 = arith.maximumf %7, %8 : vector<128x128xf32>
    %10 = arith.truncf %9 : vector<128x128xf32> to vector<128x128xbf16>
    %c0_5 = arith.constant 0 : index
    %c0_6 = arith.constant 0 : index
    %11 = vector.load %arg4[%c0_5, %c0_6] : memref<128x128xbf16, #tpu.memory_space<vmem>>, vector<128x128xbf16>
    tpu.vector_store %arg4[%c0_5, %c0_6], %10 {strides = array<i32>} : memref<128x128xbf16, #tpu.memory_space<vmem>>, vector<128x128xbf16>,
    return
  }
  func.func @transform_0(%arg0: i32) -> (i32, i32) {
    %c0_i32 = arith.constant 0 : i32
    %c0_i32_0 = arith.constant 0 : i32
    return %arg0, %c0_i32 : i32, i32
  }
  func.func @transform_1(%arg0: i32) -> (i32, i32) {
    %c0_i32 = arith.constant 0 : i32
    %c0_i32_0 = arith.constant 0 : i32
    %c0_i32_1 = arith.constant 0 : i32
    return %c0_i32, %c0_i32_0 : i32, i32
  }
  func.func @transform_2(%arg0: i32) -> (i32, i32) {
    %c0_i32 = arith.constant 0 : i32
    %c0_i32_0 = arith.constant 0 : i32
    %c0_i32_1 = arith.constant 0 : i32
    return %c0_i32, %c0_i32_0 : i32, i32
  }
  func.func @transform_3(%arg0: i32) -> (i32, i32) {
    %c0_i32 = arith.constant 0 : i32
    %c0_i32_0 = arith.constant 0 : i32
    return %arg0, %c0_i32 : i32, i32
  }
}

module attributes {stable_mosaic.version = 11 : i64} {
  func.func @_mm_stats_kernel(%arg0: i32, %arg1: memref<32x1152xbf16, #tpu.memory_space<vmem>>, %arg2: memref<1152x128xbf16, #tpu.memory_space<vmem>>, %arg3: memref<32x128xbf16, #tpu.memory_space<vmem>>, %arg4: memref<1x1x128xf32, #tpu.memory_space<vmem>>, %arg5: memref<1x1x128xf32, #tpu.memory_space<vmem>>) attributes {dimension_semantics = [#tpu.dimension_semantics<parallel>], iteration_bounds = array<i64: 1>, scalar_prefetch = 0 : i64, scratch_operands = 0 : i64, tpu.core_type = #tpu.core_type<tc>, window_params = [{transform_indices = @transform_0, window_bounds = array<i64: 32, 1152>}, {pipeline_mode = #tpu.pipeline_mode<synchronous>, transform_indices = @transform_1, window_bounds = array<i64: 1152, 128>}, {transform_indices = @transform_2, window_bounds = array<i64: 32, 128>}, {transform_indices = @transform_3, window_bounds = array<i64: 1, 1, 128>}, {transform_indices = @transform_4, window_bounds = array<i64: 1, 1, 128>}]} {
    %c0 = arith.constant 0 : index
    %c0_0 = arith.constant 0 : index
    %0 = vector.load %arg1[%c0, %c0_0] : memref<32x1152xbf16, #tpu.memory_space<vmem>>, vector<32x1152xbf16>
    %c0_1 = arith.constant 0 : index
    %c0_2 = arith.constant 0 : index
    %1 = vector.load %arg2[%c0_1, %c0_2] : memref<1152x128xbf16, #tpu.memory_space<vmem>>, vector<1152x128xbf16>
    %cst = arith.constant dense<0.000000e+00> : vector<32x128xf32>
    %2 = tpu.matmul %0, %1, %cst {dimension_numbers = #tpu.dot_dimension_numbers<[1], [0], [0], [1], [0, 0, 1, 1], [], []>} : vector<32x1152xbf16>, vector<1152x128xbf16>, vector<32x128xf32> -> vector<32x128xf32>
    %cst_3 = arith.constant dense<0.000000e+00> : vector<128xf32>
    %3 = vector.multi_reduction <add>, %2, %cst_3 [0] : vector<32x128xf32> to vector<128xf32>
    %4 = vector.shape_cast %3 : vector<128xf32> to vector<1x128xf32>
    %5 = vector.shape_cast %4 : vector<1x128xf32> to vector<1x1x128xf32>
    %c0_4 = arith.constant 0 : index
    %c0_5 = arith.constant 0 : index
    %c0_6 = arith.constant 0 : index
    %6 = vector.load %arg4[%c0_4, %c0_5, %c0_6] : memref<1x1x128xf32, #tpu.memory_space<vmem>>, vector<1x1x128xf32>
    tpu.vector_store %arg4[%c0_4, %c0_5, %c0_6], %5 {strides = array<i32>} : memref<1x1x128xf32, #tpu.memory_space<vmem>>, vector<1x1x128xf32>,
    %7 = arith.mulf %2, %2 : vector<32x128xf32>
    %cst_7 = arith.constant dense<0.000000e+00> : vector<128xf32>
    %8 = vector.multi_reduction <add>, %7, %cst_7 [0] : vector<32x128xf32> to vector<128xf32>
    %9 = vector.shape_cast %8 : vector<128xf32> to vector<1x128xf32>
    %10 = vector.shape_cast %9 : vector<1x128xf32> to vector<1x1x128xf32>
    %c0_8 = arith.constant 0 : index
    %c0_9 = arith.constant 0 : index
    %c0_10 = arith.constant 0 : index
    %11 = vector.load %arg5[%c0_8, %c0_9, %c0_10] : memref<1x1x128xf32, #tpu.memory_space<vmem>>, vector<1x1x128xf32>
    tpu.vector_store %arg5[%c0_8, %c0_9, %c0_10], %10 {strides = array<i32>} : memref<1x1x128xf32, #tpu.memory_space<vmem>>, vector<1x1x128xf32>,
    %12 = arith.truncf %2 : vector<32x128xf32> to vector<32x128xbf16>
    %c0_11 = arith.constant 0 : index
    %c0_12 = arith.constant 0 : index
    %13 = vector.load %arg3[%c0_11, %c0_12] : memref<32x128xbf16, #tpu.memory_space<vmem>>, vector<32x128xbf16>
    tpu.vector_store %arg3[%c0_11, %c0_12], %12 {strides = array<i32>} : memref<32x128xbf16, #tpu.memory_space<vmem>>, vector<32x128xbf16>,
    return
  }
  func.func @transform_0(%arg0: i32) -> (i32, i32) {
    %c0_i32 = arith.constant 0 : i32
    %c0_i32_0 = arith.constant 0 : i32
    return %arg0, %c0_i32 : i32, i32
  }
  func.func @transform_1(%arg0: i32) -> (i32, i32) {
    %c0_i32 = arith.constant 0 : i32
    %c0_i32_0 = arith.constant 0 : i32
    %c0_i32_1 = arith.constant 0 : i32
    return %c0_i32, %c0_i32_0 : i32, i32
  }
  func.func @transform_2(%arg0: i32) -> (i32, i32) {
    %c0_i32 = arith.constant 0 : i32
    %c0_i32_0 = arith.constant 0 : i32
    return %arg0, %c0_i32 : i32, i32
  }
  func.func @transform_3(%arg0: i32) -> (i32, i32, i32) {
    %c0_i32 = arith.constant 0 : i32
    %c0_i32_0 = arith.constant 0 : i32
    %c0_i32_1 = arith.constant 0 : i32
    return %arg0, %c0_i32, %c0_i32_0 : i32, i32, i32
  }
  func.func @transform_4(%arg0: i32) -> (i32, i32, i32) {
    %c0_i32 = arith.constant 0 : i32
    %c0_i32_0 = arith.constant 0 : i32
    %c0_i32_1 = arith.constant 0 : i32
    return %arg0, %c0_i32, %c0_i32_0 : i32, i32, i32
  }
}

module attributes {stable_mosaic.version = 11 : i64} {
  func.func @kernel(%arg0: i32, %arg1: memref<32x128xbf16, #tpu.memory_space<vmem>>, %arg2: memref<1x128xf32, #tpu.memory_space<vmem>>, %arg3: memref<1x128xf32, #tpu.memory_space<vmem>>, %arg4: memref<32x128xbf16, #tpu.memory_space<vmem>>) attributes {dimension_semantics = [#tpu.dimension_semantics<parallel>], iteration_bounds = array<i64: 1>, scalar_prefetch = 0 : i64, scratch_operands = 0 : i64, tpu.core_type = #tpu.core_type<tc>, window_params = [{transform_indices = @transform_0, window_bounds = array<i64: 32, 128>}, {pipeline_mode = #tpu.pipeline_mode<synchronous>, transform_indices = @transform_1, window_bounds = array<i64: 1, 128>}, {pipeline_mode = #tpu.pipeline_mode<synchronous>, transform_indices = @transform_2, window_bounds = array<i64: 1, 128>}, {transform_indices = @transform_3, window_bounds = array<i64: 32, 128>}]} {
    %c0 = arith.constant 0 : index
    %c0_0 = arith.constant 0 : index
    %0 = vector.load %arg1[%c0, %c0_0] : memref<32x128xbf16, #tpu.memory_space<vmem>>, vector<32x128xbf16>
    %1 = arith.extf %0 : vector<32x128xbf16> to vector<32x128xf32>
    %c0_1 = arith.constant 0 : index
    %c0_2 = arith.constant 0 : index
    %2 = vector.load %arg2[%c0_1, %c0_2] : memref<1x128xf32, #tpu.memory_space<vmem>>, vector<1x128xf32>
    %3 = vector.broadcast %2 : vector<1x128xf32> to vector<32x128xf32>
    %4 = arith.mulf %1, %3 : vector<32x128xf32>
    %c0_3 = arith.constant 0 : index
    %c0_4 = arith.constant 0 : index
    %5 = vector.load %arg3[%c0_3, %c0_4] : memref<1x128xf32, #tpu.memory_space<vmem>>, vector<1x128xf32>
    %6 = vector.broadcast %5 : vector<1x128xf32> to vector<32x128xf32>
    %7 = arith.addf %4, %6 : vector<32x128xf32>
    %cst = arith.constant 0.000000e+00 : f32
    %8 = vector.broadcast %cst : f32 to vector<32x128xf32>
    %9 = arith.maximumf %7, %8 : vector<32x128xf32>
    %10 = arith.truncf %9 : vector<32x128xf32> to vector<32x128xbf16>
    %c0_5 = arith.constant 0 : index
    %c0_6 = arith.constant 0 : index
    %11 = vector.load %arg4[%c0_5, %c0_6] : memref<32x128xbf16, #tpu.memory_space<vmem>>, vector<32x128xbf16>
    tpu.vector_store %arg4[%c0_5, %c0_6], %10 {strides = array<i32>} : memref<32x128xbf16, #tpu.memory_space<vmem>>, vector<32x128xbf16>,
    return
  }
  func.func @transform_0(%arg0: i32) -> (i32, i32) {
    %c0_i32 = arith.constant 0 : i32
    %c0_i32_0 = arith.constant 0 : i32
    return %arg0, %c0_i32 : i32, i32
  }
  func.func @transform_1(%arg0: i32) -> (i32, i32) {
    %c0_i32 = arith.constant 0 : i32
    %c0_i32_0 = arith.constant 0 : i32
    %c0_i32_1 = arith.constant 0 : i32
    return %c0_i32, %c0_i32_0 : i32, i32
  }
  func.func @transform_2(%arg0: i32) -> (i32, i32) {
    %c0_i32 = arith.constant 0 : i32
    %c0_i32_0 = arith.constant 0 : i32
    %c0_i32_1 = arith.constant 0 : i32
    return %c0_i32, %c0_i32_0 : i32, i32
  }
  func.func @transform_3(%arg0: i32) -> (i32, i32) {
    %c0_i32 = arith.constant 0 : i32
    %c0_i32_0 = arith.constant 0 : i32
    return %arg0, %c0_i32 : i32, i32
  }
}

module attributes {stable_mosaic.version = 11 : i64} {
  func.func @kernel(%arg0: i32, %arg1: memref<32x128xbf16, #tpu.memory_space<vmem>>, %arg2: memref<1x128xf32, #tpu.memory_space<vmem>>, %arg3: memref<1x128xf32, #tpu.memory_space<vmem>>, %arg4: memref<32x128xbf16, #tpu.memory_space<vmem>>, %arg5: memref<32x128xbf16, #tpu.memory_space<vmem>>) attributes {dimension_semantics = [#tpu.dimension_semantics<parallel>], iteration_bounds = array<i64: 1>, scalar_prefetch = 0 : i64, scratch_operands = 0 : i64, tpu.core_type = #tpu.core_type<tc>, window_params = [{transform_indices = @transform_0, window_bounds = array<i64: 32, 128>}, {pipeline_mode = #tpu.pipeline_mode<synchronous>, transform_indices = @transform_1, window_bounds = array<i64: 1, 128>}, {pipeline_mode = #tpu.pipeline_mode<synchronous>, transform_indices = @transform_2, window_bounds = array<i64: 1, 128>}, {transform_indices = @transform_3, window_bounds = array<i64: 32, 128>}, {transform_indices = @transform_4, window_bounds = array<i64: 32, 128>}]} {
    %c0 = arith.constant 0 : index
    %c0_0 = arith.constant 0 : index
    %0 = vector.load %arg1[%c0, %c0_0] : memref<32x128xbf16, #tpu.memory_space<vmem>>, vector<32x128xbf16>
    %1 = arith.extf %0 : vector<32x128xbf16> to vector<32x128xf32>
    %c0_1 = arith.constant 0 : index
    %c0_2 = arith.constant 0 : index
    %2 = vector.load %arg2[%c0_1, %c0_2] : memref<1x128xf32, #tpu.memory_space<vmem>>, vector<1x128xf32>
    %3 = vector.broadcast %2 : vector<1x128xf32> to vector<32x128xf32>
    %4 = arith.mulf %1, %3 : vector<32x128xf32>
    %c0_3 = arith.constant 0 : index
    %c0_4 = arith.constant 0 : index
    %5 = vector.load %arg3[%c0_3, %c0_4] : memref<1x128xf32, #tpu.memory_space<vmem>>, vector<1x128xf32>
    %6 = vector.broadcast %5 : vector<1x128xf32> to vector<32x128xf32>
    %7 = arith.addf %4, %6 : vector<32x128xf32>
    %c0_5 = arith.constant 0 : index
    %c0_6 = arith.constant 0 : index
    %8 = vector.load %arg4[%c0_5, %c0_6] : memref<32x128xbf16, #tpu.memory_space<vmem>>, vector<32x128xbf16>
    %9 = arith.extf %8 : vector<32x128xbf16> to vector<32x128xf32>
    %10 = arith.addf %7, %9 : vector<32x128xf32>
    %11 = arith.truncf %10 : vector<32x128xf32> to vector<32x128xbf16>
    %c0_7 = arith.constant 0 : index
    %c0_8 = arith.constant 0 : index
    %12 = vector.load %arg5[%c0_7, %c0_8] : memref<32x128xbf16, #tpu.memory_space<vmem>>, vector<32x128xbf16>
    tpu.vector_store %arg5[%c0_7, %c0_8], %11 {strides = array<i32>} : memref<32x128xbf16, #tpu.memory_space<vmem>>, vector<32x128xbf16>,
    return
  }
  func.func @transform_0(%arg0: i32) -> (i32, i32) {
    %c0_i32 = arith.constant 0 : i32
    %c0_i32_0 = arith.constant 0 : i32
    return %arg0, %c0_i32 : i32, i32
  }
  func.func @transform_1(%arg0: i32) -> (i32, i32) {
    %c0_i32 = arith.constant 0 : i32
    %c0_i32_0 = arith.constant 0 : i32
    %c0_i32_1 = arith.constant 0 : i32
    return %c0_i32, %c0_i32_0 : i32, i32
  }
  func.func @transform_2(%arg0: i32) -> (i32, i32) {
    %c0_i32 = arith.constant 0 : i32
    %c0_i32_0 = arith.constant 0 : i32
    %c0_i32_1 = arith.constant 0 : i32
    return %c0_i32, %c0_i32_0 : i32, i32
  }
  func.func @transform_3(%arg0: i32) -> (i32, i32) {
    %c0_i32 = arith.constant 0 : i32
    %c0_i32_0 = arith.constant 0 : i32
    return %arg0, %c0_i32 : i32, i32
  }
  func.func @transform_4(%arg0: i32) -> (i32, i32) {
    %c0_i32 = arith.constant 0 : i32
    %c0_i32_0 = arith.constant 0 : i32
    return %arg0, %c0_i32 : i32, i32
  }
}

module attributes {stable_mosaic.version = 11 : i64} {
  func.func @kernel(%arg0: i32, %arg1: memref<32x1152xbf16, #tpu.memory_space<vmem>>, %arg2: memref<1152x128xbf16, #tpu.memory_space<vmem>>, %arg3: memref<32x128xbf16, #tpu.memory_space<vmem>>, %arg4: memref<32x128xf32, #tpu.memory_space<vmem>>) attributes {dimension_semantics = [#tpu.dimension_semantics<parallel>], iteration_bounds = array<i64: 1>, scalar_prefetch = 0 : i64, scratch_operands = 0 : i64, tpu.core_type = #tpu.core_type<tc>, window_params = [{transform_indices = @transform_0, window_bounds = array<i64: 32, 1152>}, {pipeline_mode = #tpu.pipeline_mode<synchronous>, transform_indices = @transform_1, window_bounds = array<i64: 1152, 128>}, {transform_indices = @transform_2, window_bounds = array<i64: 32, 128>}, {transform_indices = @transform_3, window_bounds = array<i64: 32, 128>}]} {
    %c0 = arith.constant 0 : index
    %c0_0 = arith.constant 0 : index
    %0 = vector.load %arg1[%c0, %c0_0] : memref<32x1152xbf16, #tpu.memory_space<vmem>>, vector<32x1152xbf16>
    %c0_1 = arith.constant 0 : index
    %c0_2 = arith.constant 0 : index
    %1 = vector.load %arg2[%c0_1, %c0_2] : memref<1152x128xbf16, #tpu.memory_space<vmem>>, vector<1152x128xbf16>
    %cst = arith.constant dense<0.000000e+00> : vector<32x128xf32>
    %2 = tpu.matmul %0, %1, %cst {dimension_numbers = #tpu.dot_dimension_numbers<[1], [0], [0], [1], [0, 0, 1, 1], [], []>} : vector<32x1152xbf16>, vector<1152x128xbf16>, vector<32x128xf32> -> vector<32x128xf32>
    %c0_3 = arith.constant 0 : index
    %c0_4 = arith.constant 0 : index
    %3 = vector.load %arg3[%c0_3, %c0_4] : memref<32x128xbf16, #tpu.memory_space<vmem>>, vector<32x128xbf16>
    %4 = arith.extf %3 : vector<32x128xbf16> to vector<32x128xf32>
    %5 = arith.addf %2, %4 : vector<32x128xf32>
    %6 = math.tanh %5 : vector<32x128xf32>
    %c0_5 = arith.constant 0 : index
    %c0_6 = arith.constant 0 : index
    %7 = vector.load %arg4[%c0_5, %c0_6] : memref<32x128xf32, #tpu.memory_space<vmem>>, vector<32x128xf32>
    tpu.vector_store %arg4[%c0_5, %c0_6], %6 {strides = array<i32>} : memref<32x128xf32, #tpu.memory_space<vmem>>, vector<32x128xf32>,
    return
  }
  func.func @transform_0(%arg0: i32) -> (i32, i32) {
    %c0_i32 = arith.constant 0 : i32
    %c0_i32_0 = arith.constant 0 : i32
    return %arg0, %c0_i32 : i32, i32
  }
  func.func @transform_1(%arg0: i32) -> (i32, i32) {
    %c0_i32 = arith.constant 0 : i32
    %c0_i32_0 = arith.constant 0 : i32
    %c0_i32_1 = arith.constant 0 : i32
    return %c0_i32, %c0_i32_0 : i32, i32
  }
  func.func @transform_2(%arg0: i32) -> (i32, i32) {
    %c0_i32 = arith.constant 0 : i32
    %c0_i32_0 = arith.constant 0 : i32
    return %arg0, %c0_i32 : i32, i32
  }
  func.func @transform_3(%arg0: i32) -> (i32, i32) {
    %c0_i32 = arith.constant 0 : i32
    %c0_i32_0 = arith.constant 0 : i32
    return %arg0, %c0_i32 : i32, i32
  }
}

</mosaic_0001>

<bundles_post_ra>
// kernel: resnet_filter_forward.14
= control target key start
LH: loop header
LB: loop body
LE: loop exit
PB: predicated region body
PF: predicated region fallthrough
CT: control target
= control target key end

     0   :  { %s851_s12 = smov 0   ;;  %s985_s0 = inlined_call_operand.vmem [shape: bf16[512,128], index: 0, kind: input, shape index: {}]   ;;  %s986_s1 = inlined_call_operand.vmem [shape: f32[1,128], index: 1, kind: input, shape index: {}]   ;;  %s987_s2 = inlined_call_operand.vmem [shape: f32[1,128], index: 2, kind: input, shape index: {}]   ;;  %s988_s3 = inlined_call_operand.vmem [shape: bf16[512,128], index: 3, kind: output, shape index: {}]  }
   0x1 LB: > { %s564_s13 = sadd.s32 4294967295, %s829_s12   ;;  %p568_p0 = scmp.ge.s32.totalorder %s829_s12, 1  ;;  %s829_s12 = sphi %s851_s12, %s13_s12  }
   0x2   : > { %p138_p1 = scmp.lt.s32.totalorder %s829_s12, 3 }
   0x4   : > { %p139_p2 = pnand %p568_p0, %p138_p1 }
   0x5   : > { %s569_s14 = sshll.u32 (!%p139_p2), %s564_s13, 5 }
   0x6   : > { %142 = sbr.rel (%p139_p2) target bundleno = 57 (0x39), region = 32  ;;  %p163_p3 = scmp.lt.s32.totalorder (!%p139_p2), %s569_s14, 63 }
   0xb   : > { %s990_s14 = smov (!%p163_p3, %s569_s14), 63  ;;  %v872_v0 = vld [vmem:[%s986_s1] ss:$0 sm:$0xff] }
   0xc   : > { %s570_s15 = sshll.u32 %s990_s14, 2  ;;  %v881_v9 = vld [vmem:[%s987_s2] ss:$0 sm:$0xff] }
   0xd   : > { %s867_s18 = scalar_lea.vmem %s985_s0, %s570_s15  ;;  %s906_s25 = scalar_lea.vmem %s988_s3, %s570_s15 }
   0xe   : > { %v642_v1 = vld [vmem:[%s867_s18] sm:$0xff]   ;;  %v785_v2 = vld [vmem:[%s867_s18 + $0x8] sm:$0xff]   ;;  %v786_v3 = vld [vmem:[%s867_s18 + $0x10] sm:$0xff]  }
   0xf   : > { %v643_v4 = vunpack.c.l.bf16 %v642_v1  ;;  %v644_v5 = vunpack.c.h.bf16 %v642_v1  ;;  %v647_v6 = vunpack.c.l.bf16 %v785_v2  ;;  %v648_v7 = vunpack.c.h.bf16 %v785_v2  ;;  %v787_v8 = vld [vmem:[%s867_s18 + $0x18] sm:$0xff]   ;;  %v788_v30 = vld [vmem:[%s867_s18 + $0x20] sm:$0xff]   ;;  %v789_v35 = vld [vmem:[%s867_s18 + $0x28] sm:$0xff]  }
  0x10   : > { %v651_v10 = vunpack.c.l.bf16 %v786_v3  ;;  %v652_v11 = vunpack.c.h.bf16 %v786_v3  ;;  %v655_v12 = vunpack.c.l.bf16 %v787_v8  ;;  %v656_v13 = vunpack.c.h.bf16 %v787_v8  ;;  %v790_v40 = vld [vmem:[%s867_s18 + $0x30] sm:$0xff]   ;;  %v791_v45 = vld [vmem:[%s867_s18 + $0x38] sm:$0xff]   ;;  %v792_v3 = vld [vmem:[%s867_s18 + $0x40] sm:$0xff]  }
  0x11   : > { %v245_v14 = vmul.f32 %v643_v4, %v872_v0  ;;  %v246_v15 = vmul.f32 %v644_v5, %v872_v0  ;;  %v247_v16 = vmul.f32 %v647_v6, %v872_v0  ;;  %v248_v17 = vmul.f32 %v648_v7, %v872_v0 }
  0x12   : > { %v249_v18 = vmul.f32 %v651_v10, %v872_v0  ;;  %v250_v19 = vmul.f32 %v652_v11, %v872_v0  ;;  %v251_v20 = vmul.f32 %v655_v12, %v872_v0  ;;  %v252_v21 = vmul.f32 %v656_v13, %v872_v0  ;;  %v793_v13 = vld [vmem:[%s867_s18 + $0x48] sm:$0xff]  }
  0x13   : > { %v284_v22 = vadd.f32 %v881_v9, %v245_v14  ;;  %v285_v23 = vadd.f32 %v881_v9, %v246_v15  ;;  %v286_v24 = vadd.f32 %v881_v9, %v247_v16  ;;  %v287_v25 = vadd.f32 %v881_v9, %v248_v17 }
  0x14   : > { %v288_v26 = vadd.f32 %v881_v9, %v249_v18  ;;  %v289_v27 = vadd.f32 %v881_v9, %v250_v19  ;;  %v290_v28 = vadd.f32 %v881_v9, %v251_v20  ;;  %v291_v29 = vadd.f32 %v881_v9, %v252_v21  ;;  %v794_v18 = vld [vmem:[%s867_s18 + $0x50] sm:$0xff]  }
  0x15   : > { %v316_v31 = vmax.f32 %v284_v22, 0.0  ;;  %v317_v32 = vmax.f32 %v285_v23, 0.0  ;;  %v318_v33 = vmax.f32 %v286_v24, 0.0  ;;  %v319_v34 = vmax.f32 %v287_v25, 0.0  ;;  %v795_v23 = vld [vmem:[%s867_s18 + $0x58] sm:$0xff]  }
  0x16   : > { %v320_v36 = vmax.f32 %v288_v26, 0.0  ;;  %v321_v37 = vmax.f32 %v289_v27, 0.0  ;;  %v322_v38 = vmax.f32 %v290_v28, 0.0  ;;  %v323_v39 = vmax.f32 %v291_v29, 0.0 }
  0x17   : > { %v708_v41 = vpack.c.bf16 %v317_v32, %v316_v31  ;;  %v713_v42 = vpack.c.bf16 %v319_v34, %v318_v33  ;;  %v659_v43 = vunpack.c.l.bf16 %v788_v30  ;;  %v660_v44 = vunpack.c.h.bf16 %v788_v30 }
  0x18   : > { %v718_v46 = vpack.c.bf16 %v321_v37, %v320_v36  ;;  %v723_v47 = vpack.c.bf16 %v323_v39, %v322_v38  ;;  %v663_v48 = vunpack.c.l.bf16 %v789_v35  ;;  %v664_v49 = vunpack.c.h.bf16 %v789_v35 }
  0x19   : > { %709 = vst [vmem:[%s906_s25] sm:$0xff] %v708_v41   ;;  %800 = vst [vmem:[%s906_s25 + $0x8] sm:$0xff] %v713_v42   ;;  %v253_v50 = vmul.f32 %v659_v43, %v872_v0  ;;  %v254_v51 = vmul.f32 %v660_v44, %v872_v0  ;;  %v667_v52 = vunpack.c.l.bf16 %v790_v40  ;;  %v668_v53 = vunpack.c.h.bf16 %v790_v40  ;;  %v796_v40 = vld [vmem:[%s867_s18 + $0x60] sm:$0xff]  }
  0x1a   : > { %801 = vst [vmem:[%s906_s25 + $0x10] sm:$0xff] %v718_v46   ;;  %802 = vst [vmem:[%s906_s25 + $0x18] sm:$0xff] %v723_v47   ;;  %v255_v54 = vmul.f32 %v663_v48, %v872_v0  ;;  %v256_v55 = vmul.f32 %v664_v49, %v872_v0  ;;  %v671_v56 = vunpack.c.l.bf16 %v791_v45  ;;  %v672_v57 = vunpack.c.h.bf16 %v791_v45 }
  0x1b   : > { %v292_v58 = vadd.f32 %v881_v9, %v253_v50  ;;  %v293_v59 = vadd.f32 %v881_v9, %v254_v51  ;;  %v257_v60 = vmul.f32 %v667_v52, %v872_v0  ;;  %v258_v61 = vmul.f32 %v668_v53, %v872_v0  ;;  %v797_v53 = vld [vmem:[%s867_s18 + $0x68] sm:$0xff]  }
  0x1c   : > { %v294_v62 = vadd.f32 %v881_v9, %v255_v54  ;;  %v295_v63 = vadd.f32 %v881_v9, %v256_v55  ;;  %v259_v1 = vmul.f32 %v671_v56, %v872_v0  ;;  %v260_v2 = vmul.f32 %v672_v57, %v872_v0 }
  0x1d   : > { %v324_v4 = vmax.f32 %v292_v58, 0.0  ;;  %v325_v5 = vmax.f32 %v293_v59, 0.0  ;;  %v296_v6 = vadd.f32 %v881_v9, %v257_v60  ;;  %v297_v7 = vadd.f32 %v881_v9, %v258_v61  ;;  %v798_v58 = vld [vmem:[%s867_s18 + $0x70] sm:$0xff]  }
  0x1e   : > { %v326_v8 = vmax.f32 %v294_v62, 0.0  ;;  %v327_v10 = vmax.f32 %v295_v63, 0.0  ;;  %v298_v11 = vadd.f32 %v881_v9, %v259_v1  ;;  %v299_v12 = vadd.f32 %v881_v9, %v260_v2  ;;  %v799_v63 = vld [vmem:[%s867_s18 + $0x78] sm:$0xff]  }
  0x1f   : > { %v728_v14 = vpack.c.bf16 %v325_v5, %v324_v4  ;;  %v328_v15 = vmax.f32 %v296_v6, 0.0  ;;  %v329_v16 = vmax.f32 %v297_v7, 0.0  ;;  %v675_v17 = vunpack.c.l.bf16 %v792_v3 }
  0x20   : > { %v733_v19 = vpack.c.bf16 %v327_v10, %v326_v8  ;;  %v330_v20 = vmax.f32 %v298_v11, 0.0  ;;  %v331_v21 = vmax.f32 %v299_v12, 0.0  ;;  %v676_v22 = vunpack.c.h.bf16 %v792_v3 }
  0x21   : > { %803 = vst [vmem:[%s906_s25 + $0x20] sm:$0xff] %v728_v14   ;;  %v738_v24 = vpack.c.bf16 %v329_v16, %v328_v15  ;;  %v261_v25 = vmul.f32 %v675_v17, %v872_v0  ;;  %v679_v26 = vunpack.c.l.bf16 %v793_v13  ;;  %v680_v27 = vunpack.c.h.bf16 %v793_v13 }
  0x22   : > { %804 = vst [vmem:[%s906_s25 + $0x28] sm:$0xff] %v733_v19   ;;  %v743_v28 = vpack.c.bf16 %v331_v21, %v330_v20  ;;  %v262_v29 = vmul.f32 %v676_v22, %v872_v0  ;;  %v683_v30 = vunpack.c.l.bf16 %v794_v18  ;;  %v684_v31 = vunpack.c.h.bf16 %v794_v18 }
  0x23   : > { %805 = vst [vmem:[%s906_s25 + $0x30] sm:$0xff] %v738_v24   ;;  %v300_v32 = vadd.f32 %v881_v9, %v261_v25  ;;  %v263_v33 = vmul.f32 %v679_v26, %v872_v0  ;;  %v264_v34 = vmul.f32 %v680_v27, %v872_v0  ;;  %v687_v35 = vunpack.c.l.bf16 %v795_v23 }
  0x24   : > { %806 = vst [vmem:[%s906_s25 + $0x38] sm:$0xff] %v743_v28   ;;  %v301_v36 = vadd.f32 %v881_v9, %v262_v29  ;;  %v265_v37 = vmul.f32 %v683_v30, %v872_v0  ;;  %v266_v38 = vmul.f32 %v684_v31, %v872_v0  ;;  %v688_v39 = vunpack.c.h.bf16 %v795_v23 }
  0x25   : > { %v332_v41 = vmax.f32 %v300_v32, 0.0  ;;  %v302_v42 = vadd.f32 %v881_v9, %v263_v33  ;;  %v303_v43 = vadd.f32 %v881_v9, %v264_v34  ;;  %v267_v44 = vmul.f32 %v687_v35, %v872_v0 }
  0x26   : > { %v333_v45 = vmax.f32 %v301_v36, 0.0  ;;  %v304_v46 = vadd.f32 %v881_v9, %v265_v37  ;;  %v305_v47 = vadd.f32 %v881_v9, %v266_v38  ;;  %v268_v48 = vmul.f32 %v688_v39, %v872_v0 }
  0x27   : > { %v334_v49 = vmax.f32 %v302_v42, 0.0  ;;  %v335_v50 = vmax.f32 %v303_v43, 0.0  ;;  %v306_v51 = vadd.f32 %v881_v9, %v267_v44  ;;  %v691_v52 = vunpack.c.l.bf16 %v796_v40 }
  0x28   : > { %v748_v54 = vpack.c.bf16 %v333_v45, %v332_v41  ;;  %v336_v55 = vmax.f32 %v304_v46, 0.0  ;;  %v337_v56 = vmax.f32 %v305_v47, 0.0  ;;  %v307_v57 = vadd.f32 %v881_v9, %v268_v48 }
  0x29   : > { %v753_v59 = vpack.c.bf16 %v335_v50, %v334_v49  ;;  %v338_v60 = vmax.f32 %v306_v51, 0.0  ;;  %v692_v61 = vunpack.c.h.bf16 %v796_v40  ;;  %v269_v62 = vmul.f32 %v691_v52, %v872_v0 }
  0x2a   : > { %807 = vst [vmem:[%s906_s25 + $0x40] sm:$0xff] %v748_v54   ;;  %v758_v1 = vpack.c.bf16 %v337_v56, %v336_v55  ;;  %v339_v2 = vmax.f32 %v307_v57, 0.0  ;;  %v695_v3 = vunpack.c.l.bf16 %v797_v53  ;;  %v696_v4 = vunpack.c.h.bf16 %v797_v53 }
  0x2b   : > { %808 = vst [vmem:[%s906_s25 + $0x48] sm:$0xff] %v753_v59   ;;  %v270_v5 = vmul.f32 %v692_v61, %v872_v0  ;;  %v308_v6 = vadd.f32 %v881_v9, %v269_v62  ;;  %v699_v7 = vunpack.c.l.bf16 %v798_v58  ;;  %v700_v8 = vunpack.c.h.bf16 %v798_v58 }
  0x2c   : > { %809 = vst [vmem:[%s906_s25 + $0x50] sm:$0xff] %v758_v1   ;;  %v763_v10 = vpack.c.bf16 %v339_v2, %v338_v60  ;;  %v271_v11 = vmul.f32 %v695_v3, %v872_v0  ;;  %v272_v12 = vmul.f32 %v696_v4, %v872_v0  ;;  %v703_v13 = vunpack.c.l.bf16 %v799_v63 }
  0x2d   : > { %v309_v14 = vadd.f32 %v881_v9, %v270_v5  ;;  %v340_v15 = vmax.f32 %v308_v6, 0.0  ;;  %v273_v16 = vmul.f32 %v699_v7, %v872_v0  ;;  %v274_v17 = vmul.f32 %v700_v8, %v872_v0 }
  0x2e   : > { %810 = vst [vmem:[%s906_s25 + $0x58] sm:$0xff] %v763_v10   ;;  %v310_v18 = vadd.f32 %v881_v9, %v271_v11  ;;  %v311_v19 = vadd.f32 %v881_v9, %v272_v12  ;;  %v704_v20 = vunpack.c.h.bf16 %v799_v63  ;;  %v275_v21 = vmul.f32 %v703_v13, %v872_v0 }
  0x2f   : > { %v341_v22 = vmax.f32 %v309_v14, 0.0  ;;  %v312_v23 = vadd.f32 %v881_v9, %v273_v16  ;;  %v313_v24 = vadd.f32 %v881_v9, %v274_v17 }
  0x30   : > { %v342_v25 = vmax.f32 %v310_v18, 0.0  ;;  %v343_v26 = vmax.f32 %v311_v19, 0.0  ;;  %v276_v27 = vmul.f32 %v704_v20, %v872_v0  ;;  %v314_v28 = vadd.f32 %v881_v9, %v275_v21 }
  0x31   : > { %v768_v29 = vpack.c.bf16 %v341_v22, %v340_v15  ;;  %v344_v30 = vmax.f32 %v312_v23, 0.0  ;;  %v345_v31 = vmax.f32 %v313_v24, 0.0 }
  0x32   : > { %v773_v32 = vpack.c.bf16 %v343_v26, %v342_v25  ;;  %v315_v33 = vadd.f32 %v881_v9, %v276_v27  ;;  %v346_v34 = vmax.f32 %v314_v28, 0.0 }
  0x33   : > { %811 = vst [vmem:[%s906_s25 + $0x60] sm:$0xff] %v768_v29   ;;  %v778_v35 = vpack.c.bf16 %v345_v31, %v344_v30 }
  0x34   : > { %812 = vst [vmem:[%s906_s25 + $0x68] sm:$0xff] %v773_v32   ;;  %v347_v36 = vmax.f32 %v315_v33, 0.0 }
  0x35   : > { %813 = vst [vmem:[%s906_s25 + $0x70] sm:$0xff] %v778_v35  }
  0x36   : > { %v783_v37 = vpack.c.bf16 %v347_v36, %v346_v34 }
  0x38   : > { %814 = vst [vmem:[%s906_s25 + $0x78] sm:$0xff] %v783_v37  }
  0x39 PF: > { %s13_s12 = sadd.s32 1, %s829_s12  }
  0x3a   : > { %p10_p4 = scmp.ge.s32.totalorder %s13_s12, 4  }
  0x3c   :  { %12 = sbr.rel (!%p10_p4) target bundleno = 1 (0x1), region = 62 }

// kernel: resnet_filter_forward.13
= control target key start
LH: loop header
LB: loop body
LE: loop exit
PB: predicated region body
PF: predicated region fallthrough
CT: control target
= control target key end

     0   :  { %s1530_s15 = smov 0   ;;  %s1758_s0 = inlined_call_operand.vmem [shape: bf16[512,256], index: 0, kind: input, shape index: {}]   ;;  %s1759_s1 = inlined_call_operand.vmem [shape: bf16[256,128], index: 1, kind: input, shape index: {}]   ;;  %s1760_s2 = inlined_call_operand.vmem [shape: bf16[512,128], index: 2, kind: output, shape index: {0}]   ;;  %s1761_s3 = inlined_call_operand.vmem [shape: f32[2,1,128], index: 3, kind: output, shape index: {1}]   ;;  %s1762_s4 = inlined_call_operand.vmem [shape: f32[2,1,128], index: 4, kind: output, shape index: {2}]  }
   0x1 LB: > { %s1536_s16 = sadd.s32 4294967295, %s1503_s15   ;;  %p1081_p0 = scmp.ge.s32.totalorder %s1503_s15, 1  ;;  %s1503_s15 = sphi %s1530_s15, %s15_s15  }
   0x2   : > { %p169_p1 = scmp.lt.s32.totalorder %s1503_s15, 3 }
   0x4   : > { %p170_p2 = pnand %p1081_p0, %p169_p1 }
   0x5   : > { %s1082_s19 = sshll.u32 (!%p170_p2), %s1536_s16, 5  ;;  %p215_p4 = scmp.lt.s32.totalorder (!%p170_p2), %s1536_s16, 1 }
   0x6   : > { %173 = sbr.rel (%p170_p2) target bundleno = 350 (0x15e), region = 28  ;;  %p203_p3 = scmp.lt.s32.totalorder (!%p170_p2), %s1082_s19, 63 }
   0xb   : > { %v1433_v0 = vld [vmem:[%s1759_s1 + $0x78] sm:$0xff]   ;;  %v1435_v2 = vld [vmem:[%s1759_s1 + $0x70] sm:$0xff]   ;;  %v1437_v4 = vld [vmem:[%s1759_s1 + $0x68] sm:$0xff]   ;;  %s1764_s19 = smov (!%p203_p3, %s1082_s19), 63  ;;  %s1766_s16 = smov (!%p215_p4, %s1536_s16), 1 }
   0xc   : > { %v1434_v1 = vld [vmem:[%s1759_s1 + $0x38] sm:$0xff]   ;;  %1297 = vmatprep.subr.bf16.mxu0 %v1433_v0  ;;  %1409 = vmatprep.subr.bf16.mxu1 %v1433_v0  ;;  %v1436_v3 = vld [vmem:[%s1759_s1 + $0x30] sm:$0xff]   ;;  %v1438_v5 = vld [vmem:[%s1759_s1 + $0x28] sm:$0xff]   ;;  %s1169_s8 = sshll.u32 %s1764_s19, 3  ;;  %s1086_s5 = sshll.u32 %s1764_s19, 2 }
   0xd   : > { %1298 = vmatpush3.bf16.msra.mxu0 %v1434_v1  ;;  %1417 = vmatpush3.bf16.msra.mxu1 %v1434_v1  ;;  %v1439_v6 = vld [vmem:[%s1759_s1 + $0x60] sm:$0xff]   ;;  %v1441_v8 = vld [vmem:[%s1759_s1 + $0x58] sm:$0xff]   ;;  %s1574_s13 = scalar_lea.vmem %s1758_s0, %s1169_s8  ;;  %v1443_v10 = vld [vmem:[%s1759_s1 + $0x50] sm:$0xff]   ;;  %s1639_s8 = scalar_lea.vmem %s1760_s2, %s1086_s5 }
   0xe   : > { %1299 = vmatprep.subr.bf16.mxu0 %v1435_v2  ;;  %1410 = vmatprep.subr.bf16.mxu1 %v1435_v2  ;;  %v1440_v7 = vld [vmem:[%s1759_s1 + $0x20] sm:$0xff]   ;;  %v1442_v9 = vld [vmem:[%s1759_s1 + $0x18] sm:$0xff]   ;;  %v1444_v12 = vld [vmem:[%s1759_s1 + $0x10] sm:$0xff]   ;;  %s217_s10 = scalar_lea.vmem %s1761_s3, %s1766_s16 }
   0xf   : > { %v1451_v11 = vld [vmem:[%s1574_s13 + $0x4] ss:$8 sps:$4 sm:$0xff]   ;;  %v1449_v18 = vld [vmem:[%s1574_s13] ss:$8 sps:$4 sm:$0xff]   ;;  %v1452_v19 = vld [vmem:[%s1574_s13 + $0x14] ss:$8 sps:$4 sm:$0xff]  }
  0x10   : > { %574 = vmatprep.mubr.bf16.mxu0 %v1451_v11  ;;  %v1445_v13 = vld [vmem:[%s1759_s1 + $0x48] sm:$0xff]   ;;  %v1447_v16 = vld [vmem:[%s1759_s1 + $0x40] sm:$0xff]   ;;  %v1467_v21 = vld [vmem:[%s1574_s13 + $0x94] ss:$8 sps:$4 sm:$0xff]  }
  0x11   : > { %1300 = vmatpush3.bf16.msra.mxu0 %v1436_v3  ;;  %1418 = vmatpush3.bf16.msra.mxu1 %v1436_v3  ;;  %v1463_v14 = vld [vmem:[%s1574_s13 + $0x84] ss:$8 sps:$4 sm:$0xff]   ;;  %v1461_v20 = vld [vmem:[%s1574_s13 + $0x80] ss:$8 sps:$4 sm:$0xff]   ;;  %v1454_v22 = vld [vmem:[%s1574_s13 + $0x10] ss:$8 sps:$4 sm:$0xff]  }
  0x12   : > { %1301 = vmatprep.subr.bf16.mxu0 %v1437_v4  ;;  %1411 = vmatprep.subr.bf16.mxu1 %v1437_v4  ;;  %v1446_v15 = vld [vmem:[%s1759_s1 + $0x8] sm:$0xff]   ;;  %v1448_v17 = vld [vmem:[%s1759_s1] sm:$0xff]   ;;  %v1469_v24 = vld [vmem:[%s1574_s13 + $0x90] ss:$8 sps:$4 sm:$0xff]  }
  0x13   : > { %638 = vmatprep.mubr.bf16.mxu1 %v1463_v14  ;;  %v1455_v23 = vld [vmem:[%s1574_s13 + $0x24] ss:$8 sps:$4 sm:$0xff]   ;;  %v1457_v26 = vld [vmem:[%s1574_s13 + $0x20] ss:$8 sps:$4 sm:$0xff]   ;;  %v1458_v27 = vld [vmem:[%s1574_s13 + $0x34] ss:$8 sps:$4 sm:$0xff]  }
  0x14   : > { %v1473_v25 = vld [vmem:[%s1574_s13 + $0xa4] ss:$8 sps:$4 sm:$0xff]   ;;  %v1475_v28 = vld [vmem:[%s1574_s13 + $0xa0] ss:$8 sps:$4 sm:$0xff]   ;;  %v1479_v29 = vld [vmem:[%s1574_s13 + $0xb4] ss:$8 sps:$4 sm:$0xff]  }
  0x15   : > { %1302 = vmatpush3.bf16.msra.mxu0 %v1438_v5  ;;  %1419 = vmatpush3.bf16.msra.mxu1 %v1438_v5  ;;  %v1460_v30 = vld [vmem:[%s1574_s13 + $0x30] ss:$8 sps:$4 sm:$0xff]   ;;  %v1464_v31 = vld [vmem:[%s1574_s13 + $0x44] ss:$8 sps:$4 sm:$0xff]   ;;  %v1466_v34 = vld [vmem:[%s1574_s13 + $0x40] ss:$8 sps:$4 sm:$0xff]  }
  0x16   : > { %1303 = vmatprep.subr.bf16.mxu0 %v1439_v6  ;;  %1412 = vmatprep.subr.bf16.mxu1 %v1439_v6  ;;  %v1481_v32 = vld [vmem:[%s1574_s13 + $0xb0] ss:$8 sps:$4 sm:$0xff]   ;;  %v1485_v33 = vld [vmem:[%s1574_s13 + $0xc4] ss:$8 sps:$4 sm:$0xff]   ;;  %v1470_v35 = vld [vmem:[%s1574_s13 + $0x54] ss:$8 sps:$4 sm:$0xff]  }
  0x17   : > { %v1487_v36 = vld [vmem:[%s1574_s13 + $0xc0] ss:$8 sps:$4 sm:$0xff]   ;;  %v1488_v37 = vld [vmem:[%s1574_s13 + $0xd4] ss:$8 sps:$4 sm:$0xff]   ;;  %v1472_v38 = vld [vmem:[%s1574_s13 + $0x50] ss:$8 sps:$4 sm:$0xff]  }
  0x18   : > { %v1476_v39 = vld [vmem:[%s1574_s13 + $0x64] ss:$8 sps:$4 sm:$0xff]   ;;  %v1490_v40 = vld [vmem:[%s1574_s13 + $0xd0] ss:$8 sps:$4 sm:$0xff]   ;;  %v1478_v42 = vld [vmem:[%s1574_s13 + $0x60] ss:$8 sps:$4 sm:$0xff]  }
  0x19   : > { %1304 = vmatpush3.bf16.msra.mxu0 %v1440_v7  ;;  %1420 = vmatpush3.bf16.msra.mxu1 %v1440_v7  ;;  %v1491_v41 = vld [vmem:[%s1574_s13 + $0xe4] ss:$8 sps:$4 sm:$0xff]   ;;  %v1482_v43 = vld [vmem:[%s1574_s13 + $0x74] ss:$8 sps:$4 sm:$0xff]   ;;  %v1493_v44 = vld [vmem:[%s1574_s13 + $0xe0] ss:$8 sps:$4 sm:$0xff]  }
  0x1a   : > { %1305 = vmatprep.subr.bf16.mxu0 %v1441_v8  ;;  %1413 = vmatprep.subr.bf16.mxu1 %v1441_v8  ;;  %v1494_v45 = vld [vmem:[%s1574_s13 + $0xf4] ss:$8 sps:$4 sm:$0xff]   ;;  %v1484_v46 = vld [vmem:[%s1574_s13 + $0x70] ss:$8 sps:$4 sm:$0xff]  }
  0x1b   : > { %v1496_v47 = vld [vmem:[%s1574_s13 + $0xf0] ss:$8 sps:$4 sm:$0xff]   ;;  %s220_s13 = scalar_lea.vmem %s1762_s4, %s1766_s16 }
  0x1d   : > { %1306 = vmatpush3.bf16.msra.mxu0 %v1442_v9  ;;  %1421 = vmatpush3.bf16.msra.mxu1 %v1442_v9 }
  0x1e   : > { %1307 = vmatprep.subr.bf16.mxu0 %v1443_v10  ;;  %1414 = vmatprep.subr.bf16.mxu1 %v1443_v10 }
  0x21   : > { %1308 = vmatpush3.bf16.msra.mxu0 %v1444_v12  ;;  %1422 = vmatpush3.bf16.msra.mxu1 %v1444_v12 }
  0x22   : > { %1309 = vmatprep.subr.bf16.mxu0 %v1445_v13  ;;  %1415 = vmatprep.subr.bf16.mxu1 %v1445_v13 }
  0x25   : > { %1310 = vmatpush3.bf16.msra.mxu0 %v1446_v15  ;;  %1423 = vmatpush3.bf16.msra.mxu1 %v1446_v15 }
  0x26   : > { %1311 = vmatprep.subr.bf16.mxu0 %v1447_v16  ;;  %1416 = vmatprep.subr.bf16.mxu1 %v1447_v16 }
  0x29   : > { %1312 = vmatpush3.bf16.msra.mxu0 %v1448_v17  ;;  %1424 = vmatpush3.bf16.msra.mxu1 %v1448_v17 }
  0x2c   : > { %575 = vmatmul.mubr.bf16.vlgmr.msra.gmra.mxu0 %v1449_v18  ;;  %639 = vmatmul.mubr.bf16.vlgmr.msra.gmra.mxu1 %v1461_v20 }
  0x2d   : > { %582 = vmatprep.mubr.bf16.mxu0 %v1452_v19  ;;  %646 = vmatprep.mubr.bf16.mxu1 %v1467_v21 }
  0x34   : > { %583 = vmatmul.mubr.bf16.gmra.mxu0 %v1454_v22  ;;  %647 = vmatmul.mubr.bf16.gmra.mxu1 %v1469_v24 }
  0x35   : > { %590 = vmatprep.mubr.bf16.mxu0 %v1455_v23  ;;  %654 = vmatprep.mubr.bf16.mxu1 %v1473_v25 }
  0x3c   : > { %591 = vmatmul.mubr.bf16.gmra.mxu0 %v1457_v26  ;;  %655 = vmatmul.mubr.bf16.gmra.mxu1 %v1475_v28 }
  0x3d   : > { %598 = vmatprep.mubr.bf16.mxu0 %v1458_v27  ;;  %662 = vmatprep.mubr.bf16.mxu1 %v1479_v29 }
  0x44   : > { %599 = vmatmul.mubr.bf16.gmra.mxu0 %v1460_v30  ;;  %663 = vmatmul.mubr.bf16.gmra.mxu1 %v1481_v32 }
  0x45   : > { %606 = vmatprep.mubr.bf16.mxu0 %v1464_v31  ;;  %670 = vmatprep.mubr.bf16.mxu1 %v1485_v33 }
  0x4c   : > { %607 = vmatmul.mubr.bf16.gmra.mxu0 %v1466_v34  ;;  %671 = vmatmul.mubr.bf16.gmra.mxu1 %v1487_v36 }
  0x4d   : > { %614 = vmatprep.mubr.bf16.mxu0 %v1470_v35  ;;  %678 = vmatprep.mubr.bf16.mxu1 %v1488_v37 }
  0x54   : > { %615 = vmatmul.mubr.bf16.gmra.mxu0 %v1472_v38  ;;  %679 = vmatmul.mubr.bf16.gmra.mxu1 %v1490_v40 }
  0x55   : > { %622 = vmatprep.mubr.bf16.mxu0 %v1476_v39  ;;  %686 = vmatprep.mubr.bf16.mxu1 %v1491_v41 }
  0x5c   : > { %623 = vmatmul.mubr.bf16.gmra.mxu0 %v1478_v42  ;;  %687 = vmatmul.mubr.bf16.gmra.mxu1 %v1493_v44 }
  0x5d   : > { %630 = vmatprep.mubr.bf16.mxu0 %v1482_v43  ;;  %694 = vmatprep.mubr.bf16.mxu1 %v1494_v45 }
  0x64   : > { %631 = vmatmul.mubr.bf16.gmra.mxu0 %v1484_v46  ;;  %695 = vmatmul.mubr.bf16.gmra.mxu1 %v1496_v47 }
  0xec   : > { %v1313_v48 = vpop.f32.mrf.mxu0  ;;  %v1361_v49 = vpop.f32.mrf.mxu1 }
  0xee   : > { %v1314_v50 = vpop.f32.mrf.mxu0  ;;  %v1362_v51 = vpop.f32.mrf.mxu1 }
  0xef   : > { %v1630_v55 = vadd.f32 %v1362_v51, %v1361_v49  ;;  %v1632_v56 = vadd.f32 %v1314_v50, %v1313_v48 }
  0xf0   : > { %v1316_v52 = vpop.f32.mrf.mxu0  ;;  %v1364_v53 = vpop.f32.mrf.mxu1 }
  0xf1   : > { %v741_v45 = vmul.f32 %v1632_v56, %v1632_v56 }
  0xf2   : > { %v1317_v54 = vpop.f32.mrf.mxu0  ;;  %v1365_v58 = vpop.f32.mrf.mxu1 }
  0xf3   : > { %v1634_v57 = vadd.f32 %v1317_v54, %v1316_v52  ;;  %v1641_v60 = vadd.f32 %v1365_v58, %v1364_v53 }
  0xf4   : > { %v1319_v59 = vpop.f32.mrf.mxu0  ;;  %v1367_v62 = vpop.f32.mrf.mxu1 }
  0xf5   : > { %v1205_v61 = vpack.c.bf16 %v1634_v57, %v1632_v56  ;;  %v1245_v0 = vpack.c.bf16 %v1641_v60, %v1630_v55  ;;  %v742_v41 = vmul.f32 %v1634_v57, %v1634_v57  ;;  %v703_v48 = vadd.f32 %v1634_v57, %v1632_v56 }
  0xf6   : > { %v1320_v63 = vpop.f32.mrf.mxu0  ;;  %v1368_v1 = vpop.f32.mrf.mxu1 }
  0xf7   : > { %1206 = vst [vmem:[%s1639_s8] sm:$0xff] %v1205_v61   ;;  %1289 = vst [vmem:[%s1639_s8 + $0x40] sm:$0xff] %v1245_v0   ;;  %v1649_v5 = vadd.f32 %v1368_v1, %v1367_v62  ;;  %v1321_v6 = vadd.f32 %v1320_v63, %v1319_v59  ;;  %v773_v50 = vadd.f32 %v742_v41, %v741_v45 }
  0xf8   : > { %v1322_v2 = vpop.f32.mrf.mxu0  ;;  %v1370_v3 = vpop.f32.mrf.mxu1 }
  0xf9   : > { %v743_v46 = vmul.f32 %v1321_v6, %v1321_v6  ;;  %v704_v54 = vadd.f32 %v1321_v6, %v703_v48 }
  0xfa   : > { %v1323_v4 = vpop.f32.mrf.mxu0  ;;  %v1371_v8 = vpop.f32.mrf.mxu1 }
  0xfb   : > { %v1324_v7 = vadd.f32 %v1323_v4, %v1322_v2  ;;  %v1651_v10 = vadd.f32 %v1371_v8, %v1370_v3  ;;  %v774_v62 = vadd.f32 %v773_v50, %v743_v46 }
  0xfc   : > { %v1325_v9 = vpop.f32.mrf.mxu0  ;;  %v1373_v12 = vpop.f32.mrf.mxu1 }
  0xfd   : > { %v1210_v11 = vpack.c.bf16 %v1324_v7, %v1321_v6  ;;  %v1250_v14 = vpack.c.bf16 %v1651_v10, %v1649_v5  ;;  %v744_v51 = vmul.f32 %v1324_v7, %v1324_v7  ;;  %v705_v2 = vadd.f32 %v1324_v7, %v704_v54 }
  0xfe   : > { %v1326_v13 = vpop.f32.mrf.mxu0  ;;  %v1374_v15 = vpop.f32.mrf.mxu1 }
  0xff   : > { %1282 = vst [vmem:[%s1639_s8 + $0x8] sm:$0xff] %v1210_v11   ;;  %1290 = vst [vmem:[%s1639_s8 + $0x48] sm:$0xff] %v1250_v14   ;;  %v1657_v19 = vadd.f32 %v1374_v15, %v1373_v12  ;;  %v1327_v20 = vadd.f32 %v1326_v13, %v1325_v9  ;;  %v775_v57 = vadd.f32 %v774_v62, %v744_v51 }
 0x100   : > { %v1328_v16 = vpop.f32.mrf.mxu0  ;;  %v1376_v17 = vpop.f32.mrf.mxu1 }
 0x101   : > { %v745_v63 = vmul.f32 %v1327_v20, %v1327_v20  ;;  %v706_v6 = vadd.f32 %v1327_v20, %v705_v2 }
 0x102   : > { %v1329_v18 = vpop.f32.mrf.mxu0  ;;  %v1377_v22 = vpop.f32.mrf.mxu1 }
 0x103   : > { %v1330_v21 = vadd.f32 %v1329_v18, %v1328_v16  ;;  %v1659_v24 = vadd.f32 %v1377_v22, %v1376_v17  ;;  %v776_v12 = vadd.f32 %v775_v57, %v745_v63 }
 0x104   : > { %v1331_v23 = vpop.f32.mrf.mxu0  ;;  %v1379_v26 = vpop.f32.mrf.mxu1 }
 0x105   : > { %v1215_v25 = vpack.c.bf16 %v1330_v21, %v1327_v20  ;;  %v1255_v28 = vpack.c.bf16 %v1659_v24, %v1657_v19  ;;  %v746_v4 = vmul.f32 %v1330_v21, %v1330_v21  ;;  %v707_v14 = vadd.f32 %v1330_v21, %v706_v6 }
 0x106   : > { %v1332_v27 = vpop.f32.mrf.mxu0  ;;  %v1380_v29 = vpop.f32.mrf.mxu1 }
 0x107   : > { %1283 = vst [vmem:[%s1639_s8 + $0x10] sm:$0xff] %v1215_v25   ;;  %1291 = vst [vmem:[%s1639_s8 + $0x50] sm:$0xff] %v1255_v28   ;;  %v1665_v33 = vadd.f32 %v1380_v29, %v1379_v26  ;;  %v1333_v34 = vadd.f32 %v1332_v27, %v1331_v23  ;;  %v777_v17 = vadd.f32 %v776_v12, %v746_v4 }
 0x108   : > { %v1334_v30 = vpop.f32.mrf.mxu0  ;;  %v1382_v31 = vpop.f32.mrf.mxu1 }
 0x109   : > { %v747_v15 = vmul.f32 %v1333_v34, %v1333_v34  ;;  %v708_v22 = vadd.f32 %v1333_v34, %v707_v14 }
 0x10a   : > { %v1335_v32 = vpop.f32.mrf.mxu0  ;;  %v1383_v36 = vpop.f32.mrf.mxu1 }
 0x10b   : > { %v1336_v35 = vadd.f32 %v1335_v32, %v1334_v30  ;;  %v1667_v38 = vadd.f32 %v1383_v36, %v1382_v31  ;;  %v778_v29 = vadd.f32 %v777_v17, %v747_v15 }
 0x10c   : > { %v1337_v37 = vpop.f32.mrf.mxu0  ;;  %v1385_v40 = vpop.f32.mrf.mxu1 }
 0x10d   : > { %v1220_v39 = vpack.c.bf16 %v1336_v35, %v1333_v34  ;;  %v1260_v43 = vpack.c.bf16 %v1667_v38, %v1665_v33  ;;  %v748_v23 = vmul.f32 %v1336_v35, %v1336_v35  ;;  %v709_v30 = vadd.f32 %v1336_v35, %v708_v22 }
 0x10e   : > { %v1338_v42 = vpop.f32.mrf.mxu0  ;;  %v1386_v44 = vpop.f32.mrf.mxu1 }
 0x10f   : > { %1284 = vst [vmem:[%s1639_s8 + $0x18] sm:$0xff] %v1220_v39   ;;  %1292 = vst [vmem:[%s1639_s8 + $0x58] sm:$0xff] %v1260_v43   ;;  %v1679_v53 = vadd.f32 %v1386_v44, %v1385_v40  ;;  %v1339_v58 = vadd.f32 %v1338_v42, %v1337_v37  ;;  %v779_v39 = vadd.f32 %v778_v29, %v748_v23 }
 0x110   : > { %v1340_v47 = vpop.f32.mrf.mxu0  ;;  %v1388_v49 = vpop.f32.mrf.mxu1 }
 0x111   : > { %v749_v31 = vmul.f32 %v1339_v58, %v1339_v58  ;;  %v710_v34 = vadd.f32 %v1339_v58, %v709_v30 }
 0x112   : > { %v1341_v52 = vpop.f32.mrf.mxu0  ;;  %v1389_v61 = vpop.f32.mrf.mxu1 }
 0x113   : > { %v1342_v59 = vadd.f32 %v1341_v52, %v1340_v47  ;;  %v1681_v1 = vadd.f32 %v1389_v61, %v1388_v49  ;;  %v780_v43 = vadd.f32 %v779_v39, %v749_v31 }
 0x114   : > { %v1343_v0 = vpop.f32.mrf.mxu0  ;;  %v1391_v56 = vpop.f32.mrf.mxu1 }
 0x115   : > { %v1225_v3 = vpack.c.bf16 %v1342_v59, %v1339_v58  ;;  %v1265_v9 = vpack.c.bf16 %v1681_v1, %v1679_v53  ;;  %v750_v40 = vmul.f32 %v1342_v59, %v1342_v59  ;;  %v711_v44 = vadd.f32 %v1342_v59, %v710_v34 }
 0x116   : > { %v1344_v8 = vpop.f32.mrf.mxu0  ;;  %v1392_v11 = vpop.f32.mrf.mxu1 }
 0x117   : > { %1285 = vst [vmem:[%s1639_s8 + $0x20] sm:$0xff] %v1225_v3   ;;  %1293 = vst [vmem:[%s1639_s8 + $0x60] sm:$0xff] %v1265_v9   ;;  %v1687_v7 = vadd.f32 %v1392_v11, %v1391_v56  ;;  %v1345_v25 = vadd.f32 %v1344_v8, %v1343_v0  ;;  %v781_v49 = vadd.f32 %v780_v43, %v750_v40 }
 0x118   : > { %v1346_v13 = vpop.f32.mrf.mxu0  ;;  %v1394_v16 = vpop.f32.mrf.mxu1  ;;  %v759_v40 = vmul.f32 %v1649_v5, %v1649_v5  ;;  %v760_v43 = vmul.f32 %v1651_v10, %v1651_v10 }
 0x119   : > { %v751_v45 = vmul.f32 %v1345_v25, %v1345_v25  ;;  %v712_v50 = vadd.f32 %v1345_v25, %v711_v44 }
 0x11a   : > { %v1347_v18 = vpop.f32.mrf.mxu0  ;;  %v1395_v27 = vpop.f32.mrf.mxu1 }
 0x11b   : > { %v1348_v26 = vadd.f32 %v1347_v18, %v1346_v13  ;;  %v1689_v28 = vadd.f32 %v1395_v27, %v1394_v16  ;;  %v782_v62 = vadd.f32 %v781_v49, %v751_v45  ;;  %v761_v45 = vmul.f32 %v1657_v19, %v1657_v19 }
 0x11c   : > { %v1349_v20 = vpop.f32.mrf.mxu0  ;;  %v1397_v32 = vpop.f32.mrf.mxu1 }
 0x11d   : > { %v1230_v21 = vpack.c.bf16 %v1348_v26, %v1345_v25  ;;  %v1270_v37 = vpack.c.bf16 %v1689_v28, %v1687_v7  ;;  %v752_v51 = vmul.f32 %v1348_v26, %v1348_v26  ;;  %v713_v63 = vadd.f32 %v1348_v26, %v712_v50 }
 0x11e   : > { %v1350_v36 = vpop.f32.mrf.mxu0  ;;  %v1398_v41 = vpop.f32.mrf.mxu1 }
 0x11f   : > { %1286 = vst [vmem:[%s1639_s8 + $0x28] sm:$0xff] %v1230_v21   ;;  %1294 = vst [vmem:[%s1639_s8 + $0x68] sm:$0xff] %v1270_v37   ;;  %v1351_v46 = vadd.f32 %v1350_v36, %v1349_v20  ;;  %v1695_v48 = vadd.f32 %v1398_v41, %v1397_v32  ;;  %v783_v57 = vadd.f32 %v782_v62, %v752_v51 }
 0x120   : > { %v1352_v42 = vpop.f32.mrf.mxu0  ;;  %v1400_v47 = vpop.f32.mrf.mxu1  ;;  %v757_v21 = vmul.f32 %v1630_v55, %v1630_v55  ;;  %v758_v37 = vmul.f32 %v1641_v60, %v1641_v60 }
 0x121   : > { %v753_v0 = vmul.f32 %v1351_v46, %v1351_v46  ;;  %v714_v4 = vadd.f32 %v1351_v46, %v713_v63  ;;  %v766_v63 = vmul.f32 %v1681_v1, %v1681_v1 }
 0x122   : > { %v1353_v35 = vpop.f32.mrf.mxu0  ;;  %v1401_v54 = vpop.f32.mrf.mxu1 }
 0x123   : > { %v1354_v52 = vadd.f32 %v1353_v35, %v1352_v42  ;;  %v1697_v61 = vadd.f32 %v1401_v54, %v1400_v47  ;;  %v784_v12 = vadd.f32 %v783_v57, %v753_v0 }
 0x124   : > { %v1355_v58 = vpop.f32.mrf.mxu0  ;;  %v1403_v2 = vpop.f32.mrf.mxu1 }
 0x125   : > { %v1235_v59 = vpack.c.bf16 %v1354_v52, %v1351_v46  ;;  %v1275_v56 = vpack.c.bf16 %v1697_v61, %v1695_v48  ;;  %v754_v8 = vmul.f32 %v1354_v52, %v1354_v52  ;;  %v715_v13 = vadd.f32 %v1354_v52, %v714_v4 }
 0x126   : > { %v1356_v3 = vpop.f32.mrf.mxu0  ;;  %v1404_v6 = vpop.f32.mrf.mxu1 }
 0x127   : > { %1287 = vst [vmem:[%s1639_s8 + $0x30] sm:$0xff] %v1235_v59   ;;  %v1357_v9 = vadd.f32 %v1356_v3, %v1355_v58  ;;  %1295 = vst [vmem:[%s1639_s8 + $0x70] sm:$0xff] %v1275_v56   ;;  %v1405_v17 = vadd.f32 %v1404_v6, %v1403_v2  ;;  %v785_v18 = vadd.f32 %v784_v12, %v754_v8 }
 0x128   : > { %v1358_v11 = vpop.f32.mrf.mxu0  ;;  %v1406_v15 = vpop.f32.mrf.mxu1  ;;  %v767_v2 = vmul.f32 %v1687_v7, %v1687_v7 }
 0x129   : > { %v755_v14 = vmul.f32 %v1357_v9, %v1357_v9  ;;  %v716_v22 = vadd.f32 %v1357_v9, %v715_v13 }
 0x12a   : > { %v1359_v16 = vpop.f32.mrf.mxu0  ;;  %v1407_v25 = vpop.f32.mrf.mxu1 }
 0x12b   : > { %v1360_v23 = vadd.f32 %v1359_v16, %v1358_v11  ;;  %v1408_v26 = vadd.f32 %v1407_v25, %v1406_v15  ;;  %v786_v27 = vadd.f32 %v785_v18, %v755_v14  ;;  %v771_v11 = vmul.f32 %v1405_v17, %v1405_v17 }
 0x12d   : > { %v717_v20 = vadd.f32 %v1360_v23, %v716_v22  ;;  %v756_v29 = vmul.f32 %v1360_v23, %v1360_v23  ;;  %v1240_v30 = vpack.c.bf16 %v1360_v23, %v1357_v9  ;;  %v1280_v31 = vpack.c.bf16 %v1408_v26, %v1405_v17 }
 0x12e   : > { %v772_v14 = vmul.f32 %v1408_v26, %v1408_v26 }
 0x12f   : > { %v718_v32 = vadd.f32 %v1630_v55, %v717_v20  ;;  %v787_v36 = vadd.f32 %v786_v27, %v756_v29  ;;  %1288 = vst [vmem:[%s1639_s8 + $0x38] sm:$0xff] %v1240_v30   ;;  %1296 = vst [vmem:[%s1639_s8 + $0x78] sm:$0xff] %v1280_v31  }
 0x131   : > { %v719_v39 = vadd.f32 %v1641_v60, %v718_v32  ;;  %v788_v34 = vadd.f32 %v787_v36, %v757_v21  ;;  %v762_v60 = vmul.f32 %v1659_v24, %v1659_v24 }
 0x133   : > { %v720_v41 = vadd.f32 %v1649_v5, %v719_v39  ;;  %v789_v42 = vadd.f32 %v788_v34, %v758_v37  ;;  %v763_v5 = vmul.f32 %v1665_v33, %v1665_v33 }
 0x135   : > { %v721_v55 = vadd.f32 %v1651_v10, %v720_v41  ;;  %v790_v44 = vadd.f32 %v789_v42, %v759_v40  ;;  %v764_v10 = vmul.f32 %v1667_v38, %v1667_v38 }
 0x137   : > { %v791_v46 = vadd.f32 %v790_v44, %v760_v43  ;;  %v722_v47 = vadd.f32 %v1657_v19, %v721_v55  ;;  %v765_v19 = vmul.f32 %v1679_v53, %v1679_v53 }
 0x139   : > { %v723_v35 = vadd.f32 %v1659_v24, %v722_v47  ;;  %v792_v49 = vadd.f32 %v791_v46, %v761_v45 }
 0x13b   : > { %v724_v50 = vadd.f32 %v1665_v33, %v723_v35  ;;  %v793_v51 = vadd.f32 %v792_v49, %v762_v60 }
 0x13d   : > { %v725_v52 = vadd.f32 %v1667_v38, %v724_v50  ;;  %v794_v54 = vadd.f32 %v793_v51, %v763_v5 }
 0x13f   : > { %v726_v58 = vadd.f32 %v1679_v53, %v725_v52  ;;  %v795_v62 = vadd.f32 %v794_v54, %v764_v10  ;;  %v768_v53 = vmul.f32 %v1689_v28, %v1689_v28 }
 0x141   : > { %v727_v24 = vadd.f32 %v1681_v1, %v726_v58  ;;  %v796_v0 = vadd.f32 %v795_v62, %v765_v19  ;;  %v769_v1 = vmul.f32 %v1695_v48, %v1695_v48 }
 0x143   : > { %v797_v33 = vadd.f32 %v796_v0, %v766_v63  ;;  %v728_v59 = vadd.f32 %v1687_v7, %v727_v24  ;;  %v770_v7 = vmul.f32 %v1697_v61, %v1697_v61 }
 0x145   : > { %v798_v38 = vadd.f32 %v797_v33, %v767_v2  ;;  %v729_v3 = vadd.f32 %v1689_v28, %v728_v59 }
 0x147   : > { %v799_v56 = vadd.f32 %v798_v38, %v768_v53  ;;  %v730_v57 = vadd.f32 %v1695_v48, %v729_v3 }
 0x149   : > { %v800_v4 = vadd.f32 %v799_v56, %v769_v1  ;;  %v731_v8 = vadd.f32 %v1697_v61, %v730_v57 }
 0x14b   : > { %v801_v9 = vadd.f32 %v800_v4, %v770_v7  ;;  %v732_v6 = vadd.f32 %v1405_v17, %v731_v8 }
 0x14d   : > { %v802_v12 = vadd.f32 %v801_v9, %v771_v11  ;;  %v733_v13 = vadd.f32 %v1408_v26, %v732_v6 }
 0x14f   : > { %v734_v28 = vrot.slane %v733_v13, 4  ;;  %v803_v15 = vadd.f32 %v802_v12, %v772_v14 }
 0x151   : > { %v735_v16 = vadd.f32 %v734_v28, %v733_v13  ;;  %v804_v18 = vrot.slane %v803_v15, 4 }
 0x153   : > { %v736_v22 = vrot.slane %v735_v16, 2  ;;  %v805_v48 = vadd.f32 %v804_v18, %v803_v15 }
 0x155   : > { %v737_v23 = vadd.f32 %v736_v22, %v735_v16  ;;  %v806_v25 = vrot.slane %v805_v48, 2 }
 0x157   : > { %v738_v27 = vrot.slane %v737_v23, 1  ;;  %v807_v20 = vadd.f32 %v806_v25, %v805_v48 }
 0x159   : > { %v739_v61 = vadd.f32 %v738_v27, %v737_v23  ;;  %v808_v17 = vrot.slane %v807_v20, 1 }
 0x15b   : > { %740 = vst [vmem:[%s217_s10] sm:$0x1] %v739_v61  ;;  %v809_v26 = vadd.f32 %v808_v17, %v807_v20 }
 0x15d   : > { %810 = vst [vmem:[%s220_s13] sm:$0x1] %v809_v26 }
 0x15e PF: > { %s15_s15 = sadd.s32 1, %s1503_s15  }
 0x15f   : > { %p12_p5 = scmp.ge.s32.totalorder %s15_s15, 4  }
 0x161   :  { %14 = sbr.rel (!%p12_p5) target bundleno = 1 (0x1), region = 82 }

// kernel: resnet_filter_forward.16
= control target key start
LH: loop header
LB: loop body
LE: loop exit
PB: predicated region body
PF: predicated region fallthrough
CT: control target
= control target key end

     0   :  { %s422_s0 = inlined_call_operand.vmem [shape: bf16[128,128], index: 0, kind: input, shape index: {}]   ;;  %s423_s1 = inlined_call_operand.vmem [shape: f32[1,128], index: 1, kind: input, shape index: {}]   ;;  %s424_s2 = inlined_call_operand.vmem [shape: f32[1,128], index: 2, kind: input, shape index: {}]   ;;  %s425_s3 = inlined_call_operand.vmem [shape: bf16[128,128], index: 3, kind: output, shape index: {}]  }
   0x1   :  { %v227_v0 = vld [vmem:[%s422_s0] sm:$0xff]   ;;  %v298_v4 = vld [vmem:[%s422_s0 + $0x8] sm:$0xff]   ;;  %v299_v5 = vld [vmem:[%s422_s0 + $0x10] sm:$0xff]  }
   0x2   :  { %v338_v1 = vld [vmem:[%s423_s1] ss:$0 sm:$0xff]  ;;  %v228_v2 = vunpack.c.l.bf16 %v227_v0  ;;  %v229_v3 = vunpack.c.h.bf16 %v227_v0  ;;  %v300_v6 = vld [vmem:[%s422_s0 + $0x18] sm:$0xff]   ;;  %v232_v8 = vunpack.c.l.bf16 %v298_v4  ;;  %v233_v9 = vunpack.c.h.bf16 %v298_v4  ;;  %v302_v33 = vld [vmem:[%s422_s0 + $0x28] sm:$0xff]  }
   0x3   :  { %v352_v7 = vld [vmem:[%s424_s2] ss:$0 sm:$0xff]  ;;  %v236_v10 = vunpack.c.l.bf16 %v299_v5  ;;  %v237_v11 = vunpack.c.h.bf16 %v299_v5  ;;  %v240_v14 = vunpack.c.l.bf16 %v300_v6  ;;  %v241_v15 = vunpack.c.h.bf16 %v300_v6  ;;  %v303_v38 = vld [vmem:[%s422_s0 + $0x30] sm:$0xff]   ;;  %v304_v43 = vld [vmem:[%s422_s0 + $0x38] sm:$0xff]  }
   0x4   :  { %v53_v12 = vmul.f32 %v228_v2, %v338_v1  ;;  %v54_v13 = vmul.f32 %v229_v3, %v338_v1  ;;  %v55_v16 = vmul.f32 %v232_v8, %v338_v1  ;;  %v56_v17 = vmul.f32 %v233_v9, %v338_v1  ;;  %v301_v28 = vld [vmem:[%s422_s0 + $0x20] sm:$0xff]  }
   0x5   :  { %v57_v18 = vmul.f32 %v236_v10, %v338_v1  ;;  %v58_v19 = vmul.f32 %v237_v11, %v338_v1  ;;  %v59_v22 = vmul.f32 %v240_v14, %v338_v1  ;;  %v60_v23 = vmul.f32 %v241_v15, %v338_v1 }
   0x6   :  { %v76_v20 = vadd.f32 %v352_v7, %v53_v12  ;;  %v77_v21 = vadd.f32 %v352_v7, %v54_v13  ;;  %v78_v24 = vadd.f32 %v352_v7, %v55_v16  ;;  %v79_v25 = vadd.f32 %v352_v7, %v56_v17 }
   0x7   :  { %v80_v26 = vadd.f32 %v352_v7, %v57_v18  ;;  %v81_v27 = vadd.f32 %v352_v7, %v58_v19  ;;  %v82_v31 = vadd.f32 %v352_v7, %v59_v22  ;;  %v83_v32 = vadd.f32 %v352_v7, %v60_v23 }
   0x8   :  { %v92_v29 = vmax.f32 %v76_v20, 0.0  ;;  %v93_v30 = vmax.f32 %v77_v21, 0.0  ;;  %v94_v34 = vmax.f32 %v78_v24, 0.0  ;;  %v95_v35 = vmax.f32 %v79_v25, 0.0 }
   0x9   :  { %v96_v36 = vmax.f32 %v80_v26, 0.0  ;;  %v97_v37 = vmax.f32 %v81_v27, 0.0  ;;  %v98_v40 = vmax.f32 %v82_v31, 0.0  ;;  %v99_v41 = vmax.f32 %v83_v32, 0.0 }
   0xa   :  { %v261_v39 = vpack.c.bf16 %v93_v30, %v92_v29  ;;  %v244_v42 = vunpack.c.l.bf16 %v301_v28  ;;  %v266_v44 = vpack.c.bf16 %v95_v35, %v94_v34  ;;  %v245_v46 = vunpack.c.h.bf16 %v301_v28 }
   0xb   :  { %v271_v45 = vpack.c.bf16 %v97_v37, %v96_v36  ;;  %v248_v47 = vunpack.c.l.bf16 %v302_v33  ;;  %v276_v48 = vpack.c.bf16 %v99_v41, %v98_v40  ;;  %v249_v50 = vunpack.c.h.bf16 %v302_v33 }
   0xc   :  { %262 = vst [vmem:[%s425_s3] sm:$0xff] %v261_v39   ;;  %v61_v49 = vmul.f32 %v244_v42, %v338_v1  ;;  %v252_v51 = vunpack.c.l.bf16 %v303_v38  ;;  %305 = vst [vmem:[%s425_s3 + $0x8] sm:$0xff] %v266_v44   ;;  %v62_v52 = vmul.f32 %v245_v46, %v338_v1  ;;  %v253_v54 = vunpack.c.h.bf16 %v303_v38 }
   0xd   :  { %306 = vst [vmem:[%s425_s3 + $0x10] sm:$0xff] %v271_v45   ;;  %v63_v53 = vmul.f32 %v248_v47, %v338_v1  ;;  %v256_v55 = vunpack.c.l.bf16 %v304_v43  ;;  %307 = vst [vmem:[%s425_s3 + $0x18] sm:$0xff] %v276_v48   ;;  %v64_v57 = vmul.f32 %v249_v50, %v338_v1  ;;  %v257_v59 = vunpack.c.h.bf16 %v304_v43 }
   0xe   :  { %v84_v56 = vadd.f32 %v352_v7, %v61_v49  ;;  %v65_v58 = vmul.f32 %v252_v51, %v338_v1  ;;  %v85_v60 = vadd.f32 %v352_v7, %v62_v52  ;;  %v66_v62 = vmul.f32 %v253_v54, %v338_v1 }
   0xf   :  { %v86_v61 = vadd.f32 %v352_v7, %v63_v53  ;;  %v67_v63 = vmul.f32 %v256_v55, %v338_v1  ;;  %v87_v2 = vadd.f32 %v352_v7, %v64_v57  ;;  %v68_v4 = vmul.f32 %v257_v59, %v338_v1 }
  0x10   :  { %v100_v0 = vmax.f32 %v84_v56, 0.0  ;;  %v88_v3 = vadd.f32 %v352_v7, %v65_v58  ;;  %v101_v5 = vmax.f32 %v85_v60, 0.0  ;;  %v89_v8 = vadd.f32 %v352_v7, %v66_v62 }
  0x11   :  { %v102_v6 = vmax.f32 %v86_v61, 0.0  ;;  %v90_v9 = vadd.f32 %v352_v7, %v67_v63  ;;  %v103_v10 = vmax.f32 %v87_v2, 0.0  ;;  %v91_v12 = vadd.f32 %v352_v7, %v68_v4 }
  0x12   :  { %v104_v11 = vmax.f32 %v88_v3, 0.0  ;;  %v281_v13 = vpack.c.bf16 %v101_v5, %v100_v0  ;;  %v105_v14 = vmax.f32 %v89_v8, 0.0 }
  0x13   :  { %v106_v15 = vmax.f32 %v90_v9, 0.0  ;;  %v286_v16 = vpack.c.bf16 %v103_v10, %v102_v6  ;;  %v107_v17 = vmax.f32 %v91_v12, 0.0 }
  0x14   :  { %308 = vst [vmem:[%s425_s3 + $0x20] sm:$0xff] %v281_v13   ;;  %v291_v1 = vpack.c.bf16 %v105_v14, %v104_v11 }
  0x15   :  { %309 = vst [vmem:[%s425_s3 + $0x28] sm:$0xff] %v286_v16   ;;  %v296_v18 = vpack.c.bf16 %v107_v17, %v106_v15 }
  0x16   :  { %310 = vst [vmem:[%s425_s3 + $0x30] sm:$0xff] %v291_v1  }
  0x17   :  { %311 = vst [vmem:[%s425_s3 + $0x38] sm:$0xff] %v296_v18  }

// kernel: resnet_filter_forward.15
= control target key start
LH: loop header
LB: loop body
LE: loop exit
PB: predicated region body
PF: predicated region fallthrough
CT: control target
= control target key end

     0   :  { %s2981_s1 = inlined_call_operand.vmem [shape: bf16[1152,128], index: 1, kind: input, shape index: {}]   ;;  %s2982_s0 = inlined_call_operand.vmem [shape: bf16[128,1152], index: 0, kind: input, shape index: {}]   ;;  %s2983_s2 = inlined_call_operand.vmem [shape: bf16[128,128], index: 2, kind: output, shape index: {0}]   ;;  %s2984_s3 = inlined_call_operand.vmem [shape: f32[1,1,128], index: 3, kind: output, shape index: {1}]   ;;  %s2985_s4 = inlined_call_operand.vmem [shape: f32[1,1,128], index: 4, kind: output, shape index: {2}]  }
   0x1   :  { %v2219_v0 = vld [vmem:[%s2981_s1 + $0x78] sm:$0xff]   ;;  %v2223_v4 = vld [vmem:[%s2981_s1 + $0x70] sm:$0xff]   ;;  %v2227_v8 = vld [vmem:[%s2981_s1 + $0x68] sm:$0xff]  }
   0x2   :  { %v2220_v1 = vld [vmem:[%s2981_s1 + $0xf8] sm:$0xff]   ;;  %1899 = vmatprep.subr.bf16.mxu0 %v2219_v0  ;;  %v2224_v5 = vld [vmem:[%s2981_s1 + $0xf0] sm:$0xff]   ;;  %v2228_v9 = vld [vmem:[%s2981_s1 + $0xe8] sm:$0xff]  }
   0x3   :  { %v2221_v2 = vld [vmem:[%s2981_s1 + $0x38] sm:$0xff]   ;;  %1963 = vmatprep.subr.bf16.mxu1 %v2220_v1  ;;  %v2225_v6 = vld [vmem:[%s2981_s1 + $0x30] sm:$0xff]   ;;  %v2229_v10 = vld [vmem:[%s2981_s1 + $0x28] sm:$0xff]  }
   0x4   :  { %v2222_v3 = vld [vmem:[%s2981_s1 + $0xb8] sm:$0xff]   ;;  %1900 = vmatpush3.bf16.msra.mxu0 %v2221_v2  ;;  %v2226_v7 = vld [vmem:[%s2981_s1 + $0xb0] sm:$0xff]   ;;  %v2230_v11 = vld [vmem:[%s2981_s1 + $0xa8] sm:$0xff]  }
   0x5   :  { %1964 = vmatpush3.bf16.msra.mxu1 %v2222_v3  ;;  %1901 = vmatprep.subr.bf16.mxu0 %v2223_v4  ;;  %v2231_v12 = vld [vmem:[%s2981_s1 + $0x60] sm:$0xff]   ;;  %v2235_v16 = vld [vmem:[%s2981_s1 + $0x58] sm:$0xff]   ;;  %v2239_v20 = vld [vmem:[%s2981_s1 + $0x50] sm:$0xff]  }
   0x6   :  { %1965 = vmatprep.subr.bf16.mxu1 %v2224_v5  ;;  %v2232_v13 = vld [vmem:[%s2981_s1 + $0xe0] sm:$0xff]   ;;  %v2236_v17 = vld [vmem:[%s2981_s1 + $0xd8] sm:$0xff]   ;;  %v2240_v21 = vld [vmem:[%s2981_s1 + $0xd0] sm:$0xff]  }
   0x7   :  { %v2233_v14 = vld [vmem:[%s2981_s1 + $0x20] sm:$0xff]   ;;  %v2237_v18 = vld [vmem:[%s2981_s1 + $0x18] sm:$0xff]   ;;  %v2241_v22 = vld [vmem:[%s2981_s1 + $0x10] sm:$0xff]  }
   0x8   :  { %1902 = vmatpush3.bf16.msra.mxu0 %v2225_v6  ;;  %v2234_v15 = vld [vmem:[%s2981_s1 + $0xa0] sm:$0xff]   ;;  %v2238_v19 = vld [vmem:[%s2981_s1 + $0x98] sm:$0xff]   ;;  %v2242_v23 = vld [vmem:[%s2981_s1 + $0x90] sm:$0xff]  }
   0x9   :  { %1966 = vmatpush3.bf16.msra.mxu1 %v2226_v7  ;;  %1903 = vmatprep.subr.bf16.mxu0 %v2227_v8  ;;  %v2243_v24 = vld [vmem:[%s2981_s1 + $0x48] sm:$0xff]   ;;  %v2247_v28 = vld [vmem:[%s2981_s1 + $0x40] sm:$0xff]   ;;  %v2257_v36 = vld [vmem:[%s2981_s1 + $0x178] sm:$0xff]  }
   0xa   :  { %1967 = vmatprep.subr.bf16.mxu1 %v2228_v9  ;;  %v2244_v25 = vld [vmem:[%s2981_s1 + $0xc8] sm:$0xff]   ;;  %v2248_v29 = vld [vmem:[%s2981_s1 + $0xc0] sm:$0xff]   ;;  %v2258_v37 = vld [vmem:[%s2981_s1 + $0x138] sm:$0xff]  }
   0xb   :  { %v2245_v26 = vld [vmem:[%s2981_s1 + $0x8] sm:$0xff]   ;;  %v2249_v30 = vld [vmem:[%s2981_s1] sm:$0xff]   ;;  %v2261_v39 = vld [vmem:[%s2982_s0 + $0x54] ss:$36 sps:$4 sm:$0xff]  }
   0xc   :  { %1904 = vmatpush3.bf16.msra.mxu0 %v2229_v10  ;;  %v2246_v27 = vld [vmem:[%s2981_s1 + $0x88] sm:$0xff]   ;;  %v2250_v31 = vld [vmem:[%s2981_s1 + $0x80] sm:$0xff]   ;;  %v2264_v41 = vld [vmem:[%s2982_s0 + $0x50] ss:$36 sps:$4 sm:$0xff]  }
   0xd   :  { %1968 = vmatpush3.bf16.msra.mxu1 %v2230_v11  ;;  %1905 = vmatprep.subr.bf16.mxu0 %v2231_v12  ;;  %v2251_v32 = vld [vmem:[%s2982_s0] ss:$36 sps:$4 sm:$0xff]   ;;  %v2254_v34 = vld [vmem:[%s2982_s0 + $0x8] ss:$36 sps:$4 sm:$0xff]   ;;  %v2265_v42 = vld [vmem:[%s2981_s1 + $0x170] sm:$0xff]  }
   0xe   :  { %1969 = vmatprep.subr.bf16.mxu1 %v2232_v13  ;;  %v2253_v33 = vld [vmem:[%s2982_s0 + $0x4] ss:$36 sps:$4 sm:$0xff]   ;;  %v2256_v35 = vld [vmem:[%s2982_s0 + $0xc] ss:$36 sps:$4 sm:$0xff]   ;;  %v2267_v44 = vld [vmem:[%s2982_s0 + $0x94] ss:$36 sps:$4 sm:$0xff]  }
   0xf   :  { %1071 = vmatprep.mubr.bf16.mxu0 %v2253_v33  ;;  %1168 = vmatprep.mubr.bf16.mxu1 %v2256_v35  ;;  %v2259_v38 = vld [vmem:[%s2982_s0 + $0x4c] ss:$36 sps:$4 sm:$0xff]   ;;  %v2269_v45 = vld [vmem:[%s2982_s0 + $0x9c] ss:$36 sps:$4 sm:$0xff]   ;;  %v2279_v53 = vld [vmem:[%s2982_s0 + $0xe4] ss:$36 sps:$4 sm:$0xff]  }
  0x10   :  { %1906 = vmatpush3.bf16.msra.mxu0 %v2233_v14  ;;  %v2263_v40 = vld [vmem:[%s2982_s0 + $0x48] ss:$36 sps:$4 sm:$0xff]   ;;  %v2266_v43 = vld [vmem:[%s2981_s1 + $0x130] sm:$0xff]   ;;  %v2274_v47 = vld [vmem:[%s2981_s1 + $0x1f8] sm:$0xff]  }
  0x11   :  { %1970 = vmatpush3.bf16.msra.mxu1 %v2234_v15  ;;  %1907 = vmatprep.subr.bf16.mxu0 %v2235_v16  ;;  %v2273_v46 = vld [vmem:[%s2981_s1 + $0x168] sm:$0xff]   ;;  %v2271_v48 = vld [vmem:[%s2982_s0 + $0x90] ss:$36 sps:$4 sm:$0xff]   ;;  %v2276_v50 = vld [vmem:[%s2981_s1 + $0x1b8] sm:$0xff]  }
  0x12   :  { %1971 = vmatprep.subr.bf16.mxu1 %v2236_v17  ;;  %v2275_v49 = vld [vmem:[%s2981_s1 + $0x128] sm:$0xff]   ;;  %v2272_v51 = vld [vmem:[%s2982_s0 + $0x98] ss:$36 sps:$4 sm:$0xff]   ;;  %v2283_v54 = vld [vmem:[%s2981_s1 + $0x160] sm:$0xff]  }
  0x13   :  { %v2277_v52 = vld [vmem:[%s2982_s0 + $0xdc] ss:$36 sps:$4 sm:$0xff]   ;;  %v2284_v55 = vld [vmem:[%s2981_s1 + $0x1f0] sm:$0xff]   ;;  %v2287_v60 = vld [vmem:[%s2982_s0 + $0x124] ss:$36 sps:$4 sm:$0xff]  }
  0x14   :  { %1908 = vmatpush3.bf16.msra.mxu0 %v2237_v18  ;;  %v2285_v56 = vld [vmem:[%s2981_s1 + $0x120] sm:$0xff]   ;;  %v2286_v57 = vld [vmem:[%s2981_s1 + $0x1b0] sm:$0xff]   ;;  %v2281_v58 = vld [vmem:[%s2982_s0 + $0xd8] ss:$36 sps:$4 sm:$0xff]  }
  0x15   :  { %1972 = vmatpush3.bf16.msra.mxu1 %v2238_v19  ;;  %1909 = vmatprep.subr.bf16.mxu0 %v2239_v20  ;;  %v2282_v59 = vld [vmem:[%s2982_s0 + $0xe0] ss:$36 sps:$4 sm:$0xff]   ;;  %v2289_v61 = vld [vmem:[%s2982_s0 + $0x12c] ss:$36 sps:$4 sm:$0xff]   ;;  %v2293_v62 = vld [vmem:[%s2981_s1 + $0x158] sm:$0xff]  }
  0x16   :  { %1973 = vmatprep.subr.bf16.mxu1 %v2240_v21  ;;  %v2294_v63 = vld [vmem:[%s2981_s1 + $0x1e8] sm:$0xff]   ;;  %v2295_v0 = vld [vmem:[%s2981_s1 + $0x118] sm:$0xff]   ;;  %v2291_v2 = vld [vmem:[%s2982_s0 + $0x120] ss:$36 sps:$4 sm:$0xff]  }
  0x17   :  { %v2296_v1 = vld [vmem:[%s2981_s1 + $0x1a8] sm:$0xff]   ;;  %v2299_v5 = vld [vmem:[%s2982_s0 + $0x174] ss:$36 sps:$4 sm:$0xff]   ;;  %v2304_v7 = vld [vmem:[%s2981_s1 + $0x1e0] sm:$0xff]  }
  0x18   :  { %1910 = vmatpush3.bf16.msra.mxu0 %v2241_v22  ;;  %v2292_v3 = vld [vmem:[%s2982_s0 + $0x128] ss:$36 sps:$4 sm:$0xff]   ;;  %v2303_v6 = vld [vmem:[%s2981_s1 + $0x150] sm:$0xff]   ;;  %v2306_v9 = vld [vmem:[%s2981_s1 + $0x1a0] sm:$0xff]  }
  0x19   :  { %1974 = vmatpush3.bf16.msra.mxu1 %v2242_v23  ;;  %1911 = vmatprep.subr.bf16.mxu0 %v2243_v24  ;;  %v2297_v4 = vld [vmem:[%s2982_s0 + $0x16c] ss:$36 sps:$4 sm:$0xff]   ;;  %v2307_v12 = vld [vmem:[%s2982_s0 + $0x1b4] ss:$36 sps:$4 sm:$0xff]   ;;  %v2309_v14 = vld [vmem:[%s2982_s0 + $0x1bc] ss:$36 sps:$4 sm:$0xff]  }
  0x1a   :  { %1975 = vmatprep.subr.bf16.mxu1 %v2244_v25  ;;  %v2305_v8 = vld [vmem:[%s2981_s1 + $0x110] sm:$0xff]   ;;  %v2301_v10 = vld [vmem:[%s2982_s0 + $0x168] ss:$36 sps:$4 sm:$0xff]   ;;  %v2314_v15 = vld [vmem:[%s2981_s1 + $0x1d8] sm:$0xff]  }
  0x1b   :  { %v2302_v11 = vld [vmem:[%s2982_s0 + $0x170] ss:$36 sps:$4 sm:$0xff]   ;;  %v2313_v13 = vld [vmem:[%s2981_s1 + $0x148] sm:$0xff]   ;;  %v2316_v17 = vld [vmem:[%s2981_s1 + $0x198] sm:$0xff]  }
  0x1c   :  { %1912 = vmatpush3.bf16.msra.mxu0 %v2245_v26  ;;  %v2315_v16 = vld [vmem:[%s2981_s1 + $0x108] sm:$0xff]   ;;  %v2317_v18 = vld [vmem:[%s2981_s1 + $0x1d0] sm:$0xff]   ;;  %v2312_v21 = vld [vmem:[%s2982_s0 + $0x1b8] ss:$36 sps:$4 sm:$0xff]  }
  0x1d   :  { %1976 = vmatpush3.bf16.msra.mxu1 %v2246_v27  ;;  %1913 = vmatprep.subr.bf16.mxu0 %v2247_v28  ;;  %v2318_v19 = vld [vmem:[%s2981_s1 + $0x190] sm:$0xff]   ;;  %v2319_v22 = vld [vmem:[%s2982_s0 + $0x1fc] ss:$36 sps:$4 sm:$0xff]   ;;  %v2321_v23 = vld [vmem:[%s2982_s0 + $0x204] ss:$36 sps:$4 sm:$0xff]  }
  0x1e   :  { %1977 = vmatprep.subr.bf16.mxu1 %v2248_v29  ;;  %v2311_v20 = vld [vmem:[%s2982_s0 + $0x1b0] ss:$36 sps:$4 sm:$0xff]   ;;  %v2325_v24 = vld [vmem:[%s2981_s1 + $0x140] sm:$0xff]   ;;  %v2326_v25 = vld [vmem:[%s2981_s1 + $0x1c8] sm:$0xff]  }
  0x1f   :  { %v2327_v26 = vld [vmem:[%s2981_s1 + $0x100] sm:$0xff]   ;;  %v2328_v27 = vld [vmem:[%s2981_s1 + $0x188] sm:$0xff]   ;;  %v2323_v29 = vld [vmem:[%s2982_s0 + $0x1f8] ss:$36 sps:$4 sm:$0xff]  }
  0x20   :  { %1914 = vmatpush3.bf16.msra.mxu0 %v2249_v30  ;;  %v2329_v28 = vld [vmem:[%s2981_s1 + $0x1c0] sm:$0xff]   ;;  %v2333_v33 = vld [vmem:[%s2982_s0 + $0x14] ss:$36 sps:$4 sm:$0xff]  }
  0x21   :  { %1978 = vmatpush3.bf16.msra.mxu1 %v2250_v31  ;;  %2027 = vmatprep.subr.bf16.mxu0 %v2257_v36  ;;  %v2324_v30 = vld [vmem:[%s2982_s0 + $0x200] ss:$36 sps:$4 sm:$0xff]   ;;  %v2331_v35 = vld [vmem:[%s2982_s0 + $0x10] ss:$36 sps:$4 sm:$0xff]   ;;  %v2334_v36 = vld [vmem:[%s2982_s0 + $0x18] ss:$36 sps:$4 sm:$0xff]  }
  0x22   :  { %2091 = vmatprep.subr.bf16.mxu1 %v2274_v47  ;;  %v2330_v31 = vld [vmem:[%s2981_s1 + $0x180] sm:$0xff]  }
  0x23   :  { %1072 = vmatmul.mubr.bf16.vlgmr.msra.gmra.mxu0 %v2251_v32  ;;  %v2337_v32 = vld [vmem:[%s2981_s1 + $0x238] sm:$0xff]   ;;  %v2349_v47 = vld [vmem:[%s2982_s0 + $0xa0] ss:$36 sps:$4 sm:$0xff]  }
  0x24   :  { %1169 = vmatmul.mubr.bf16.vlgmr.msra.gmra.mxu1 %v2254_v34  ;;  %2028 = vmatpush3.bf16.msra.mxu0 %v2258_v37  ;;  %v2336_v34 = vld [vmem:[%s2982_s0 + $0x1c] ss:$36 sps:$4 sm:$0xff]  }
  0x25   :  { %1079 = vmatprep.mubr.bf16.mxu0 %v2259_v38  ;;  %1176 = vmatprep.mubr.bf16.mxu1 %v2261_v39  ;;  %v2338_v37 = vld [vmem:[%s2982_s0 + $0x5c] ss:$36 sps:$4 sm:$0xff]   ;;  %v2340_v38 = vld [vmem:[%s2982_s0 + $0x64] ss:$36 sps:$4 sm:$0xff]   ;;  %v2344_v39 = vld [vmem:[%s2981_s1 + $0x230] sm:$0xff]  }
  0x26   :  { %2029 = vmatprep.subr.bf16.mxu0 %v2265_v42  ;;  %2092 = vmatpush3.bf16.msra.mxu1 %v2276_v50  ;;  %v2343_v42 = vld [vmem:[%s2982_s0 + $0x60] ss:$36 sps:$4 sm:$0xff]   ;;  %v2354_v50 = vld [vmem:[%s2982_s0 + $0xf4] ss:$36 sps:$4 sm:$0xff]  }
  0x27   :  { %2093 = vmatprep.subr.bf16.mxu1 %v2284_v55  ;;  %v2359_v55 = vld [vmem:[%s2982_s0 + $0x134] ss:$36 sps:$4 sm:$0xff]  }
  0x28   :  { %2030 = vmatpush3.bf16.msra.mxu0 %v2266_v43  ;;  %v2345_v43 = vld [vmem:[%s2982_s0 + $0xa4] ss:$36 sps:$4 sm:$0xff]  }
  0x29   :  { %2031 = vmatprep.subr.bf16.mxu0 %v2273_v46  ;;  %v2365_v46 = vld [vmem:[%s2981_s1 + $0x218] sm:$0xff]  }
  0x2a   :  { %2094 = vmatpush3.bf16.msra.mxu1 %v2286_v57  ;;  %v2386_v57 = vld [vmem:[%s2981_s1 + $0x200] sm:$0xff]  }
  0x2b   :  { %1080 = vmatmul.mubr.bf16.gmra.mxu0 %v2263_v40  ;;  %2095 = vmatprep.subr.bf16.mxu1 %v2294_v63  ;;  %v2351_v40 = vld [vmem:[%s2981_s1 + $0x228] sm:$0xff]   ;;  %v2371_v63 = vld [vmem:[%s2982_s0 + $0x180] ss:$36 sps:$4 sm:$0xff]  }
  0x2c   :  { %1177 = vmatmul.mubr.bf16.gmra.mxu1 %v2264_v41  ;;  %1087 = vmatprep.mubr.bf16.mxu0 %v2267_v44  ;;  %v2342_v41 = vld [vmem:[%s2982_s0 + $0x58] ss:$36 sps:$4 sm:$0xff]   ;;  %v2347_v44 = vld [vmem:[%s2982_s0 + $0xac] ss:$36 sps:$4 sm:$0xff]  }
  0x2d   :  { %1184 = vmatprep.mubr.bf16.mxu1 %v2269_v45  ;;  %2032 = vmatpush3.bf16.msra.mxu0 %v2275_v49  ;;  %v2358_v45 = vld [vmem:[%s2981_s1 + $0x220] sm:$0xff]   ;;  %v2352_v49 = vld [vmem:[%s2982_s0 + $0xec] ss:$36 sps:$4 sm:$0xff]  }
  0x2e   :  { %2033 = vmatprep.subr.bf16.mxu0 %v2283_v54  ;;  %2096 = vmatpush3.bf16.msra.mxu1 %v2296_v1  ;;  %v2357_v54 = vld [vmem:[%s2982_s0 + $0xf0] ss:$36 sps:$4 sm:$0xff]  }
  0x2f   :  { %2097 = vmatprep.subr.bf16.mxu1 %v2304_v7  ;;  %v2375_v1 = vld [vmem:[%s2982_s0 + $0x1cc] ss:$36 sps:$4 sm:$0xff]  }
  0x30   :  { %v2385_v7 = vld [vmem:[%s2982_s0 + $0x210] ss:$36 sps:$4 sm:$0xff]  }
  0x31   :  { %2034 = vmatpush3.bf16.msra.mxu0 %v2285_v56  ;;  %v2361_v56 = vld [vmem:[%s2982_s0 + $0x13c] ss:$36 sps:$4 sm:$0xff]  }
  0x32   :  { %2035 = vmatprep.subr.bf16.mxu0 %v2293_v62  ;;  %2098 = vmatpush3.bf16.msra.mxu1 %v2306_v9  ;;  %v2370_v62 = vld [vmem:[%s2982_s0 + $0x178] ss:$36 sps:$4 sm:$0xff]   ;;  %v2388_v9 = vld [vmem:[%s2982_s0 + $0x140] ss:$36 sps:$4 sm:$0xff]  }
  0x33   :  { %1088 = vmatmul.mubr.bf16.gmra.mxu0 %v2271_v48  ;;  %2099 = vmatprep.subr.bf16.mxu1 %v2314_v15  ;;  %v2350_v48 = vld [vmem:[%s2982_s0 + $0xa8] ss:$36 sps:$4 sm:$0xff]   ;;  %v2394_v15 = vld [vmem:[%s2982_s0 + $0x218] ss:$36 sps:$4 sm:$0xff]  }
  0x34   :  { %1185 = vmatmul.mubr.bf16.gmra.mxu1 %v2272_v51  ;;  %1095 = vmatprep.mubr.bf16.mxu0 %v2277_v52  ;;  %v2372_v51 = vld [vmem:[%s2981_s1 + $0x210] sm:$0xff]   ;;  %v2356_v52 = vld [vmem:[%s2982_s0 + $0xe8] ss:$36 sps:$4 sm:$0xff]  }
  0x35   :  { %1192 = vmatprep.mubr.bf16.mxu1 %v2279_v53  ;;  %2036 = vmatpush3.bf16.msra.mxu0 %v2295_v0  ;;  %v2379_v53 = vld [vmem:[%s2981_s1 + $0x208] sm:$0xff]  }
  0x36   :  { %2037 = vmatprep.subr.bf16.mxu0 %v2303_v6  ;;  %2100 = vmatpush3.bf16.msra.mxu1 %v2316_v17  ;;  %v2373_v0 = vld [vmem:[%s2982_s0 + $0x1c4] ss:$36 sps:$4 sm:$0xff]  }
  0x37   :  { %2101 = vmatprep.subr.bf16.mxu1 %v2317_v18  ;;  %v2384_v6 = vld [vmem:[%s2982_s0 + $0x208] ss:$36 sps:$4 sm:$0xff]  }
  0x39   :  { %2038 = vmatpush3.bf16.msra.mxu0 %v2305_v8  ;;  %v2387_v8 = vld [vmem:[%s2982_s0 + $0x20] ss:$36 sps:$4 sm:$0xff]  }
  0x3a   :  { %2039 = vmatprep.subr.bf16.mxu0 %v2313_v13  ;;  %2102 = vmatpush3.bf16.msra.mxu1 %v2318_v19  ;;  %v2392_v13 = vld [vmem:[%s2982_s0 + $0x1d0] ss:$36 sps:$4 sm:$0xff]  }
  0x3b   :  { %1096 = vmatmul.mubr.bf16.gmra.mxu0 %v2281_v58  ;;  %2103 = vmatprep.subr.bf16.mxu1 %v2326_v25  ;;  %v2363_v58 = vld [vmem:[%s2982_s0 + $0x130] ss:$36 sps:$4 sm:$0xff]  }
  0x3c   :  { %1193 = vmatmul.mubr.bf16.gmra.mxu1 %v2282_v59  ;;  %1103 = vmatprep.mubr.bf16.mxu0 %v2287_v60  ;;  %v2364_v59 = vld [vmem:[%s2982_s0 + $0x138] ss:$36 sps:$4 sm:$0xff]  }
  0x3d   :  { %1200 = vmatprep.mubr.bf16.mxu1 %v2289_v61  ;;  %2040 = vmatpush3.bf16.msra.mxu0 %v2315_v16  ;;  %v2366_v60 = vld [vmem:[%s2982_s0 + $0x17c] ss:$36 sps:$4 sm:$0xff]   ;;  %v2368_v61 = vld [vmem:[%s2982_s0 + $0x184] ss:$36 sps:$4 sm:$0xff]  }
  0x3e   :  { %2041 = vmatprep.subr.bf16.mxu0 %v2325_v24  ;;  %2104 = vmatpush3.bf16.msra.mxu1 %v2328_v27 }
  0x3f   :  { %2105 = vmatprep.subr.bf16.mxu1 %v2329_v28 }
  0x41   :  { %2042 = vmatpush3.bf16.msra.mxu0 %v2327_v26 }
  0x42   :  { %2171 = vmatprep.subr.bf16.mxu0 %v2337_v32  ;;  %2106 = vmatpush3.bf16.msra.mxu1 %v2330_v31 }
  0x43   :  { %1104 = vmatmul.mubr.bf16.gmra.mxu0 %v2291_v2  ;;  %2203 = vmatprep.subr.bf16.mxu1 %v2337_v32  ;;  %v2377_v2 = vld [vmem:[%s2982_s0 + $0x1c0] ss:$36 sps:$4 sm:$0xff]  }
  0x44   :  { %1201 = vmatmul.mubr.bf16.gmra.mxu1 %v2292_v3  ;;  %1111 = vmatprep.mubr.bf16.mxu0 %v2297_v4  ;;  %v2378_v3 = vld [vmem:[%s2982_s0 + $0x1c8] ss:$36 sps:$4 sm:$0xff]  }
  0x45   :  { %1208 = vmatprep.mubr.bf16.mxu1 %v2299_v5  ;;  %v2380_v4 = vld [vmem:[%s2982_s0 + $0x20c] ss:$36 sps:$4 sm:$0xff]   ;;  %v2382_v5 = vld [vmem:[%s2982_s0 + $0x214] ss:$36 sps:$4 sm:$0xff]  }
  0x4b   :  { %1112 = vmatmul.mubr.bf16.gmra.mxu0 %v2301_v10  ;;  %v2389_v10 = vld [vmem:[%s2982_s0 + $0x68] ss:$36 sps:$4 sm:$0xff]  }
  0x4c   :  { %1209 = vmatmul.mubr.bf16.gmra.mxu1 %v2302_v11  ;;  %1119 = vmatprep.mubr.bf16.mxu0 %v2307_v12  ;;  %v2390_v11 = vld [vmem:[%s2982_s0 + $0x188] ss:$36 sps:$4 sm:$0xff]   ;;  %v2391_v12 = vld [vmem:[%s2982_s0 + $0xb0] ss:$36 sps:$4 sm:$0xff]  }
  0x4d   :  { %1216 = vmatprep.mubr.bf16.mxu1 %v2309_v14  ;;  %v2393_v14 = vld [vmem:[%s2982_s0 + $0xf8] ss:$36 sps:$4 sm:$0xff]  }
  0x53   :  { %1120 = vmatmul.mubr.bf16.gmra.mxu0 %v2311_v20 }
  0x54   :  { %1217 = vmatmul.mubr.bf16.gmra.mxu1 %v2312_v21  ;;  %1127 = vmatprep.mubr.bf16.mxu0 %v2319_v22 }
  0x55   :  { %1224 = vmatprep.mubr.bf16.mxu1 %v2321_v23 }
  0x5b   :  { %1128 = vmatmul.mubr.bf16.gmra.mxu0 %v2323_v29 }
  0x5c   :  { %1225 = vmatmul.mubr.bf16.gmra.mxu1 %v2324_v30  ;;  %1265 = vmatprep.mubr.bf16.mxu0 %v2333_v33 }
  0x5d   :  { %1362 = vmatprep.mubr.bf16.mxu1 %v2336_v34 }
  0x63   :  { %1266 = vmatmul.mubr.bf16.vlgmr.msra.gmra.mxu0 %v2331_v35 }
  0x64   :  { %1363 = vmatmul.mubr.bf16.vlgmr.msra.gmra.mxu1 %v2334_v36  ;;  %2172 = vmatpush3.bf16.msra.mxu0 %v2337_v32 }
  0x65   :  { %1273 = vmatprep.mubr.bf16.mxu0 %v2338_v37  ;;  %1370 = vmatprep.mubr.bf16.mxu1 %v2340_v38 }
  0x66   :  { %2173 = vmatprep.subr.bf16.mxu0 %v2344_v39  ;;  %2211 = vmatpush3.bf16.msra.mxu1 %v2337_v32 }
  0x67   :  { %2204 = vmatprep.subr.bf16.mxu1 %v2344_v39 }
  0x68   :  { %2174 = vmatpush3.bf16.msra.mxu0 %v2344_v39 }
  0x69   :  { %2175 = vmatprep.subr.bf16.mxu0 %v2351_v40 }
  0x6a   :  { %2212 = vmatpush3.bf16.msra.mxu1 %v2344_v39 }
  0x6b   :  { %1274 = vmatmul.mubr.bf16.gmra.mxu0 %v2342_v41  ;;  %2205 = vmatprep.subr.bf16.mxu1 %v2351_v40 }
  0x6c   :  { %1371 = vmatmul.mubr.bf16.gmra.mxu1 %v2343_v42  ;;  %1281 = vmatprep.mubr.bf16.mxu0 %v2345_v43 }
  0x6d   :  { %1378 = vmatprep.mubr.bf16.mxu1 %v2347_v44  ;;  %2176 = vmatpush3.bf16.msra.mxu0 %v2351_v40 }
  0x6e   :  { %2177 = vmatprep.subr.bf16.mxu0 %v2358_v45  ;;  %2213 = vmatpush3.bf16.msra.mxu1 %v2351_v40 }
  0x6f   :  { %2206 = vmatprep.subr.bf16.mxu1 %v2358_v45 }
  0x71   :  { %2178 = vmatpush3.bf16.msra.mxu0 %v2358_v45 }
  0x72   :  { %2179 = vmatprep.subr.bf16.mxu0 %v2365_v46  ;;  %2214 = vmatpush3.bf16.msra.mxu1 %v2358_v45 }
  0x73   :  { %1282 = vmatmul.mubr.bf16.gmra.mxu0 %v2349_v47  ;;  %2207 = vmatprep.subr.bf16.mxu1 %v2365_v46 }
  0x74   :  { %1379 = vmatmul.mubr.bf16.gmra.mxu1 %v2350_v48  ;;  %1289 = vmatprep.mubr.bf16.mxu0 %v2352_v49 }
  0x75   :  { %1386 = vmatprep.mubr.bf16.mxu1 %v2354_v50  ;;  %2180 = vmatpush3.bf16.msra.mxu0 %v2365_v46 }
  0x76   :  { %2181 = vmatprep.subr.bf16.mxu0 %v2372_v51  ;;  %2215 = vmatpush3.bf16.msra.mxu1 %v2365_v46 }
  0x77   :  { %2208 = vmatprep.subr.bf16.mxu1 %v2372_v51 }
  0x79   :  { %2182 = vmatpush3.bf16.msra.mxu0 %v2372_v51 }
  0x7a   :  { %2183 = vmatprep.subr.bf16.mxu0 %v2379_v53  ;;  %2216 = vmatpush3.bf16.msra.mxu1 %v2372_v51 }
  0x7b   :  { %1290 = vmatmul.mubr.bf16.gmra.mxu0 %v2356_v52  ;;  %2209 = vmatprep.subr.bf16.mxu1 %v2379_v53 }
  0x7c   :  { %1387 = vmatmul.mubr.bf16.gmra.mxu1 %v2357_v54  ;;  %1297 = vmatprep.mubr.bf16.mxu0 %v2359_v55 }
  0x7d   :  { %1394 = vmatprep.mubr.bf16.mxu1 %v2361_v56  ;;  %2184 = vmatpush3.bf16.msra.mxu0 %v2379_v53 }
  0x7e   :  { %2185 = vmatprep.subr.bf16.mxu0 %v2386_v57  ;;  %2217 = vmatpush3.bf16.msra.mxu1 %v2379_v53 }
  0x7f   :  { %2210 = vmatprep.subr.bf16.mxu1 %v2386_v57 }
  0x81   :  { %2186 = vmatpush3.bf16.msra.mxu0 %v2386_v57 }
  0x82   :  { %2218 = vmatpush3.bf16.msra.mxu1 %v2386_v57 }
  0x83   :  { %1298 = vmatmul.mubr.bf16.gmra.mxu0 %v2363_v58 }
  0x84   :  { %1395 = vmatmul.mubr.bf16.gmra.mxu1 %v2364_v59  ;;  %1305 = vmatprep.mubr.bf16.mxu0 %v2366_v60 }
  0x85   :  { %1402 = vmatprep.mubr.bf16.mxu1 %v2368_v61 }
  0x8b   :  { %1306 = vmatmul.mubr.bf16.gmra.mxu0 %v2370_v62 }
  0x8c   :  { %1403 = vmatmul.mubr.bf16.gmra.mxu1 %v2371_v63  ;;  %1313 = vmatprep.mubr.bf16.mxu0 %v2373_v0 }
  0x8d   :  { %1410 = vmatprep.mubr.bf16.mxu1 %v2375_v1 }
  0x93   :  { %1314 = vmatmul.mubr.bf16.gmra.mxu0 %v2377_v2 }
  0x94   :  { %1411 = vmatmul.mubr.bf16.gmra.mxu1 %v2378_v3  ;;  %1321 = vmatprep.mubr.bf16.mxu0 %v2380_v4 }
  0x95   :  { %1418 = vmatprep.mubr.bf16.mxu1 %v2382_v5 }
  0x9b   :  { %1322 = vmatmul.mubr.bf16.gmra.mxu0 %v2384_v6 }
  0x9c   :  { %1419 = vmatmul.mubr.bf16.gmra.mxu1 %v2385_v7  ;;  %2187 = vmatprep.mubr.bf16.mxu0 %v2387_v8 }
  0x9d   :  { %2195 = vmatprep.mubr.bf16.mxu1 %v2388_v9 }
  0xa3   :  { %2188 = vmatmul.mubr.bf16.vlgmr.msra.gmra.mxu0 %v2389_v10 }
  0xa4   :  { %2196 = vmatmul.mubr.bf16.vlgmr.msra.gmra.mxu1 %v2390_v11  ;;  %2191 = vmatprep.mubr.bf16.mxu0 %v2391_v12 }
  0xa5   :  { %2199 = vmatprep.mubr.bf16.mxu1 %v2392_v13 }
  0xab   :  { %2192 = vmatmul.mubr.bf16.gmra.mxu0 %v2393_v14 }
  0xac   :  { %2200 = vmatmul.mubr.bf16.gmra.mxu1 %v2394_v15 }
  0xe3   :  { %v1915_v16 = vpop.f32.mrf.mxu0 }
  0xe4   :  { %v1979_v17 = vpop.f32.mrf.mxu1 }
  0xe5   :  { %v1916_v18 = vpop.f32.mrf.mxu0 }
  0xe6   :  { %v1917_v19 = vadd.f32 %v1916_v18, %v1915_v16  ;;  %v1980_v20 = vpop.f32.mrf.mxu1 }
  0xe7   :  { %v1981_v21 = vadd.f32 %v1980_v20, %v1979_v17  ;;  %v1918_v22 = vpop.f32.mrf.mxu0 }
  0xe8   :  { %v1982_v23 = vpop.f32.mrf.mxu1 }
  0xe9   :  { %v2852_v24 = vadd.f32 %v1981_v21, %v1917_v19  ;;  %v1919_v25 = vpop.f32.mrf.mxu0 }
  0xea   :  { %v1920_v26 = vadd.f32 %v1919_v25, %v1918_v22  ;;  %v1983_v27 = vpop.f32.mrf.mxu1 }
  0xeb   :  { %v1984_v28 = vadd.f32 %v1983_v27, %v1982_v23  ;;  %v1921_v29 = vpop.f32.mrf.mxu0 }
  0xec   :  { %v1985_v30 = vpop.f32.mrf.mxu1 }
  0xed   :  { %v2854_v31 = vadd.f32 %v1984_v28, %v1920_v26  ;;  %v1922_v32 = vpop.f32.mrf.mxu0 }
  0xee   :  { %v1923_v33 = vadd.f32 %v1922_v32, %v1921_v29  ;;  %v1986_v34 = vpop.f32.mrf.mxu1 }
  0xef   :  { %v1987_v35 = vadd.f32 %v1986_v34, %v1985_v30  ;;  %v1924_v36 = vpop.f32.mrf.mxu0 }
  0xf0   :  { %v1988_v37 = vpop.f32.mrf.mxu1 }
  0xf1   :  { %v2856_v38 = vadd.f32 %v1987_v35, %v1923_v33  ;;  %v1925_v39 = vpop.f32.mrf.mxu0 }
  0xf2   :  { %v1926_v40 = vadd.f32 %v1925_v39, %v1924_v36  ;;  %v1989_v41 = vpop.f32.mrf.mxu1 }
  0xf3   :  { %v1990_v42 = vadd.f32 %v1989_v41, %v1988_v37  ;;  %v1927_v43 = vpop.f32.mrf.mxu0 }
  0xf4   :  { %v1991_v44 = vpop.f32.mrf.mxu1 }
  0xf5   :  { %v2858_v45 = vadd.f32 %v1990_v42, %v1926_v40  ;;  %v1928_v46 = vpop.f32.mrf.mxu0 }
  0xf6   :  { %v1929_v47 = vadd.f32 %v1928_v46, %v1927_v43  ;;  %v1992_v48 = vpop.f32.mrf.mxu1 }
  0xf7   :  { %v1993_v49 = vadd.f32 %v1992_v48, %v1991_v44  ;;  %v1930_v50 = vpop.f32.mrf.mxu0 }
  0xf8   :  { %v1994_v51 = vpop.f32.mrf.mxu1 }
  0xf9   :  { %v2860_v52 = vadd.f32 %v1993_v49, %v1929_v47  ;;  %v1931_v53 = vpop.f32.mrf.mxu0 }
  0xfa   :  { %v1932_v54 = vadd.f32 %v1931_v53, %v1930_v50  ;;  %v1995_v55 = vpop.f32.mrf.mxu1 }
  0xfb   :  { %2986 = vst [vmem:[#allocation2_spill] sm:$0xff] %v2860_v52  ;;  %v1996_v56 = vadd.f32 %v1995_v55, %v1994_v51  ;;  %v1933_v57 = vpop.f32.mrf.mxu0 }
  0xfc   :  { %v1997_v58 = vpop.f32.mrf.mxu1 }
  0xfd   :  { %v2862_v59 = vadd.f32 %v1996_v56, %v1932_v54  ;;  %v1934_v60 = vpop.f32.mrf.mxu0 }
  0xfe   :  { %v1935_v61 = vadd.f32 %v1934_v60, %v1933_v57  ;;  %v1998_v62 = vpop.f32.mrf.mxu1 }
  0xff   :  { %2987 = vst [vmem:[#allocation3_spill] sm:$0xff] %v2862_v59  ;;  %v1999_v63 = vadd.f32 %v1998_v62, %v1997_v58  ;;  %v1936_v0 = vpop.f32.mrf.mxu0 }
 0x100   :  { %v2000_v1 = vpop.f32.mrf.mxu1 }
 0x101   :  { %v2864_v2 = vadd.f32 %v1999_v63, %v1935_v61  ;;  %v1937_v3 = vpop.f32.mrf.mxu0 }
 0x102   :  { %v1938_v4 = vadd.f32 %v1937_v3, %v1936_v0  ;;  %v2001_v5 = vpop.f32.mrf.mxu1 }
 0x103   :  { %2988 = vst [vmem:[#allocation4_spill] sm:$0xff] %v2864_v2  ;;  %v2002_v6 = vadd.f32 %v2001_v5, %v2000_v1  ;;  %v1939_v7 = vpop.f32.mrf.mxu0 }
 0x104   :  { %v2003_v8 = vpop.f32.mrf.mxu1 }
 0x105   :  { %v2866_v9 = vadd.f32 %v2002_v6, %v1938_v4  ;;  %v1940_v10 = vpop.f32.mrf.mxu0 }
 0x106   :  { %v1941_v11 = vadd.f32 %v1940_v10, %v1939_v7  ;;  %v2004_v12 = vpop.f32.mrf.mxu1 }
 0x107   :  { %2989 = vst [vmem:[#allocation5_spill] sm:$0xff] %v2866_v9  ;;  %v2005_v13 = vadd.f32 %v2004_v12, %v2003_v8  ;;  %v1942_v14 = vpop.f32.mrf.mxu0 }
 0x108   :  { %v2006_v15 = vpop.f32.mrf.mxu1 }
 0x109   :  { %v2868_v16 = vadd.f32 %v2005_v13, %v1941_v11  ;;  %v1943_v17 = vpop.f32.mrf.mxu0 }
 0x10a   :  { %v1944_v18 = vadd.f32 %v1943_v17, %v1942_v14  ;;  %v2007_v19 = vpop.f32.mrf.mxu1 }
 0x10b   :  { %2990 = vst [vmem:[#allocation6_spill] sm:$0xff] %v2868_v16  ;;  %v2008_v20 = vadd.f32 %v2007_v19, %v2006_v15  ;;  %v1945_v21 = vpop.f32.mrf.mxu0 }
 0x10c   :  { %v2009_v22 = vpop.f32.mrf.mxu1 }
 0x10d   :  { %v2870_v23 = vadd.f32 %v2008_v20, %v1944_v18  ;;  %v1946_v25 = vpop.f32.mrf.mxu0 }
 0x10e   :  { %v1947_v26 = vadd.f32 %v1946_v25, %v1945_v21  ;;  %v2010_v27 = vpop.f32.mrf.mxu1 }
 0x10f   :  { %2991 = vst [vmem:[#allocation7_spill] sm:$0xff] %v2870_v23  ;;  %v2011_v28 = vadd.f32 %v2010_v27, %v2009_v22  ;;  %v1948_v29 = vpop.f32.mrf.mxu0 }
 0x110   :  { %v2012_v30 = vpop.f32.mrf.mxu1 }
 0x111   :  { %v2872_v32 = vadd.f32 %v2011_v28, %v1947_v26  ;;  %v1949_v33 = vpop.f32.mrf.mxu0 }
 0x112   :  { %v1950_v34 = vadd.f32 %v1949_v33, %v1948_v29  ;;  %v2013_v35 = vpop.f32.mrf.mxu1 }
 0x113   :  { %2992 = vst [vmem:[#allocation8_spill] sm:$0xff] %v2872_v32  ;;  %v2014_v36 = vadd.f32 %v2013_v35, %v2012_v30  ;;  %v1951_v37 = vpop.f32.mrf.mxu0 }
 0x114   :  { %v2015_v39 = vpop.f32.mrf.mxu1 }
 0x115   :  { %v2874_v40 = vadd.f32 %v2014_v36, %v1950_v34  ;;  %v1952_v41 = vpop.f32.mrf.mxu0 }
 0x116   :  { %v1953_v42 = vadd.f32 %v1952_v41, %v1951_v37  ;;  %v2016_v43 = vpop.f32.mrf.mxu1 }
 0x117   :  { %2993 = vst [vmem:[#allocation9_spill] sm:$0xff] %v2874_v40  ;;  %v2017_v44 = vadd.f32 %v2016_v43, %v2015_v39  ;;  %v1954_v46 = vpop.f32.mrf.mxu0 }
 0x118   :  { %v2018_v47 = vpop.f32.mrf.mxu1 }
 0x119   :  { %v2876_v48 = vadd.f32 %v2017_v44, %v1953_v42  ;;  %v1955_v49 = vpop.f32.mrf.mxu0 }
 0x11a   :  { %v1956_v50 = vadd.f32 %v1955_v49, %v1954_v46  ;;  %v2019_v51 = vpop.f32.mrf.mxu1 }
 0x11b   :  { %2994 = vst [vmem:[#allocation10_spill] sm:$0xff] %v2876_v48  ;;  %v2020_v53 = vadd.f32 %v2019_v51, %v2018_v47  ;;  %v1957_v54 = vpop.f32.mrf.mxu0 }
 0x11c   :  { %v2021_v55 = vpop.f32.mrf.mxu1 }
 0x11d   :  { %v2878_v56 = vadd.f32 %v2020_v53, %v1956_v50  ;;  %v1958_v57 = vpop.f32.mrf.mxu0 }
 0x11e   :  { %v1959_v58 = vadd.f32 %v1958_v57, %v1957_v54  ;;  %v2022_v60 = vpop.f32.mrf.mxu1 }
 0x11f   :  { %2995 = vst [vmem:[#allocation11_spill] sm:$0xff] %v2878_v56  ;;  %v2023_v61 = vadd.f32 %v2022_v60, %v2021_v55  ;;  %v1960_v62 = vpop.f32.mrf.mxu0 }
 0x120   :  { %v2024_v63 = vpop.f32.mrf.mxu1 }
 0x121   :  { %v2880_v0 = vadd.f32 %v2023_v61, %v1959_v58  ;;  %v1961_v1 = vpop.f32.mrf.mxu0 }
 0x122   :  { %v1962_v3 = vadd.f32 %v1961_v1, %v1960_v62  ;;  %v2025_v4 = vpop.f32.mrf.mxu1 }
 0x123   :  { %2996 = vst [vmem:[#allocation12_spill] sm:$0xff] %v2880_v0  ;;  %v2026_v5 = vadd.f32 %v2025_v4, %v2024_v63  ;;  %v2043_v6 = vpop.f32.mrf.mxu0 }
 0x124   :  { %v2107_v7 = vpop.f32.mrf.mxu1 }
 0x125   :  { %v2882_v8 = vadd.f32 %v2026_v5, %v1962_v3  ;;  %v2044_v10 = vpop.f32.mrf.mxu0 }
 0x126   :  { %v2045_v11 = vadd.f32 %v2044_v10, %v2043_v6  ;;  %v2108_v12 = vpop.f32.mrf.mxu1 }
 0x127   :  { %2997 = vst [vmem:[#allocation13_spill] sm:$0xff] %v2882_v8  ;;  %v2109_v13 = vadd.f32 %v2108_v12, %v2107_v7  ;;  %v2046_v14 = vpop.f32.mrf.mxu0 }
 0x128   :  { %v1268_v15 = vadd.f32 %v2045_v11, %v2852_v24  ;;  %v2110_v17 = vpop.f32.mrf.mxu1 }
 0x129   :  { %v2047_v18 = vpop.f32.mrf.mxu0 }
 0x12a   :  { %v2111_v19 = vpop.f32.mrf.mxu1  ;;  %v2885_v20 = vadd.f32 %v2109_v13, %v1268_v15  ;;  %v2048_v0 = vadd.f32 %v2047_v18, %v2046_v14 }
 0x12b   :  { %v2049_v21 = vpop.f32.mrf.mxu0  ;;  %v2112_v23 = vadd.f32 %v2111_v19, %v2110_v17 }
 0x12c   :  { %2998 = vst [vmem:[#allocation14_spill] sm:$0xff] %v2885_v20  ;;  %v2113_v22 = vpop.f32.mrf.mxu1 }
 0x12d   :  { %v2050_v25 = vpop.f32.mrf.mxu0 }
 0x12e   :  { %v2114_v26 = vpop.f32.mrf.mxu1 }
 0x12f   :  { %v2052_v27 = vpop.f32.mrf.mxu0  ;;  %v2115_v2 = vadd.f32 %v2114_v26, %v2113_v22 }
 0x130   :  { %v2116_v28 = vpop.f32.mrf.mxu1 }
 0x131   :  { %v2053_v29 = vpop.f32.mrf.mxu0 }
 0x132   :  { %v2117_v30 = vpop.f32.mrf.mxu1  ;;  %v2054_v59 = vadd.f32 %v2053_v29, %v2052_v27  ;;  %v3007_v27 = vld [vmem:[#allocation2_spill] sm:$0xff] }
 0x133   :  { %v2055_v33 = vpop.f32.mrf.mxu0  ;;  %v2118_v14 = vadd.f32 %v2117_v30, %v2116_v28  ;;  %v3011_v30 = vld [vmem:[#allocation7_spill] sm:$0xff] }
 0x134   :  { %v2119_v34 = vpop.f32.mrf.mxu1 }
 0x135   :  { %v2056_v35 = vpop.f32.mrf.mxu0 }
 0x136   :  { %v2120_v36 = vpop.f32.mrf.mxu1  ;;  %v2057_v40 = vadd.f32 %v2056_v35, %v2055_v33  ;;  %v3008_v35 = vld [vmem:[#allocation4_spill] sm:$0xff] }
 0x137   :  { %v2058_v37 = vpop.f32.mrf.mxu0  ;;  %v2121_v17 = vadd.f32 %v2120_v36, %v2119_v34  ;;  %v3013_v34 = vld [vmem:[#allocation9_spill] sm:$0xff] }
 0x138   :  { %v2887_v39 = vpop.f32.mrf.mxu1  ;;  %v1284_v29 = vadd.f32 %v2057_v40, %v3007_v27 }
 0x139   :  { %2999 = vst [vmem:[#allocation15_spill] sm:$0xff] %v2887_v39  ;;  %v2059_v24 = vpop.f32.mrf.mxu0 }
 0x13a   :  { %v2889_v41 = vpop.f32.mrf.mxu1  ;;  %v2060_v19 = vadd.f32 %v2059_v24, %v2058_v37 }
 0x13b   :  { %3000 = vst [vmem:[#allocation16_spill] sm:$0xff] %v2889_v41  ;;  %v2061_v42 = vpop.f32.mrf.mxu0  ;;  %v2051_v41 = vadd.f32 %v2050_v25, %v2049_v21  ;;  %v1279_v25 = vadd.f32 %v2054_v59, %v2858_v45  ;;  %v3012_v45 = vld [vmem:[#allocation8_spill] sm:$0xff] }
 0x13c   :  { %v2125_v43 = vpop.f32.mrf.mxu1 }
 0x13d   :  { %v2062_v44 = vpop.f32.mrf.mxu0 }
 0x13e   :  { %v2126_v46 = vpop.f32.mrf.mxu1  ;;  %v2063_v16 = vadd.f32 %v2062_v44, %v2061_v42 }
 0x13f   :  { %v2064_v47 = vpop.f32.mrf.mxu0 }
 0x140   :  { %v2128_v49 = vpop.f32.mrf.mxu1  ;;  %v1292_v42 = vadd.f32 %v2063_v16, %v3008_v35 }
 0x141   :  { %v2065_v50 = vpop.f32.mrf.mxu0 }
 0x142   :  { %v2129_v51 = vpop.f32.mrf.mxu1 }
 0x143   :  { %v2067_v53 = vpop.f32.mrf.mxu0  ;;  %v2130_v26 = vadd.f32 %v2129_v51, %v2128_v49  ;;  %v3014_v49 = vld [vmem:[#allocation3_spill] sm:$0xff] }
 0x144   :  { %v2131_v54 = vpop.f32.mrf.mxu1  ;;  %v1287_v51 = vadd.f32 %v2060_v19, %v3014_v49 }
 0x145   :  { %v2068_v55 = vpop.f32.mrf.mxu0 }
 0x146   :  { %v2132_v57 = vpop.f32.mrf.mxu1 }
 0x147   :  { %v2070_v58 = vpop.f32.mrf.mxu0  ;;  %v2133_v28 = vadd.f32 %v2132_v57, %v2131_v54 }
 0x148   :  { %v2134_v60 = vpop.f32.mrf.mxu1 }
 0x149   :  { %v2071_v61 = vpop.f32.mrf.mxu0 }
 0x14a   :  { %v2135_v62 = vpop.f32.mrf.mxu1  ;;  %v2072_v52 = vadd.f32 %v2071_v61, %v2070_v58  ;;  %v3015_v58 = vld [vmem:[#allocation15_spill] sm:$0xff] }
 0x14b   :  { %v2073_v63 = vpop.f32.mrf.mxu0 }
 0x14c   :  { %v2137_v1 = vpop.f32.mrf.mxu1 }
 0x14d   :  { %v2074_v3 = vpop.f32.mrf.mxu0 }
 0x14e   :  { %v2138_v4 = vpop.f32.mrf.mxu1  ;;  %v2075_v18 = vadd.f32 %v2074_v3, %v2073_v63 }
 0x14f   :  { %v2076_v5 = vpop.f32.mrf.mxu0  ;;  %v2139_v40 = vadd.f32 %v2138_v4, %v2137_v1 }
 0x150   :  { %v2140_v6 = vpop.f32.mrf.mxu1  ;;  %v1308_v59 = vadd.f32 %v2075_v18, %v3012_v45 }
 0x151   :  { %v2077_v7 = vpop.f32.mrf.mxu0 }
 0x152   :  { %v2141_v10 = vpop.f32.mrf.mxu1 }
 0x153   :  { %v2079_v11 = vpop.f32.mrf.mxu0  ;;  %v2142_v37 = vadd.f32 %v2141_v10, %v2140_v6 }
 0x154   :  { %v2891_v12 = vpop.f32.mrf.mxu1 }
 0x155   :  { %3001 = vst [vmem:[#allocation17_spill] sm:$0xff] %v2891_v12  ;;  %v2080_v13 = vpop.f32.mrf.mxu0  ;;  %v2066_v12 = vadd.f32 %v2065_v50, %v2064_v47  ;;  %v3010_v47 = vld [vmem:[#allocation6_spill] sm:$0xff]  ;;  %v2136_v50 = vadd.f32 %v2135_v62, %v2134_v60  ;;  %v1381_v60 = vadd.f32 %v2121_v17, %v1284_v29 }
 0x156   :  { %v2893_v15 = vpop.f32.mrf.mxu1 }
 0x157   :  { %3002 = vst [vmem:[#allocation18_spill] sm:$0xff] %v2893_v15  ;;  %v2895_v56 = vpop.f32.mrf.mxu0  ;;  %v1271_v15 = vadd.f32 %v2048_v0, %v2854_v31  ;;  %v2127_v31 = vadd.f32 %v2126_v46, %v2125_v43  ;;  %v3009_v0 = vld [vmem:[#allocation5_spill] sm:$0xff]  ;;  %v1376_v46 = vadd.f32 %v2118_v14, %v1279_v25 }
 0x158   :  { %3003 = vst [vmem:[#allocation19_spill] sm:$0xff] %v2895_v56  ;;  %v2897_v48 = vpop.f32.mrf.mxu1  ;;  %v2069_v56 = vadd.f32 %v2068_v55, %v2067_v53  ;;  %v1295_v22 = vadd.f32 %v2066_v12, %v3009_v0  ;;  %v3019_v12 = vld [vmem:[#allocation14_spill] sm:$0xff]  ;;  %v3023_v0 = vld [vmem:[#allocation13_spill] sm:$0xff] }
 0x159   :  { %3004 = vst [vmem:[#allocation20_spill] sm:$0xff] %v2897_v48  ;;  %v2899_v8 = vpop.f32.mrf.mxu0  ;;  %v1368_v55 = vadd.f32 %v2112_v23, %v1271_v15 }
 0x15a   :  { %3005 = vst [vmem:[#allocation21_spill] sm:$0xff] %v2899_v8  ;;  %v2901_v20 = vpop.f32.mrf.mxu1  ;;  %v1276_v8 = vadd.f32 %v2051_v41, %v2856_v38  ;;  %v1300_v38 = vadd.f32 %v2069_v56, %v3010_v47  ;;  %v1303_v41 = vadd.f32 %v2072_v52, %v3011_v30  ;;  %v3016_v56 = vld [vmem:[#allocation16_spill] sm:$0xff]  ;;  %v1389_v52 = vadd.f32 %v2127_v31, %v1292_v42 }
 0x15b   :  { %3006 = vst [vmem:[#allocation22_spill] sm:$0xff] %v2901_v20  ;;  %v2085_v39 = vpop.f32.mrf.mxu0  ;;  %v2078_v20 = vadd.f32 %v2077_v7, %v2076_v5  ;;  %v2124_v54 = vadd.f32 %v3016_v56, %v3015_v58  ;;  %v1392_v3 = vadd.f32 %v2130_v26, %v1295_v22  ;;  %v1405_v5 = vadd.f32 %v2139_v40, %v1308_v59 }
 0x15c   :  { %v2149_v32 = vpop.f32.mrf.mxu1  ;;  %v1373_v16 = vadd.f32 %v2115_v2, %v1276_v8  ;;  %v1397_v62 = vadd.f32 %v2133_v28, %v1300_v38  ;;  %v1400_v1 = vadd.f32 %v2136_v50, %v1303_v41  ;;  %v3017_v6 = vld [vmem:[#allocation17_spill] sm:$0xff]  ;;  %v3024_v41 = vld [vmem:[#allocation10_spill] sm:$0xff] }
 0x15d   :  { %v2086_v9 = vpop.f32.mrf.mxu0  ;;  %v1311_v36 = vadd.f32 %v2078_v20, %v3013_v34  ;;  %v2081_v20 = vadd.f32 %v2080_v13, %v2079_v11  ;;  %v3022_v13 = vld [vmem:[#allocation12_spill] sm:$0xff] }
 0x15e   :  { %v2150_v48 = vpop.f32.mrf.mxu1  ;;  %v2087_v61 = vadd.f32 %v2086_v9, %v2085_v39  ;;  %v3018_v23 = vld [vmem:[#allocation18_spill] sm:$0xff] }
 0x15f   :  { %v2088_v21 = vpop.f32.mrf.mxu0  ;;  %v1408_v8 = vadd.f32 %v2142_v37, %v1311_v36  ;;  %v2145_v7 = vadd.f32 %v3018_v23, %v3017_v6  ;;  %v3020_v25 = vld [vmem:[#allocation19_spill] sm:$0xff]  ;;  %v2151_v39 = vadd.f32 %v2150_v48, %v2149_v32  ;;  %v1316_v50 = vadd.f32 %v2081_v20, %v3024_v41 }
 0x160   :  { %v2152_v33 = vpop.f32.mrf.mxu1  ;;  %v3026_v59 = vld [vmem:[#allocation20_spill] sm:$0xff] }
 0x161   :  { %v2089_v44 = vpop.f32.mrf.mxu0  ;;  %v3021_v27 = vld [vmem:[#allocation21_spill] sm:$0xff] }
 0x162   :  { %v2153_v53 = vpop.f32.mrf.mxu1  ;;  %v2090_v4 = vadd.f32 %v2089_v44, %v2088_v21  ;;  %v2084_v9 = vadd.f32 %v3021_v27, %v3020_v25  ;;  %v1324_v21 = vadd.f32 %v2087_v61, %v3022_v13  ;;  %v3027_v40 = vld [vmem:[#allocation22_spill] sm:$0xff]  ;;  %v1384_v61 = vadd.f32 %v2124_v54, %v1287_v51 }
 0x163   :  { %v2189_v24 = vpop.f32.mrf.mxu0  ;;  %v2154_v19 = vadd.f32 %v2153_v53, %v2152_v33  ;;  %v3025_v53 = vld [vmem:[#allocation11_spill] sm:$0xff]  ;;  %v2148_v34 = vadd.f32 %v3027_v40, %v3026_v59 }
 0x164   :  { %v2197_v43 = vpop.f32.mrf.mxu1  ;;  %v1470_v10 = vadd.f32 %v2189_v24, %v1373_v16  ;;  %v1327_v22 = vadd.f32 %v2090_v4, %v3023_v0  ;;  %v1319_v45 = vadd.f32 %v2084_v9, %v3025_v53  ;;  %v1421_v58 = vadd.f32 %v2151_v39, %v1324_v21 }
 0x165   :  { %v1461_v57 = vpop.f32.mrf.mxu0  ;;  %v2921_v29 = vadd.f32 %v2197_v43, %v1405_v5 }
 0x166   :  { %v1493_v63 = vpop.f32.mrf.mxu1  ;;  %v1462_v15 = vadd.f32 %v1461_v57, %v3019_v12  ;;  %v1548_v24 = vmul.f32 %v1470_v10, %v1470_v10  ;;  %v1424_v57 = vadd.f32 %v2154_v19, %v1327_v22 }
 0x167   :  { %v2190_v2 = vpop.f32.mrf.mxu0  ;;  %v2927_v26 = vadd.f32 %v1493_v63, %v1397_v62 }
 0x168   :  { %v1473_v14 = vadd.f32 %v2190_v2, %v1376_v46  ;;  %v2198_v18 = vpop.f32.mrf.mxu1  ;;  %v1546_v48 = vmul.f32 %v1462_v15, %v1462_v15  ;;  %v1413_v2 = vadd.f32 %v2145_v7, %v1316_v50 }
 0x169   :  { %v2923_v17 = vadd.f32 %v2198_v18, %v1408_v8  ;;  %v1464_v11 = vpop.f32.mrf.mxu0 }
 0x16a   :  { %v1860_v35 = vpack.c.bf16 %v1473_v14, %v1470_v10  ;;  %v1465_v42 = vadd.f32 %v1464_v11, %v1368_v55  ;;  %v1496_v31 = vpop.f32.mrf.mxu1  ;;  %v1549_v49 = vmul.f32 %v1473_v14, %v1473_v14 }
 0x16b   :  { %v1880_v44 = vpack.c.bf16 %v2923_v17, %v2921_v29  ;;  %v2931_v47 = vadd.f32 %v1496_v31, %v1400_v1  ;;  %v2193_v32 = vpop.f32.mrf.mxu0 }
 0x16c   :  { %1892 = vst [vmem:[%s2983_s2 + $0x8] sm:$0xff] %v1860_v35   ;;  %v1524_v38 = vadd.f32 %v1465_v42, %v1462_v15  ;;  %v1547_v33 = vmul.f32 %v1465_v42, %v1465_v42  ;;  %v1855_v28 = vpack.c.bf16 %v1465_v42, %v1462_v15  ;;  %v2201_v30 = vpop.f32.mrf.mxu1  ;;  %v1486_v63 = vadd.f32 %v2193_v32, %v1389_v52 }
 0x16d   :  { %1896 = vst [vmem:[%s2983_s2 + $0x28] sm:$0xff] %v1880_v44   ;;  %v1875_v36 = vpack.c.bf16 %v2931_v47, %v2927_v26  ;;  %v1477_v37 = vpop.f32.mrf.mxu0  ;;  %v1518_v5 = vadd.f32 %v2201_v30, %v1421_v58  ;;  %v1554_v42 = vmul.f32 %v2927_v26, %v2927_v26  ;;  %v1555_v22 = vmul.f32 %v2931_v47, %v2931_v47 }
 0x16e   :  { %v1525_v16 = vadd.f32 %v1524_v38, %v1470_v10  ;;  %v1562_v43 = vadd.f32 %v1547_v33, %v1546_v48  ;;  %1856 = vst [vmem:[%s2983_s2] sm:$0xff] %v1855_v28   ;;  %v1478_v46 = vadd.f32 %v1477_v37, %v1381_v60  ;;  %v1509_v55 = vpop.f32.mrf.mxu1  ;;  %v1416_v60 = vadd.f32 %v2148_v34, %v1319_v45 }
 0x16f   :  { %1895 = vst [vmem:[%s2983_s2 + $0x20] sm:$0xff] %v1875_v36   ;;  %v2194_v56 = vpop.f32.mrf.mxu0  ;;  %v1510_v51 = vadd.f32 %v1509_v55, %v1413_v2  ;;  %v1556_v48 = vmul.f32 %v2921_v29, %v2921_v29  ;;  %v1557_v28 = vmul.f32 %v2923_v17, %v2923_v17  ;;  %v1560_v34 = vmul.f32 %v1518_v5, %v1518_v5 }
 0x170   :  { %v1563_v62 = vadd.f32 %v1562_v43, %v1548_v24  ;;  %v1526_v1 = vadd.f32 %v1525_v16, %v1473_v14  ;;  %v1489_v20 = vadd.f32 %v2194_v56, %v1392_v3  ;;  %v2202_v4 = vpop.f32.mrf.mxu1  ;;  %v1550_v10 = vmul.f32 %v1478_v46, %v1478_v46 }
 0x171   :  { %v1521_v8 = vadd.f32 %v2202_v4, %v1424_v57  ;;  %v1480_v6 = vpop.f32.mrf.mxu0  ;;  %v1552_v14 = vmul.f32 %v1486_v63, %v1486_v63 }
 0x172   :  { %v1527_v23 = vadd.f32 %v1526_v1, %v1478_v46  ;;  %v1564_v12 = vadd.f32 %v1563_v62, %v1549_v49  ;;  %v1870_v15 = vpack.c.bf16 %v1489_v20, %v1486_v63  ;;  %v1512_v18 = vpop.f32.mrf.mxu1  ;;  %v1481_v27 = vadd.f32 %v1480_v6, %v1384_v61 }
 0x173   :  { %v1890_v25 = vpack.c.bf16 %v1521_v8, %v1518_v5  ;;  %v1513_v9 = vadd.f32 %v1512_v18, %v1416_v60  ;;  %v1553_v21 = vmul.f32 %v1489_v20, %v1489_v20  ;;  %v1561_v37 = vmul.f32 %v1521_v8, %v1521_v8 }
 0x174   :  { %v1565_v39 = vadd.f32 %v1564_v12, %v1550_v10  ;;  %1894 = vst [vmem:[%s2983_s2 + $0x18] sm:$0xff] %v1870_v15   ;;  %v1528_v54 = vadd.f32 %v1527_v23, %v1481_v27  ;;  %v1551_v52 = vmul.f32 %v1481_v27, %v1481_v27  ;;  %v1865_v3 = vpack.c.bf16 %v1481_v27, %v1478_v46 }
 0x175   :  { %1898 = vst [vmem:[%s2983_s2 + $0x38] sm:$0xff] %v1890_v25   ;;  %v1885_v7 = vpack.c.bf16 %v1513_v9, %v1510_v51  ;;  %v1559_v59 = vmul.f32 %v1513_v9, %v1513_v9 }
 0x176   :  { %v1529_v11 = vadd.f32 %v1528_v54, %v1486_v63  ;;  %v1566_v13 = vadd.f32 %v1565_v39, %v1551_v52  ;;  %1893 = vst [vmem:[%s2983_s2 + $0x10] sm:$0xff] %v1865_v3  }
 0x177   :  { %1897 = vst [vmem:[%s2983_s2 + $0x30] sm:$0xff] %v1885_v7  }
 0x178   :  { %v1530_v19 = vadd.f32 %v1529_v11, %v1489_v20  ;;  %v1567_v35 = vadd.f32 %v1566_v13, %v1552_v14 }
 0x17a   :  { %v1531_v31 = vadd.f32 %v1530_v19, %v2927_v26  ;;  %v1568_v0 = vadd.f32 %v1567_v35, %v1553_v21  ;;  %v1558_v26 = vmul.f32 %v1510_v51, %v1510_v51 }
 0x17c   :  { %v1569_v44 = vadd.f32 %v1568_v0, %v1554_v42  ;;  %v1532_v32 = vadd.f32 %v1531_v31, %v2931_v47 }
 0x17e   :  { %v1533_v38 = vadd.f32 %v1532_v32, %v2921_v29  ;;  %v1570_v33 = vadd.f32 %v1569_v44, %v1555_v22 }
 0x180   :  { %v1534_v30 = vadd.f32 %v1533_v38, %v2923_v17  ;;  %v1571_v41 = vadd.f32 %v1570_v33, %v1556_v48 }
 0x182   :  { %v1535_v50 = vadd.f32 %v1534_v30, %v1510_v51  ;;  %v1572_v53 = vadd.f32 %v1571_v41, %v1557_v28 }
 0x184   :  { %v1536_v45 = vadd.f32 %v1535_v50, %v1513_v9  ;;  %v1573_v40 = vadd.f32 %v1572_v53, %v1558_v26 }
 0x186   :  { %v1537_v47 = vadd.f32 %v1536_v45, %v1518_v5  ;;  %v1574_v36 = vadd.f32 %v1573_v40, %v1559_v59 }
 0x188   :  { %v1538_v24 = vadd.f32 %v1537_v47, %v1521_v8  ;;  %v1575_v16 = vadd.f32 %v1574_v36, %v1560_v34 }
 0x18a   :  { %v1539_v29 = vrot.slane %v1538_v24, 4  ;;  %v1576_v43 = vadd.f32 %v1575_v16, %v1561_v37 }
 0x18c   :  { %v1540_v46 = vadd.f32 %v1539_v29, %v1538_v24  ;;  %v1577_v55 = vrot.slane %v1576_v43, 4 }
 0x18e   :  { %v1541_v49 = vrot.slane %v1540_v46, 2  ;;  %v1578_v58 = vadd.f32 %v1577_v55, %v1576_v43 }
 0x190   :  { %v1542_v17 = vadd.f32 %v1541_v49, %v1540_v46  ;;  %v1579_v56 = vrot.slane %v1578_v58, 2 }
 0x192   :  { %v1543_v57 = vrot.slane %v1542_v17, 1  ;;  %v1580_v61 = vadd.f32 %v1579_v56, %v1578_v58 }
 0x194   :  { %v1544_v62 = vadd.f32 %v1543_v57, %v1542_v17  ;;  %v1581_v63 = vrot.slane %v1580_v61, 1 }
 0x196   :  { %1545 = vst [vmem:[%s2984_s3] sm:$0x1] %v1544_v62  ;;  %v1582_v1 = vadd.f32 %v1581_v63, %v1580_v61 }
 0x198   :  { %1583 = vst [vmem:[%s2985_s4] sm:$0x1] %v1582_v1 }

// kernel: resnet_filter_forward.18
= control target key start
LH: loop header
LB: loop body
LE: loop exit
PB: predicated region body
PF: predicated region fallthrough
CT: control target
= control target key end

     0   :  { %s140_s0 = inlined_call_operand.vmem [shape: bf16[32,128], index: 0, kind: input, shape index: {}]   ;;  %s141_s1 = inlined_call_operand.vmem [shape: f32[1,128], index: 1, kind: input, shape index: {}]   ;;  %s142_s2 = inlined_call_operand.vmem [shape: f32[1,128], index: 2, kind: input, shape index: {}]   ;;  %s143_s3 = inlined_call_operand.vmem [shape: bf16[32,128], index: 3, kind: output, shape index: {}]  }
   0x1   :  { %v83_v0 = vld [vmem:[%s140_s0] sm:$0xff]   ;;  %v100_v4 = vld [vmem:[%s140_s0 + $0x8] sm:$0xff]  }
   0x2   :  { %v72_v1 = vld [vmem:[%s141_s1] ss:$0 sm:$0xff]  ;;  %v84_v2 = vunpack.c.l.bf16 %v83_v0  ;;  %v85_v3 = vunpack.c.h.bf16 %v83_v0  ;;  %v88_v6 = vunpack.c.l.bf16 %v100_v4  ;;  %v89_v7 = vunpack.c.h.bf16 %v100_v4 }
   0x3   :  { %v73_v5 = vld [vmem:[%s142_s2] ss:$0 sm:$0xff] }
   0x4   :  { %v29_v8 = vmul.f32 %v84_v2, %v72_v1  ;;  %v30_v9 = vmul.f32 %v85_v3, %v72_v1  ;;  %v31_v10 = vmul.f32 %v88_v6, %v72_v1  ;;  %v32_v11 = vmul.f32 %v89_v7, %v72_v1 }
   0x6   :  { %v40_v12 = vadd.f32 %v73_v5, %v29_v8  ;;  %v41_v13 = vadd.f32 %v73_v5, %v30_v9  ;;  %v42_v14 = vadd.f32 %v73_v5, %v31_v10  ;;  %v43_v15 = vadd.f32 %v73_v5, %v32_v11 }
   0x8   :  { %v44_v16 = vmax.f32 %v40_v12, 0.0  ;;  %v45_v17 = vmax.f32 %v41_v13, 0.0  ;;  %v46_v18 = vmax.f32 %v42_v14, 0.0  ;;  %v47_v19 = vmax.f32 %v43_v15, 0.0 }
   0xa   :  { %v93_v20 = vpack.c.bf16 %v45_v17, %v44_v16  ;;  %v98_v21 = vpack.c.bf16 %v47_v19, %v46_v18 }
   0xc   :  { %94 = vst [vmem:[%s143_s3] sm:$0xff] %v93_v20   ;;  %101 = vst [vmem:[%s143_s3 + $0x8] sm:$0xff] %v98_v21  }

// kernel: resnet_filter_forward.17
= control target key start
LH: loop header
LB: loop body
LE: loop exit
PB: predicated region body
PF: predicated region fallthrough
CT: control target
= control target key end

     0   :  { %s1660_s1 = inlined_call_operand.vmem [shape: bf16[1152,128], index: 1, kind: input, shape index: {}]   ;;  %s1661_s0 = inlined_call_operand.vmem [shape: bf16[32,1152], index: 0, kind: input, shape index: {}]   ;;  %s1662_s2 = inlined_call_operand.vmem [shape: bf16[32,128], index: 2, kind: output, shape index: {0}]   ;;  %s1663_s3 = inlined_call_operand.vmem [shape: f32[1,1,128], index: 3, kind: output, shape index: {1}]   ;;  %s1664_s4 = inlined_call_operand.vmem [shape: f32[1,1,128], index: 4, kind: output, shape index: {2}]  }
   0x1   :  { %v1255_v0 = vld [vmem:[%s1660_s1 + $0x78] sm:$0xff]   ;;  %v1259_v4 = vld [vmem:[%s1660_s1 + $0x70] sm:$0xff]   ;;  %v1263_v8 = vld [vmem:[%s1660_s1 + $0x68] sm:$0xff]  }
   0x2   :  { %v1256_v1 = vld [vmem:[%s1660_s1 + $0xf8] sm:$0xff]   ;;  %1113 = vmatprep.subr.bf16.mxu0 %v1255_v0  ;;  %v1260_v5 = vld [vmem:[%s1660_s1 + $0xf0] sm:$0xff]   ;;  %v1264_v9 = vld [vmem:[%s1660_s1 + $0xe8] sm:$0xff]  }
   0x3   :  { %v1257_v2 = vld [vmem:[%s1660_s1 + $0x38] sm:$0xff]   ;;  %1141 = vmatprep.subr.bf16.mxu1 %v1256_v1  ;;  %v1261_v6 = vld [vmem:[%s1660_s1 + $0x30] sm:$0xff]   ;;  %v1265_v10 = vld [vmem:[%s1660_s1 + $0x28] sm:$0xff]  }
   0x4   :  { %v1258_v3 = vld [vmem:[%s1660_s1 + $0xb8] sm:$0xff]   ;;  %1114 = vmatpush3.bf16.msra.mxu0 %v1257_v2  ;;  %v1262_v7 = vld [vmem:[%s1660_s1 + $0xb0] sm:$0xff]   ;;  %v1266_v11 = vld [vmem:[%s1660_s1 + $0xa8] sm:$0xff]  }
   0x5   :  { %1142 = vmatpush3.bf16.msra.mxu1 %v1258_v3  ;;  %1115 = vmatprep.subr.bf16.mxu0 %v1259_v4  ;;  %v1267_v12 = vld [vmem:[%s1660_s1 + $0x60] sm:$0xff]   ;;  %v1271_v16 = vld [vmem:[%s1660_s1 + $0x58] sm:$0xff]   ;;  %v1275_v20 = vld [vmem:[%s1660_s1 + $0x50] sm:$0xff]  }
   0x6   :  { %1143 = vmatprep.subr.bf16.mxu1 %v1260_v5  ;;  %v1268_v13 = vld [vmem:[%s1660_s1 + $0xe0] sm:$0xff]   ;;  %v1272_v17 = vld [vmem:[%s1660_s1 + $0xd8] sm:$0xff]   ;;  %v1276_v21 = vld [vmem:[%s1660_s1 + $0xd0] sm:$0xff]  }
   0x7   :  { %v1269_v14 = vld [vmem:[%s1660_s1 + $0x20] sm:$0xff]   ;;  %v1273_v18 = vld [vmem:[%s1660_s1 + $0x18] sm:$0xff]   ;;  %v1277_v22 = vld [vmem:[%s1660_s1 + $0x10] sm:$0xff]  }
   0x8   :  { %1116 = vmatpush3.bf16.msra.mxu0 %v1261_v6  ;;  %v1270_v15 = vld [vmem:[%s1660_s1 + $0xa0] sm:$0xff]   ;;  %v1274_v19 = vld [vmem:[%s1660_s1 + $0x98] sm:$0xff]   ;;  %v1278_v23 = vld [vmem:[%s1660_s1 + $0x90] sm:$0xff]  }
   0x9   :  { %1144 = vmatpush3.bf16.msra.mxu1 %v1262_v7  ;;  %1117 = vmatprep.subr.bf16.mxu0 %v1263_v8  ;;  %v1279_v24 = vld [vmem:[%s1660_s1 + $0x48] sm:$0xff]   ;;  %v1283_v28 = vld [vmem:[%s1660_s1 + $0x40] sm:$0xff]   ;;  %v1293_v36 = vld [vmem:[%s1660_s1 + $0x178] sm:$0xff]  }
   0xa   :  { %1145 = vmatprep.subr.bf16.mxu1 %v1264_v9  ;;  %v1280_v25 = vld [vmem:[%s1660_s1 + $0xc8] sm:$0xff]   ;;  %v1284_v29 = vld [vmem:[%s1660_s1 + $0xc0] sm:$0xff]   ;;  %v1294_v37 = vld [vmem:[%s1660_s1 + $0x138] sm:$0xff]  }
   0xb   :  { %v1281_v26 = vld [vmem:[%s1660_s1 + $0x8] sm:$0xff]   ;;  %v1285_v30 = vld [vmem:[%s1660_s1] sm:$0xff]   ;;  %v1295_v38 = vld [vmem:[%s1660_s1 + $0x1f8] sm:$0xff]  }
   0xc   :  { %1118 = vmatpush3.bf16.msra.mxu0 %v1265_v10  ;;  %v1282_v27 = vld [vmem:[%s1660_s1 + $0x88] sm:$0xff]   ;;  %v1286_v31 = vld [vmem:[%s1660_s1 + $0x80] sm:$0xff]   ;;  %v1296_v39 = vld [vmem:[%s1660_s1 + $0x1b8] sm:$0xff]  }
   0xd   :  { %1146 = vmatpush3.bf16.msra.mxu1 %v1266_v11  ;;  %1119 = vmatprep.subr.bf16.mxu0 %v1267_v12  ;;  %v1287_v32 = vld [vmem:[%s1661_s0] ss:$36 sps:$4 sm:$0xff]   ;;  %v1290_v34 = vld [vmem:[%s1661_s0 + $0x8] ss:$36 sps:$4 sm:$0xff]   ;;  %v1297_v40 = vld [vmem:[%s1660_s1 + $0x170] sm:$0xff]  }
   0xe   :  { %1147 = vmatprep.subr.bf16.mxu1 %v1268_v13  ;;  %v1289_v33 = vld [vmem:[%s1661_s0 + $0x4] ss:$36 sps:$4 sm:$0xff]   ;;  %v1292_v35 = vld [vmem:[%s1661_s0 + $0xc] ss:$36 sps:$4 sm:$0xff]   ;;  %v1309_v52 = vld [vmem:[%s1660_s1 + $0x158] sm:$0xff]  }
   0xf   :  { %735 = vmatprep.mubr.bf16.mxu0 %v1289_v33  ;;  %784 = vmatprep.mubr.bf16.mxu1 %v1292_v35  ;;  %v1298_v41 = vld [vmem:[%s1660_s1 + $0x130] sm:$0xff]   ;;  %v1301_v44 = vld [vmem:[%s1660_s1 + $0x168] sm:$0xff]   ;;  %v1305_v48 = vld [vmem:[%s1660_s1 + $0x160] sm:$0xff]  }
  0x10   :  { %1120 = vmatpush3.bf16.msra.mxu0 %v1269_v14  ;;  %v1299_v42 = vld [vmem:[%s1660_s1 + $0x1f0] sm:$0xff]   ;;  %v1302_v45 = vld [vmem:[%s1660_s1 + $0x128] sm:$0xff]   ;;  %v1306_v49 = vld [vmem:[%s1660_s1 + $0x120] sm:$0xff]  }
  0x11   :  { %1148 = vmatpush3.bf16.msra.mxu1 %v1270_v15  ;;  %1121 = vmatprep.subr.bf16.mxu0 %v1271_v16  ;;  %v1300_v43 = vld [vmem:[%s1660_s1 + $0x1b0] sm:$0xff]   ;;  %v1303_v46 = vld [vmem:[%s1660_s1 + $0x1e8] sm:$0xff]   ;;  %v1307_v50 = vld [vmem:[%s1660_s1 + $0x1e0] sm:$0xff]  }
  0x12   :  { %1149 = vmatprep.subr.bf16.mxu1 %v1272_v17  ;;  %v1304_v47 = vld [vmem:[%s1660_s1 + $0x1a8] sm:$0xff]   ;;  %v1308_v51 = vld [vmem:[%s1660_s1 + $0x1a0] sm:$0xff]   ;;  %v1310_v53 = vld [vmem:[%s1660_s1 + $0x118] sm:$0xff]  }
  0x13   :  { %v1311_v54 = vld [vmem:[%s1661_s0 + $0x4c] ss:$36 sps:$4 sm:$0xff]   ;;  %v1313_v55 = vld [vmem:[%s1661_s0 + $0x54] ss:$36 sps:$4 sm:$0xff]   ;;  %v1327_v4 = vld [vmem:[%s1660_s1 + $0x140] sm:$0xff]  }
  0x14   :  { %1122 = vmatpush3.bf16.msra.mxu0 %v1273_v18  ;;  %v1315_v56 = vld [vmem:[%s1660_s1 + $0x1d8] sm:$0xff]   ;;  %v1316_v57 = vld [vmem:[%s1661_s0 + $0x48] ss:$36 sps:$4 sm:$0xff]   ;;  %v1317_v58 = vld [vmem:[%s1661_s0 + $0x50] ss:$36 sps:$4 sm:$0xff]  }
  0x15   :  { %1150 = vmatpush3.bf16.msra.mxu1 %v1274_v19  ;;  %1123 = vmatprep.subr.bf16.mxu0 %v1275_v20  ;;  %v1318_v59 = vld [vmem:[%s1660_s1 + $0x198] sm:$0xff]   ;;  %v1319_v60 = vld [vmem:[%s1660_s1 + $0x150] sm:$0xff]   ;;  %v1323_v0 = vld [vmem:[%s1660_s1 + $0x148] sm:$0xff]  }
  0x16   :  { %1151 = vmatprep.subr.bf16.mxu1 %v1276_v21  ;;  %v1320_v61 = vld [vmem:[%s1660_s1 + $0x110] sm:$0xff]   ;;  %v1324_v1 = vld [vmem:[%s1660_s1 + $0x108] sm:$0xff]   ;;  %v1328_v5 = vld [vmem:[%s1660_s1 + $0x100] sm:$0xff]  }
  0x17   :  { %v1321_v62 = vld [vmem:[%s1660_s1 + $0x1d0] sm:$0xff]   ;;  %v1325_v2 = vld [vmem:[%s1660_s1 + $0x1c8] sm:$0xff]   ;;  %v1329_v6 = vld [vmem:[%s1660_s1 + $0x1c0] sm:$0xff]  }
  0x18   :  { %1124 = vmatpush3.bf16.msra.mxu0 %v1277_v22  ;;  %v1322_v63 = vld [vmem:[%s1660_s1 + $0x190] sm:$0xff]   ;;  %v1326_v3 = vld [vmem:[%s1660_s1 + $0x188] sm:$0xff]   ;;  %v1333_v9 = vld [vmem:[%s1660_s1 + $0x180] sm:$0xff]  }
  0x19   :  { %1152 = vmatpush3.bf16.msra.mxu1 %v1278_v23  ;;  %1125 = vmatprep.subr.bf16.mxu0 %v1279_v24  ;;  %v1330_v7 = vld [vmem:[%s1661_s0 + $0x10] ss:$36 sps:$4 sm:$0xff]   ;;  %v1334_v10 = vld [vmem:[%s1660_s1 + $0x238] sm:$0xff]   ;;  %v1342_v16 = vld [vmem:[%s1660_s1 + $0x228] sm:$0xff]  }
  0x1a   :  { %1153 = vmatprep.subr.bf16.mxu1 %v1280_v25  ;;  %v1332_v8 = vld [vmem:[%s1661_s0 + $0x14] ss:$36 sps:$4 sm:$0xff]   ;;  %v1337_v12 = vld [vmem:[%s1661_s0 + $0x1c] ss:$36 sps:$4 sm:$0xff]   ;;  %v1343_v17 = vld [vmem:[%s1661_s0 + $0x64] ss:$36 sps:$4 sm:$0xff]  }
  0x1b   :  { %v1335_v11 = vld [vmem:[%s1661_s0 + $0x18] ss:$36 sps:$4 sm:$0xff]   ;;  %v1338_v13 = vld [vmem:[%s1660_s1 + $0x230] sm:$0xff]   ;;  %v1345_v18 = vld [vmem:[%s1661_s0 + $0x60] ss:$36 sps:$4 sm:$0xff]  }
  0x1c   :  { %1126 = vmatpush3.bf16.msra.mxu0 %v1281_v26  ;;  %v1339_v14 = vld [vmem:[%s1661_s0 + $0x5c] ss:$36 sps:$4 sm:$0xff]   ;;  %v1348_v22 = vld [vmem:[%s1660_s1 + $0x210] sm:$0xff]   ;;  %v1349_v23 = vld [vmem:[%s1660_s1 + $0x208] sm:$0xff]  }
  0x1d   :  { %1154 = vmatpush3.bf16.msra.mxu1 %v1282_v27  ;;  %1127 = vmatprep.subr.bf16.mxu0 %v1283_v28  ;;  %v1341_v15 = vld [vmem:[%s1661_s0 + $0x58] ss:$36 sps:$4 sm:$0xff]   ;;  %v1346_v19 = vld [vmem:[%s1660_s1 + $0x220] sm:$0xff]   ;;  %v1352_v25 = vld [vmem:[%s1661_s0 + $0x68] ss:$36 sps:$4 sm:$0xff]  }
  0x1e   :  { %1155 = vmatprep.subr.bf16.mxu1 %v1284_v29  ;;  %v1347_v20 = vld [vmem:[%s1660_s1 + $0x218] sm:$0xff]   ;;  %v1351_v21 = vld [vmem:[%s1661_s0 + $0x20] ss:$36 sps:$4 sm:$0xff]  }
  0x1f   :  { %v1350_v24 = vld [vmem:[%s1660_s1 + $0x200] sm:$0xff]  }
  0x20   :  { %1128 = vmatpush3.bf16.msra.mxu0 %v1285_v30 }
  0x21   :  { %1156 = vmatpush3.bf16.msra.mxu1 %v1286_v31  ;;  %1169 = vmatprep.subr.bf16.mxu0 %v1293_v36 }
  0x22   :  { %1197 = vmatprep.subr.bf16.mxu1 %v1295_v38 }
  0x23   :  { %736 = vmatmul.mubr.bf16.vlgmr.msra.gmra.mxu0 %v1287_v32 }
  0x24   :  { %785 = vmatmul.mubr.bf16.vlgmr.msra.gmra.mxu1 %v1290_v34  ;;  %1170 = vmatpush3.bf16.msra.mxu0 %v1294_v37 }
  0x25   :  { %1198 = vmatpush3.bf16.msra.mxu1 %v1296_v39  ;;  %1171 = vmatprep.subr.bf16.mxu0 %v1297_v40 }
  0x26   :  { %1199 = vmatprep.subr.bf16.mxu1 %v1299_v42  ;;  %743 = vmatprep.mubr.bf16.mxu0 %v1311_v54 }
  0x27   :  { %792 = vmatprep.mubr.bf16.mxu1 %v1313_v55 }
  0x28   :  { %1172 = vmatpush3.bf16.msra.mxu0 %v1298_v41 }
  0x29   :  { %1200 = vmatpush3.bf16.msra.mxu1 %v1300_v43  ;;  %1173 = vmatprep.subr.bf16.mxu0 %v1301_v44 }
  0x2a   :  { %1201 = vmatprep.subr.bf16.mxu1 %v1303_v46 }
  0x2b   :  { %744 = vmatmul.mubr.bf16.gmra.mxu0 %v1316_v57 }
  0x2c   :  { %1174 = vmatpush3.bf16.msra.mxu0 %v1302_v45  ;;  %793 = vmatmul.mubr.bf16.gmra.mxu1 %v1317_v58 }
  0x2d   :  { %1202 = vmatpush3.bf16.msra.mxu1 %v1304_v47  ;;  %1175 = vmatprep.subr.bf16.mxu0 %v1305_v48 }
  0x2e   :  { %1203 = vmatprep.subr.bf16.mxu1 %v1307_v50  ;;  %833 = vmatprep.mubr.bf16.mxu0 %v1332_v8 }
  0x2f   :  { %882 = vmatprep.mubr.bf16.mxu1 %v1337_v12 }
  0x30   :  { %1176 = vmatpush3.bf16.msra.mxu0 %v1306_v49 }
  0x31   :  { %1204 = vmatpush3.bf16.msra.mxu1 %v1308_v51  ;;  %1177 = vmatprep.subr.bf16.mxu0 %v1309_v52 }
  0x32   :  { %1205 = vmatprep.subr.bf16.mxu1 %v1315_v56 }
  0x34   :  { %1178 = vmatpush3.bf16.msra.mxu0 %v1310_v53 }
  0x35   :  { %1206 = vmatpush3.bf16.msra.mxu1 %v1318_v59  ;;  %1179 = vmatprep.subr.bf16.mxu0 %v1319_v60 }
  0x36   :  { %1207 = vmatprep.subr.bf16.mxu1 %v1321_v62 }
  0x38   :  { %1180 = vmatpush3.bf16.msra.mxu0 %v1320_v61 }
  0x39   :  { %1208 = vmatpush3.bf16.msra.mxu1 %v1322_v63  ;;  %1181 = vmatprep.subr.bf16.mxu0 %v1323_v0 }
  0x3a   :  { %1209 = vmatprep.subr.bf16.mxu1 %v1325_v2 }
  0x3c   :  { %1182 = vmatpush3.bf16.msra.mxu0 %v1324_v1 }
  0x3d   :  { %1210 = vmatpush3.bf16.msra.mxu1 %v1326_v3  ;;  %1183 = vmatprep.subr.bf16.mxu0 %v1327_v4 }
  0x3e   :  { %1211 = vmatprep.subr.bf16.mxu1 %v1329_v6 }
  0x40   :  { %1184 = vmatpush3.bf16.msra.mxu0 %v1328_v5 }
  0x41   :  { %1212 = vmatpush3.bf16.msra.mxu1 %v1333_v9  ;;  %1235 = vmatprep.subr.bf16.mxu0 %v1334_v10 }
  0x43   :  { %834 = vmatmul.mubr.bf16.vlgmr.msra.gmra.mxu0 %v1330_v7 }
  0x44   :  { %1236 = vmatpush3.bf16.msra.mxu0 %v1334_v10  ;;  %883 = vmatmul.mubr.bf16.vlgmr.msra.gmra.mxu1 %v1335_v11 }
  0x45   :  { %1237 = vmatprep.subr.bf16.mxu0 %v1338_v13  ;;  %841 = vmatprep.mubr.bf16.mxu0 %v1339_v14 }
  0x46   :  { %890 = vmatprep.mubr.bf16.mxu1 %v1343_v17 }
  0x48   :  { %1238 = vmatpush3.bf16.msra.mxu0 %v1338_v13 }
  0x49   :  { %1239 = vmatprep.subr.bf16.mxu0 %v1342_v16 }
  0x4b   :  { %842 = vmatmul.mubr.bf16.gmra.mxu0 %v1341_v15 }
  0x4c   :  { %1240 = vmatpush3.bf16.msra.mxu0 %v1342_v16  ;;  %891 = vmatmul.mubr.bf16.gmra.mxu1 %v1345_v18 }
  0x4d   :  { %1241 = vmatprep.subr.bf16.mxu0 %v1346_v19  ;;  %1251 = vmatprep.mubr.bf16.mxu0 %v1351_v21 }
  0x50   :  { %1242 = vmatpush3.bf16.msra.mxu0 %v1346_v19 }
  0x51   :  { %1243 = vmatprep.subr.bf16.mxu0 %v1347_v20 }
  0x54   :  { %1244 = vmatpush3.bf16.msra.mxu0 %v1347_v20 }
  0x55   :  { %1245 = vmatprep.subr.bf16.mxu0 %v1348_v22 }
  0x58   :  { %1246 = vmatpush3.bf16.msra.mxu0 %v1348_v22 }
  0x59   :  { %1247 = vmatprep.subr.bf16.mxu0 %v1349_v23 }
  0x5c   :  { %1248 = vmatpush3.bf16.msra.mxu0 %v1349_v23 }
  0x5d   :  { %1249 = vmatprep.subr.bf16.mxu0 %v1350_v24 }
  0x60   :  { %1250 = vmatpush3.bf16.msra.mxu0 %v1350_v24 }
  0x63   :  { %1252 = vmatmul.mubr.bf16.vlgmr.msra.gmra.mxu0 %v1352_v25 }
  0xe3   :  { %v1129_v26 = vpop.f32.mrf.mxu0 }
  0xe4   :  { %v1157_v27 = vpop.f32.mrf.mxu1 }
  0xe5   :  { %v1130_v28 = vpop.f32.mrf.mxu0 }
  0xe6   :  { %v1158_v29 = vpop.f32.mrf.mxu1  ;;  %v1131_v55 = vadd.f32 %v1130_v28, %v1129_v26 }
  0xe7   :  { %v1132_v30 = vpop.f32.mrf.mxu0  ;;  %v1159_v56 = vadd.f32 %v1158_v29, %v1157_v27 }
  0xe8   :  { %v1160_v31 = vpop.f32.mrf.mxu1 }
  0xe9   :  { %v1133_v32 = vpop.f32.mrf.mxu0  ;;  %v787_v4 = vadd.f32 %v1159_v56, %v1131_v55 }
  0xea   :  { %v1161_v34 = vpop.f32.mrf.mxu1  ;;  %v1134_v63 = vadd.f32 %v1133_v32, %v1132_v30 }
  0xeb   :  { %v1135_v33 = vpop.f32.mrf.mxu0  ;;  %v1162_v0 = vadd.f32 %v1161_v34, %v1160_v31 }
  0xec   :  { %v1163_v35 = vpop.f32.mrf.mxu1 }
  0xed   :  { %v1136_v36 = vpop.f32.mrf.mxu0  ;;  %v790_v9 = vadd.f32 %v1162_v0, %v1134_v63 }
  0xee   :  { %v1164_v37 = vpop.f32.mrf.mxu1  ;;  %v1137_v59 = vadd.f32 %v1136_v36, %v1135_v33 }
  0xef   :  { %v1138_v38 = vpop.f32.mrf.mxu0  ;;  %v1165_v60 = vadd.f32 %v1164_v37, %v1163_v35 }
  0xf0   :  { %v1166_v39 = vpop.f32.mrf.mxu1 }
  0xf1   :  { %v1139_v40 = vpop.f32.mrf.mxu0  ;;  %v795_v6 = vadd.f32 %v1165_v60, %v1137_v59 }
  0xf2   :  { %v1167_v42 = vpop.f32.mrf.mxu1  ;;  %v1140_v61 = vadd.f32 %v1139_v40, %v1138_v38 }
  0xf3   :  { %v1168_v62 = vadd.f32 %v1167_v42, %v1166_v39 }
  0xf5   :  { %v798_v7 = vadd.f32 %v1168_v62, %v1140_v61 }
 0x103   :  { %v1185_v41 = vpop.f32.mrf.mxu0 }
 0x104   :  { %v1213_v44 = vpop.f32.mrf.mxu1 }
 0x105   :  { %v1186_v43 = vpop.f32.mrf.mxu0 }
 0x106   :  { %v1214_v46 = vpop.f32.mrf.mxu1  ;;  %v1187_v1 = vadd.f32 %v1186_v43, %v1185_v41 }
 0x107   :  { %v1188_v45 = vpop.f32.mrf.mxu0  ;;  %v1215_v11 = vadd.f32 %v1214_v46, %v1213_v44 }
 0x108   :  { %v1216_v48 = vpop.f32.mrf.mxu1  ;;  %v836_v10 = vadd.f32 %v1187_v1, %v787_v4 }
 0x109   :  { %v1189_v47 = vpop.f32.mrf.mxu0 }
 0x10a   :  { %v1217_v50 = vpop.f32.mrf.mxu1  ;;  %v1190_v8 = vadd.f32 %v1189_v47, %v1188_v45  ;;  %v885_v21 = vadd.f32 %v1215_v11, %v836_v10 }
 0x10b   :  { %v1191_v49 = vpop.f32.mrf.mxu0  ;;  %v1218_v18 = vadd.f32 %v1217_v50, %v1216_v48 }
 0x10c   :  { %v1219_v52 = vpop.f32.mrf.mxu1  ;;  %v839_v17 = vadd.f32 %v1190_v8, %v790_v9 }
 0x10d   :  { %v1192_v51 = vpop.f32.mrf.mxu0 }
 0x10e   :  { %v1220_v54 = vpop.f32.mrf.mxu1  ;;  %v1193_v2 = vadd.f32 %v1192_v51, %v1191_v49  ;;  %v888_v27 = vadd.f32 %v1218_v18, %v839_v17 }
 0x10f   :  { %v1194_v53 = vpop.f32.mrf.mxu0  ;;  %v1221_v13 = vadd.f32 %v1220_v54, %v1219_v52 }
 0x110   :  { %v1222_v58 = vpop.f32.mrf.mxu1  ;;  %v844_v12 = vadd.f32 %v1193_v2, %v795_v6 }
 0x111   :  { %v1195_v57 = vpop.f32.mrf.mxu0 }
 0x112   :  { %v1196_v3 = vadd.f32 %v1195_v57, %v1194_v53  ;;  %v1223_v5 = vpop.f32.mrf.mxu1  ;;  %v893_v20 = vadd.f32 %v1221_v13, %v844_v12 }
 0x113   :  { %v1224_v15 = vadd.f32 %v1223_v5, %v1222_v58 }
 0x114   :  { %v847_v14 = vadd.f32 %v1196_v3, %v798_v7 }
 0x116   :  { %v896_v22 = vadd.f32 %v1224_v15, %v847_v14 }
 0x123   :  { %v1253_v16 = vpop.f32.mrf.mxu0 }
 0x124   :  { %v942_v24 = vadd.f32 %v1253_v16, %v893_v20 }
 0x125   :  { %v933_v19 = vpop.f32.mrf.mxu0 }
 0x126   :  { %v934_v25 = vadd.f32 %v933_v19, %v885_v21  ;;  %v960_v35 = vmul.f32 %v942_v24, %v942_v24 }
 0x127   :  { %v1254_v23 = vpop.f32.mrf.mxu0 }
 0x128   :  { %v945_v26 = vadd.f32 %v1254_v23, %v896_v22  ;;  %v958_v31 = vmul.f32 %v934_v25, %v934_v25 }
 0x129   :  { %v936_v28 = vpop.f32.mrf.mxu0 }
 0x12a   :  { %v1110_v29 = vpack.c.bf16 %v945_v26, %v942_v24  ;;  %v937_v30 = vadd.f32 %v936_v28, %v888_v27  ;;  %v961_v38 = vmul.f32 %v945_v26, %v945_v26 }
 0x12c   :  { %1112 = vst [vmem:[%s1662_s2 + $0x8] sm:$0xff] %v1110_v29   ;;  %v948_v32 = vadd.f32 %v937_v30, %v934_v25  ;;  %v959_v33 = vmul.f32 %v937_v30, %v937_v30  ;;  %v1105_v34 = vpack.c.bf16 %v937_v30, %v934_v25 }
 0x12e   :  { %v949_v36 = vadd.f32 %v948_v32, %v942_v24  ;;  %v962_v37 = vadd.f32 %v959_v33, %v958_v31  ;;  %1106 = vst [vmem:[%s1662_s2] sm:$0xff] %v1105_v34  }
 0x130   :  { %v950_v39 = vadd.f32 %v949_v36, %v945_v26  ;;  %v963_v40 = vadd.f32 %v962_v37, %v960_v35 }
 0x132   :  { %v951_v41 = vrot.slane %v950_v39, 4  ;;  %v964_v42 = vadd.f32 %v963_v40, %v961_v38 }
 0x134   :  { %v952_v43 = vadd.f32 %v951_v41, %v950_v39  ;;  %v965_v44 = vrot.slane %v964_v42, 4 }
 0x136   :  { %v953_v45 = vrot.slane %v952_v43, 2  ;;  %v966_v46 = vadd.f32 %v965_v44, %v964_v42 }
 0x138   :  { %v954_v47 = vadd.f32 %v953_v45, %v952_v43  ;;  %v967_v48 = vrot.slane %v966_v46, 2 }
 0x13a   :  { %v955_v49 = vrot.slane %v954_v47, 1  ;;  %v968_v50 = vadd.f32 %v967_v48, %v966_v46 }
 0x13c   :  { %v956_v51 = vadd.f32 %v955_v49, %v954_v47  ;;  %v969_v52 = vrot.slane %v968_v50, 1 }
 0x13e   :  { %957 = vst [vmem:[%s1663_s3] sm:$0x1] %v956_v51  ;;  %v970_v53 = vadd.f32 %v969_v52, %v968_v50 }
 0x140   :  { %971 = vst [vmem:[%s1664_s4] sm:$0x1] %v970_v53 }

// kernel: resnet_filter_forward.22
= control target key start
LH: loop header
LB: loop body
LE: loop exit
PB: predicated region body
PF: predicated region fallthrough
CT: control target
= control target key end

     0   :  { %s171_s0 = inlined_call_operand.vmem [shape: bf16[32,128], index: 0, kind: input, shape index: {}]   ;;  %s172_s1 = inlined_call_operand.vmem [shape: f32[1,128], index: 1, kind: input, shape index: {}]   ;;  %s173_s2 = inlined_call_operand.vmem [shape: f32[1,128], index: 2, kind: input, shape index: {}]   ;;  %s174_s3 = inlined_call_operand.vmem [shape: bf16[32,128], index: 3, kind: input, shape index: {}]   ;;  %s175_s4 = inlined_call_operand.vmem [shape: bf16[32,128], index: 4, kind: output, shape index: {}]  }
   0x1   :  { %v94_v0 = vld [vmem:[%s171_s0] sm:$0xff]   ;;  %v119_v5 = vld [vmem:[%s171_s0 + $0x8] sm:$0xff]  }
   0x2   :  { %v83_v1 = vld [vmem:[%s172_s1] ss:$0 sm:$0xff]  ;;  %v95_v2 = vunpack.c.l.bf16 %v94_v0  ;;  %v96_v3 = vunpack.c.h.bf16 %v94_v0  ;;  %v120_v6 = vld [vmem:[%s174_s3 + $0x8] sm:$0xff]   ;;  %v99_v8 = vunpack.c.l.bf16 %v119_v5  ;;  %v100_v9 = vunpack.c.h.bf16 %v119_v5 }
   0x3   :  { %v102_v4 = vld [vmem:[%s174_s3] sm:$0xff]   ;;  %v107_v16 = vunpack.c.l.bf16 %v120_v6  ;;  %v108_v17 = vunpack.c.h.bf16 %v120_v6 }
   0x4   :  { %v84_v7 = vld [vmem:[%s173_s2] ss:$0 sm:$0xff]  ;;  %v32_v10 = vmul.f32 %v95_v2, %v83_v1  ;;  %v33_v11 = vmul.f32 %v96_v3, %v83_v1  ;;  %v103_v12 = vunpack.c.l.bf16 %v102_v4  ;;  %v104_v13 = vunpack.c.h.bf16 %v102_v4 }
   0x5   :  { %v34_v14 = vmul.f32 %v99_v8, %v83_v1  ;;  %v35_v15 = vmul.f32 %v100_v9, %v83_v1 }
   0x6   :  { %v43_v18 = vadd.f32 %v84_v7, %v32_v10  ;;  %v44_v19 = vadd.f32 %v84_v7, %v33_v11 }
   0x7   :  { %v45_v20 = vadd.f32 %v84_v7, %v34_v14  ;;  %v46_v21 = vadd.f32 %v84_v7, %v35_v15 }
   0x8   :  { %v55_v22 = vadd.f32 %v103_v12, %v43_v18  ;;  %v56_v23 = vadd.f32 %v104_v13, %v44_v19 }
   0x9   :  { %v57_v24 = vadd.f32 %v107_v16, %v45_v20  ;;  %v58_v25 = vadd.f32 %v108_v17, %v46_v21 }
   0xa   :  { %v112_v26 = vpack.c.bf16 %v56_v23, %v55_v22 }
   0xb   :  { %v117_v27 = vpack.c.bf16 %v58_v25, %v57_v24 }
   0xc   :  { %113 = vst [vmem:[%s175_s4] sm:$0xff] %v112_v26  }
   0xd   :  { %121 = vst [vmem:[%s175_s4 + $0x8] sm:$0xff] %v117_v27  }

// kernel: resnet_filter_forward.25
= control target key start
LH: loop header
LB: loop body
LE: loop exit
PB: predicated region body
PF: predicated region fallthrough
CT: control target
= control target key end

     0   :  { %s1623_s1 = inlined_call_operand.vmem [shape: bf16[1152,128], index: 1, kind: input, shape index: {}]   ;;  %s1624_s0 = inlined_call_operand.vmem [shape: bf16[32,1152], index: 0, kind: input, shape index: {}]   ;;  %s1625_s2 = inlined_call_operand.vmem [shape: bf16[32,128], index: 2, kind: input, shape index: {}]   ;;  %s1626_s3 = inlined_call_operand.vmem [shape: f32[32,128], index: 3, kind: output, shape index: {}]  }
   0x1   :  { %v1209_v0 = vld [vmem:[%s1623_s1 + $0x78] sm:$0xff]   ;;  %v1213_v4 = vld [vmem:[%s1623_s1 + $0x70] sm:$0xff]   ;;  %v1217_v8 = vld [vmem:[%s1623_s1 + $0x68] sm:$0xff]  }
   0x2   :  { %v1210_v1 = vld [vmem:[%s1623_s1 + $0x38] sm:$0xff]   ;;  %1067 = vmatprep.subr.bf16.mxu0 %v1209_v0  ;;  %v1214_v5 = vld [vmem:[%s1623_s1 + $0x30] sm:$0xff]   ;;  %v1218_v9 = vld [vmem:[%s1623_s1 + $0x28] sm:$0xff]  }
   0x3   :  { %v1211_v2 = vld [vmem:[%s1623_s1 + $0xf8] sm:$0xff]   ;;  %1068 = vmatpush3.bf16.msra.mxu0 %v1210_v1  ;;  %v1215_v6 = vld [vmem:[%s1623_s1 + $0xf0] sm:$0xff]   ;;  %v1219_v10 = vld [vmem:[%s1623_s1 + $0xe8] sm:$0xff]  }
   0x4   :  { %v1212_v3 = vld [vmem:[%s1623_s1 + $0xb8] sm:$0xff]   ;;  %1095 = vmatprep.subr.bf16.mxu1 %v1211_v2  ;;  %1069 = vmatprep.subr.bf16.mxu0 %v1213_v4  ;;  %v1216_v7 = vld [vmem:[%s1623_s1 + $0xb0] sm:$0xff]   ;;  %v1220_v11 = vld [vmem:[%s1623_s1 + $0xa8] sm:$0xff]  }
   0x5   :  { %1096 = vmatpush3.bf16.msra.mxu1 %v1212_v3  ;;  %v1221_v12 = vld [vmem:[%s1623_s1 + $0x60] sm:$0xff]   ;;  %v1225_v16 = vld [vmem:[%s1623_s1 + $0x58] sm:$0xff]   ;;  %v1229_v20 = vld [vmem:[%s1623_s1 + $0x50] sm:$0xff]  }
   0x6   :  { %1097 = vmatprep.subr.bf16.mxu1 %v1215_v6  ;;  %v1222_v13 = vld [vmem:[%s1623_s1 + $0x20] sm:$0xff]   ;;  %v1226_v17 = vld [vmem:[%s1623_s1 + $0x18] sm:$0xff]   ;;  %v1230_v21 = vld [vmem:[%s1623_s1 + $0x10] sm:$0xff]  }
   0x7   :  { %1070 = vmatpush3.bf16.msra.mxu0 %v1214_v5  ;;  %v1223_v14 = vld [vmem:[%s1623_s1 + $0xe0] sm:$0xff]   ;;  %v1227_v18 = vld [vmem:[%s1623_s1 + $0xd8] sm:$0xff]   ;;  %v1231_v22 = vld [vmem:[%s1623_s1 + $0xd0] sm:$0xff]  }
   0x8   :  { %1071 = vmatprep.subr.bf16.mxu0 %v1217_v8  ;;  %v1224_v15 = vld [vmem:[%s1623_s1 + $0xa0] sm:$0xff]   ;;  %v1228_v19 = vld [vmem:[%s1623_s1 + $0x98] sm:$0xff]   ;;  %v1232_v23 = vld [vmem:[%s1623_s1 + $0x90] sm:$0xff]  }
   0x9   :  { %1098 = vmatpush3.bf16.msra.mxu1 %v1216_v7  ;;  %v1233_v24 = vld [vmem:[%s1623_s1 + $0x48] sm:$0xff]   ;;  %v1237_v28 = vld [vmem:[%s1623_s1 + $0x40] sm:$0xff]   ;;  %v1244_v34 = vld [vmem:[%s1623_s1 + $0x178] sm:$0xff]  }
   0xa   :  { %1099 = vmatprep.subr.bf16.mxu1 %v1219_v10  ;;  %v1234_v25 = vld [vmem:[%s1623_s1 + $0x8] sm:$0xff]   ;;  %v1238_v29 = vld [vmem:[%s1623_s1] sm:$0xff]   ;;  %v1248_v37 = vld [vmem:[%s1623_s1 + $0x138] sm:$0xff]  }
   0xb   :  { %1072 = vmatpush3.bf16.msra.mxu0 %v1218_v9  ;;  %v1235_v26 = vld [vmem:[%s1623_s1 + $0xc8] sm:$0xff]   ;;  %v1239_v30 = vld [vmem:[%s1623_s1 + $0xc0] sm:$0xff]   ;;  %v1249_v38 = vld [vmem:[%s1623_s1 + $0x1f8] sm:$0xff]  }
   0xc   :  { %1073 = vmatprep.subr.bf16.mxu0 %v1221_v12  ;;  %v1236_v27 = vld [vmem:[%s1623_s1 + $0x88] sm:$0xff]   ;;  %v1240_v31 = vld [vmem:[%s1624_s0] ss:$36 sps:$4 sm:$0xff]   ;;  %v1250_v39 = vld [vmem:[%s1623_s1 + $0x1b8] sm:$0xff]  }
   0xd   :  { %1100 = vmatpush3.bf16.msra.mxu1 %v1220_v11  ;;  %v1242_v32 = vld [vmem:[%s1624_s0 + $0x4] ss:$36 sps:$4 sm:$0xff]   ;;  %v1247_v36 = vld [vmem:[%s1624_s0 + $0xc] ss:$36 sps:$4 sm:$0xff]   ;;  %v1263_v52 = vld [vmem:[%s1623_s1 + $0x158] sm:$0xff]  }
   0xe   :  { %1101 = vmatprep.subr.bf16.mxu1 %v1223_v14  ;;  %v1243_v33 = vld [vmem:[%s1623_s1 + $0x80] sm:$0xff]   ;;  %743 = vmatprep.mubr.bf16.mxu0 %v1242_v32  ;;  %v1245_v35 = vld [vmem:[%s1624_s0 + $0x8] ss:$36 sps:$4 sm:$0xff]   ;;  %v1251_v40 = vld [vmem:[%s1623_s1 + $0x170] sm:$0xff]  }
   0xf   :  { %1074 = vmatpush3.bf16.msra.mxu0 %v1222_v13  ;;  %792 = vmatprep.mubr.bf16.mxu1 %v1247_v36  ;;  %v1252_v41 = vld [vmem:[%s1623_s1 + $0x130] sm:$0xff]   ;;  %v1255_v44 = vld [vmem:[%s1623_s1 + $0x168] sm:$0xff]   ;;  %v1259_v48 = vld [vmem:[%s1623_s1 + $0x160] sm:$0xff]  }
  0x10   :  { %1075 = vmatprep.subr.bf16.mxu0 %v1225_v16  ;;  %v1253_v42 = vld [vmem:[%s1623_s1 + $0x1f0] sm:$0xff]   ;;  %v1256_v45 = vld [vmem:[%s1623_s1 + $0x128] sm:$0xff]   ;;  %v1260_v49 = vld [vmem:[%s1623_s1 + $0x120] sm:$0xff]  }
  0x11   :  { %1102 = vmatpush3.bf16.msra.mxu1 %v1224_v15  ;;  %v1254_v43 = vld [vmem:[%s1623_s1 + $0x1b0] sm:$0xff]   ;;  %v1257_v46 = vld [vmem:[%s1623_s1 + $0x1e8] sm:$0xff]   ;;  %v1261_v50 = vld [vmem:[%s1623_s1 + $0x1e0] sm:$0xff]  }
  0x12   :  { %1103 = vmatprep.subr.bf16.mxu1 %v1227_v18  ;;  %v1258_v47 = vld [vmem:[%s1623_s1 + $0x1a8] sm:$0xff]   ;;  %v1262_v51 = vld [vmem:[%s1623_s1 + $0x1a0] sm:$0xff]   ;;  %v1264_v53 = vld [vmem:[%s1623_s1 + $0x118] sm:$0xff]  }
  0x13   :  { %1076 = vmatpush3.bf16.msra.mxu0 %v1226_v17  ;;  %v1265_v54 = vld [vmem:[%s1624_s0 + $0x4c] ss:$36 sps:$4 sm:$0xff]   ;;  %v1267_v55 = vld [vmem:[%s1623_s1 + $0x1d8] sm:$0xff]   ;;  %v1281_v4 = vld [vmem:[%s1623_s1 + $0x140] sm:$0xff]  }
  0x14   :  { %1077 = vmatprep.subr.bf16.mxu0 %v1229_v20  ;;  %v1268_v56 = vld [vmem:[%s1624_s0 + $0x48] ss:$36 sps:$4 sm:$0xff]   ;;  %v1269_v57 = vld [vmem:[%s1623_s1 + $0x198] sm:$0xff]   ;;  %v1272_v59 = vld [vmem:[%s1623_s1 + $0x150] sm:$0xff]  }
  0x15   :  { %1104 = vmatpush3.bf16.msra.mxu1 %v1228_v19  ;;  %v1270_v58 = vld [vmem:[%s1624_s0 + $0x54] ss:$36 sps:$4 sm:$0xff]   ;;  %v1277_v0 = vld [vmem:[%s1623_s1 + $0x148] sm:$0xff]   ;;  %v1282_v5 = vld [vmem:[%s1623_s1 + $0x100] sm:$0xff]  }
  0x16   :  { %1105 = vmatprep.subr.bf16.mxu1 %v1231_v22  ;;  %v1273_v60 = vld [vmem:[%s1624_s0 + $0x50] ss:$36 sps:$4 sm:$0xff]   ;;  %v1278_v1 = vld [vmem:[%s1623_s1 + $0x108] sm:$0xff]   ;;  %v1283_v6 = vld [vmem:[%s1623_s1 + $0x1c0] sm:$0xff]  }
  0x17   :  { %1078 = vmatpush3.bf16.msra.mxu0 %v1230_v21  ;;  %v1274_v61 = vld [vmem:[%s1623_s1 + $0x110] sm:$0xff]   ;;  %v1279_v2 = vld [vmem:[%s1623_s1 + $0x1c8] sm:$0xff]   ;;  %v1287_v9 = vld [vmem:[%s1623_s1 + $0x180] sm:$0xff]  }
  0x18   :  { %1079 = vmatprep.subr.bf16.mxu0 %v1233_v24  ;;  %v1275_v62 = vld [vmem:[%s1623_s1 + $0x1d0] sm:$0xff]   ;;  %v1280_v3 = vld [vmem:[%s1623_s1 + $0x188] sm:$0xff]   ;;  %v1288_v10 = vld [vmem:[%s1623_s1 + $0x238] sm:$0xff]  }
  0x19   :  { %1106 = vmatpush3.bf16.msra.mxu1 %v1232_v23  ;;  %v1276_v63 = vld [vmem:[%s1623_s1 + $0x190] sm:$0xff]   ;;  %v1289_v11 = vld [vmem:[%s1624_s0 + $0x18] ss:$36 sps:$4 sm:$0xff]   ;;  %v1296_v16 = vld [vmem:[%s1623_s1 + $0x228] sm:$0xff]  }
  0x1a   :  { %1107 = vmatprep.subr.bf16.mxu1 %v1235_v26  ;;  %v1284_v7 = vld [vmem:[%s1624_s0 + $0x10] ss:$36 sps:$4 sm:$0xff]   ;;  %v1291_v12 = vld [vmem:[%s1624_s0 + $0x1c] ss:$36 sps:$4 sm:$0xff]   ;;  %v1297_v17 = vld [vmem:[%s1624_s0 + $0x64] ss:$36 sps:$4 sm:$0xff]  }
  0x1b   :  { %1080 = vmatpush3.bf16.msra.mxu0 %v1234_v25  ;;  %v1286_v8 = vld [vmem:[%s1624_s0 + $0x14] ss:$36 sps:$4 sm:$0xff]   ;;  %v1293_v14 = vld [vmem:[%s1624_s0 + $0x5c] ss:$36 sps:$4 sm:$0xff]   ;;  %v1303_v23 = vld [vmem:[%s1623_s1 + $0x208] sm:$0xff]  }
  0x1c   :  { %1081 = vmatprep.subr.bf16.mxu0 %v1237_v28  ;;  %v1292_v13 = vld [vmem:[%s1623_s1 + $0x230] sm:$0xff]   ;;  %v1295_v15 = vld [vmem:[%s1624_s0 + $0x58] ss:$36 sps:$4 sm:$0xff]   ;;  %v1299_v18 = vld [vmem:[%s1624_s0 + $0x60] ss:$36 sps:$4 sm:$0xff]  }
  0x1d   :  { %1108 = vmatpush3.bf16.msra.mxu1 %v1236_v27  ;;  %v1300_v19 = vld [vmem:[%s1623_s1 + $0x220] sm:$0xff]   ;;  %v1301_v20 = vld [vmem:[%s1623_s1 + $0x218] sm:$0xff]   ;;  %v1302_v22 = vld [vmem:[%s1623_s1 + $0x210] sm:$0xff]  }
  0x1e   :  { %1109 = vmatprep.subr.bf16.mxu1 %v1239_v30  ;;  %v1305_v21 = vld [vmem:[%s1624_s0 + $0x20] ss:$36 sps:$4 sm:$0xff]   ;;  %v1306_v25 = vld [vmem:[%s1624_s0 + $0x68] ss:$36 sps:$4 sm:$0xff]  }
  0x1f   :  { %1082 = vmatpush3.bf16.msra.mxu0 %v1238_v29  ;;  %v1304_v24 = vld [vmem:[%s1623_s1 + $0x200] sm:$0xff]  }
  0x20   :  { %1123 = vmatprep.subr.bf16.mxu0 %v1244_v34 }
  0x21   :  { %1110 = vmatpush3.bf16.msra.mxu1 %v1243_v33 }
  0x22   :  { %744 = vmatmul.mubr.bf16.vlgmr.msra.gmra.mxu0 %v1240_v31  ;;  %1151 = vmatprep.subr.bf16.mxu1 %v1249_v38 }
  0x23   :  { %1124 = vmatpush3.bf16.msra.mxu0 %v1248_v37  ;;  %751 = vmatprep.mubr.bf16.mxu0 %v1265_v54 }
  0x24   :  { %793 = vmatmul.mubr.bf16.vlgmr.msra.gmra.mxu1 %v1245_v35  ;;  %1125 = vmatprep.subr.bf16.mxu0 %v1251_v40 }
  0x25   :  { %1152 = vmatpush3.bf16.msra.mxu1 %v1250_v39  ;;  %800 = vmatprep.mubr.bf16.mxu1 %v1270_v58 }
  0x26   :  { %1153 = vmatprep.subr.bf16.mxu1 %v1253_v42 }
  0x27   :  { %1126 = vmatpush3.bf16.msra.mxu0 %v1252_v41 }
  0x28   :  { %1127 = vmatprep.subr.bf16.mxu0 %v1255_v44 }
  0x29   :  { %1154 = vmatpush3.bf16.msra.mxu1 %v1254_v43 }
  0x2a   :  { %1155 = vmatprep.subr.bf16.mxu1 %v1257_v46  ;;  %752 = vmatmul.mubr.bf16.gmra.mxu0 %v1268_v56 }
  0x2b   :  { %1128 = vmatpush3.bf16.msra.mxu0 %v1256_v45  ;;  %841 = vmatprep.mubr.bf16.mxu0 %v1286_v8 }
  0x2c   :  { %1129 = vmatprep.subr.bf16.mxu0 %v1259_v48  ;;  %801 = vmatmul.mubr.bf16.gmra.mxu1 %v1273_v60 }
  0x2d   :  { %1156 = vmatpush3.bf16.msra.mxu1 %v1258_v47  ;;  %890 = vmatprep.mubr.bf16.mxu1 %v1291_v12 }
  0x2e   :  { %1157 = vmatprep.subr.bf16.mxu1 %v1261_v50 }
  0x2f   :  { %1130 = vmatpush3.bf16.msra.mxu0 %v1260_v49 }
  0x30   :  { %1131 = vmatprep.subr.bf16.mxu0 %v1263_v52  ;;  %v1059_v52 = vld [vmem:[%s1625_s2] sm:$0xff]  }
  0x31   :  { %1158 = vmatpush3.bf16.msra.mxu1 %v1262_v51  ;;  %v1066_v51 = vld [vmem:[%s1625_s2 + $0x8] sm:$0xff]  }
  0x32   :  { %1159 = vmatprep.subr.bf16.mxu1 %v1267_v55  ;;  %v1064_v55 = vunpack.c.l.bf16 %v1066_v51 }
  0x33   :  { %1132 = vmatpush3.bf16.msra.mxu0 %v1264_v53 }
  0x34   :  { %1133 = vmatprep.subr.bf16.mxu0 %v1272_v59 }
  0x35   :  { %1160 = vmatpush3.bf16.msra.mxu1 %v1269_v57  ;;  %v1060_v57 = vunpack.c.l.bf16 %v1059_v52 }
  0x36   :  { %1161 = vmatprep.subr.bf16.mxu1 %v1275_v62 }
  0x37   :  { %1134 = vmatpush3.bf16.msra.mxu0 %v1274_v61 }
  0x38   :  { %1135 = vmatprep.subr.bf16.mxu0 %v1277_v0 }
  0x39   :  { %1162 = vmatpush3.bf16.msra.mxu1 %v1276_v63  ;;  %v1065_v63 = vunpack.c.h.bf16 %v1066_v51 }
  0x3a   :  { %1163 = vmatprep.subr.bf16.mxu1 %v1279_v2 }
  0x3b   :  { %1136 = vmatpush3.bf16.msra.mxu0 %v1278_v1 }
  0x3c   :  { %1137 = vmatprep.subr.bf16.mxu0 %v1281_v4 }
  0x3d   :  { %1164 = vmatpush3.bf16.msra.mxu1 %v1280_v3  ;;  %v1061_v3 = vunpack.c.h.bf16 %v1059_v52 }
  0x3e   :  { %1165 = vmatprep.subr.bf16.mxu1 %v1283_v6 }
  0x3f   :  { %1138 = vmatpush3.bf16.msra.mxu0 %v1282_v5 }
  0x40   :  { %1189 = vmatprep.subr.bf16.mxu0 %v1288_v10 }
  0x41   :  { %1166 = vmatpush3.bf16.msra.mxu1 %v1287_v9 }
  0x42   :  { %842 = vmatmul.mubr.bf16.vlgmr.msra.gmra.mxu0 %v1284_v7 }
  0x43   :  { %1190 = vmatpush3.bf16.msra.mxu0 %v1288_v10  ;;  %849 = vmatprep.mubr.bf16.mxu0 %v1293_v14 }
  0x44   :  { %891 = vmatmul.mubr.bf16.vlgmr.msra.gmra.mxu1 %v1289_v11  ;;  %1191 = vmatprep.subr.bf16.mxu0 %v1292_v13 }
  0x45   :  { %898 = vmatprep.mubr.bf16.mxu1 %v1297_v17 }
  0x47   :  { %1192 = vmatpush3.bf16.msra.mxu0 %v1292_v13 }
  0x48   :  { %1193 = vmatprep.subr.bf16.mxu0 %v1296_v16 }
  0x4a   :  { %850 = vmatmul.mubr.bf16.gmra.mxu0 %v1295_v15 }
  0x4b   :  { %1194 = vmatpush3.bf16.msra.mxu0 %v1296_v16  ;;  %1205 = vmatprep.mubr.bf16.mxu0 %v1305_v21 }
  0x4c   :  { %899 = vmatmul.mubr.bf16.gmra.mxu1 %v1299_v18  ;;  %1195 = vmatprep.subr.bf16.mxu0 %v1300_v19 }
  0x4f   :  { %1196 = vmatpush3.bf16.msra.mxu0 %v1300_v19 }
  0x50   :  { %1197 = vmatprep.subr.bf16.mxu0 %v1301_v20 }
  0x53   :  { %1198 = vmatpush3.bf16.msra.mxu0 %v1301_v20 }
  0x54   :  { %1199 = vmatprep.subr.bf16.mxu0 %v1302_v22 }
  0x57   :  { %1200 = vmatpush3.bf16.msra.mxu0 %v1302_v22 }
  0x58   :  { %1201 = vmatprep.subr.bf16.mxu0 %v1303_v23 }
  0x5b   :  { %1202 = vmatpush3.bf16.msra.mxu0 %v1303_v23 }
  0x5c   :  { %1203 = vmatprep.subr.bf16.mxu0 %v1304_v24 }
  0x5f   :  { %1204 = vmatpush3.bf16.msra.mxu0 %v1304_v24 }
  0x62   :  { %1206 = vmatmul.mubr.bf16.vlgmr.msra.gmra.mxu0 %v1306_v25 }
  0xe2   :  { %v1083_v26 = vpop.f32.mrf.mxu0 }
  0xe4   :  { %v1111_v27 = vpop.f32.mrf.mxu1  ;;  %v1084_v28 = vpop.f32.mrf.mxu0 }
  0xe5   :  { %v1085_v58 = vadd.f32 %v1084_v28, %v1083_v26 }
  0xe6   :  { %v1112_v29 = vpop.f32.mrf.mxu1  ;;  %v1086_v30 = vpop.f32.mrf.mxu0 }
  0xe7   :  { %v746_v1 = vadd.f32 %v1085_v58, %v1060_v57  ;;  %v1113_v2 = vadd.f32 %v1112_v29, %v1111_v27 }
  0xe8   :  { %v1114_v31 = vpop.f32.mrf.mxu1  ;;  %v1087_v32 = vpop.f32.mrf.mxu0 }
  0xe9   :  { %v1088_v4 = vadd.f32 %v1087_v32, %v1086_v30  ;;  %v795_v12 = vadd.f32 %v1113_v2, %v746_v1 }
  0xea   :  { %v1089_v33 = vpop.f32.mrf.mxu0  ;;  %v1115_v34 = vpop.f32.mrf.mxu1 }
  0xeb   :  { %v749_v13 = vadd.f32 %v1088_v4, %v1061_v3  ;;  %v1116_v14 = vadd.f32 %v1115_v34, %v1114_v31 }
  0xec   :  { %v1117_v35 = vpop.f32.mrf.mxu1  ;;  %v1090_v36 = vpop.f32.mrf.mxu0 }
  0xed   :  { %v1091_v56 = vadd.f32 %v1090_v36, %v1089_v33  ;;  %v798_v23 = vadd.f32 %v1116_v14, %v749_v13 }
  0xee   :  { %v1118_v37 = vpop.f32.mrf.mxu1  ;;  %v1092_v38 = vpop.f32.mrf.mxu0 }
  0xef   :  { %v754_v61 = vadd.f32 %v1091_v56, %v1064_v55  ;;  %v1119_v62 = vadd.f32 %v1118_v37, %v1117_v35 }
  0xf0   :  { %v1120_v39 = vpop.f32.mrf.mxu1  ;;  %v1093_v40 = vpop.f32.mrf.mxu0 }
  0xf1   :  { %v1094_v0 = vadd.f32 %v1093_v40, %v1092_v38  ;;  %v803_v8 = vadd.f32 %v1119_v62, %v754_v61 }
  0xf2   :  { %v1121_v42 = vpop.f32.mrf.mxu1 }
  0xf3   :  { %v757_v9 = vadd.f32 %v1094_v0, %v1065_v63  ;;  %v1122_v10 = vadd.f32 %v1121_v42, %v1120_v39 }
  0xf5   :  { %v806_v19 = vadd.f32 %v1122_v10, %v757_v9 }
 0x102   :  { %v1139_v41 = vpop.f32.mrf.mxu0 }
 0x104   :  { %v1140_v43 = vpop.f32.mrf.mxu0  ;;  %v1167_v44 = vpop.f32.mrf.mxu1 }
 0x105   :  { %v1141_v11 = vadd.f32 %v1140_v43, %v1139_v41 }
 0x106   :  { %v1142_v45 = vpop.f32.mrf.mxu0  ;;  %v1168_v46 = vpop.f32.mrf.mxu1 }
 0x107   :  { %v844_v20 = vadd.f32 %v1141_v11, %v795_v12  ;;  %v1169_v21 = vadd.f32 %v1168_v46, %v1167_v44 }
 0x108   :  { %v1143_v47 = vpop.f32.mrf.mxu0  ;;  %v1170_v48 = vpop.f32.mrf.mxu1 }
 0x109   :  { %v1144_v22 = vadd.f32 %v1143_v47, %v1142_v45  ;;  %v893_v32 = vadd.f32 %v1169_v21, %v844_v20 }
 0x10a   :  { %v1145_v49 = vpop.f32.mrf.mxu0  ;;  %v1171_v50 = vpop.f32.mrf.mxu1 }
 0x10b   :  { %v847_v28 = vadd.f32 %v1144_v22, %v798_v23  ;;  %v1172_v29 = vadd.f32 %v1171_v50, %v1170_v48 }
 0x10c   :  { %v1146_v53 = vpop.f32.mrf.mxu0  ;;  %v1173_v54 = vpop.f32.mrf.mxu1 }
 0x10d   :  { %v1147_v5 = vadd.f32 %v1146_v53, %v1145_v49  ;;  %v896_v37 = vadd.f32 %v1172_v29, %v847_v28 }
 0x10e   :  { %v1148_v59 = vpop.f32.mrf.mxu0  ;;  %v1174_v60 = vpop.f32.mrf.mxu1 }
 0x10f   :  { %v852_v15 = vadd.f32 %v1147_v5, %v803_v8  ;;  %v1175_v16 = vadd.f32 %v1174_v60, %v1173_v54 }
 0x110   :  { %v1149_v6 = vpop.f32.mrf.mxu0  ;;  %v1176_v7 = vpop.f32.mrf.mxu1 }
 0x111   :  { %v1150_v17 = vadd.f32 %v1149_v6, %v1148_v59  ;;  %v901_v26 = vadd.f32 %v1175_v16, %v852_v15 }
 0x112   :  { %v1177_v18 = vpop.f32.mrf.mxu1 }
 0x113   :  { %v855_v24 = vadd.f32 %v1150_v17, %v806_v19  ;;  %v1178_v25 = vadd.f32 %v1177_v18, %v1176_v7 }
 0x115   :  { %v904_v34 = vadd.f32 %v1178_v25, %v855_v24 }
 0x122   :  { %v1207_v27 = vpop.f32.mrf.mxu0 }
 0x123   :  { %v950_v30 = vadd.f32 %v1207_v27, %v901_v26 }
 0x124   :  { %v941_v33 = vpop.f32.mrf.mxu0 }
 0x125   :  { %1307 = vtanh.f32 %v950_v30  ;;  %v942_v31 = vadd.f32 %v941_v33, %v893_v32 }
 0x126   :  { %v1208_v35 = vpop.f32.mrf.mxu0 }
 0x127   :  { %1309 = vtanh.f32 %v942_v31  ;;  %v953_v36 = vadd.f32 %v1208_v35, %v904_v34 }
 0x128   :  { %v944_v38 = vpop.f32.mrf.mxu0 }
 0x129   :  { %1311 = vtanh.f32 %v953_v36  ;;  %v945_v39 = vadd.f32 %v944_v38, %v896_v37 }
 0x12b   :  { %1313 = vtanh.f32 %v945_v39 }
 0x132   :  { %v1308_v40 = vpop.eup %1307 }
 0x133   :  { %962 = vst [vmem:[%s1626_s3 + $0x10] sm:$0xff] %v1308_v40 }
 0x134   :  { %v1310_v41 = vpop.eup %1309 }
 0x135   :  { %960 = vst [vmem:[%s1626_s3] sm:$0xff] %v1310_v41 }
 0x136   :  { %v1312_v42 = vpop.eup %1311 }
 0x137   :  { %963 = vst [vmem:[%s1626_s3 + $0x18] sm:$0xff] %v1312_v42 }
 0x138   :  { %v1314_v43 = vpop.eup %1313 }
 0x139   :  { %961 = vst [vmem:[%s1626_s3 + $0x8] sm:$0xff] %v1314_v43 }

</bundles_post_ra>
